<compile_context>
chip_gen: v7x
topology: tpu7x:2x2x1
jax: 0.10.0
libtpu: 0.0.40
codegen_flags: <defaults>
</compile_context>

<pallas_src>
import functools

import jax
import jax.numpy as jnp
from jax import lax
from jax.experimental import pallas as pl
from jax.experimental.pallas import tpu as pltpu

NEG_SLOPE = 0.01                    # nn.LeakyReLU() default
BN_EPS = 1e-5                       # nn.BatchNorm2d default
LANES = 128
_VMEM_LIMIT = 32 * 1024 * 1024      # scoped-VMEM budget safe on v5e/v6e/v7x


def _pick_row_tile(oh, ow, cap_rows):
    """Output-row tile: largest divisor of OH whose rows fit the cap and keep
    the pass-2 store lane-dense (rows % 128 == 0) or cover the full image."""
    cands = [d for d in range(1, oh + 1)
             if oh % d == 0 and ((d * ow) % LANES == 0 or d == oh)]
    within = [d for d in cands if d * ow <= cap_rows]
    return max(within) if within else min(cands)


def _conv_act_tile(x_ref, w_ref, b_ref, *, toh, ow, stride, kh_sz, kw_sz):
    """Fused im2col conv + bias + LeakyReLU for one output-row tile.

    x_ref : (1, Hp, Wp, Cin)     padded NHWC input image, bf16
    w_ref : (KH*KW*Cin, Coutp)   reshaped weights, bf16 (resident)
    b_ref : (1, Coutp)           conv bias, f32 (resident)
    returns (toh*OW, Coutp) f32 activations.
    """
    t = pl.program_id(1)
    rows = toh * ow
    row_win = (toh - 1) * stride + kh_sz

    start = t * toh * stride
    if (toh * stride) % 8 == 0:
        start = pl.multiple_of(start, 8)            # aligned dynamic slice
    win = x_ref[0, pl.ds(start, row_win), :, :]     # (row_win, Wp, Cin)

    # Build the (rows, KH*KW*Cin) lhs by concatenating the taps along the
    # contraction dim -> ONE MXU dot instead of KH*KW tiny K=Cin dots.
    # TODO(synk): for stride > 1 a wrapper-side space-to-depth re-layout would
    # turn these strided slices into contiguous ones.
    patches = []
    for kh in range(kh_sz):
        for kw in range(kw_sz):
            patches.append(win[kh:kh + (toh - 1) * stride + 1:stride,
                               kw:kw + (ow - 1) * stride + 1:stride, :])
    lhs = jnp.concatenate(patches, axis=-1).reshape(rows, -1)   # (rows, K)

    acc = jnp.dot(lhs, w_ref[...], preferred_element_type=jnp.float32)
    acc = acc + b_ref[...]                                   # conv bias
    return jnp.where(acc >= 0, acc, NEG_SLOPE * acc)         # LeakyReLU, f32


def _stats_kernel(x_ref, w_ref, b_ref, st_ref, *, toh, ow, stride, kh_sz, kw_sz):
    """Pass 1: per-tile [sum; M2] statistics of the f32 activations."""
    rows = toh * ow
    y = _conv_act_tile(x_ref, w_ref, b_ref, toh=toh, ow=ow, stride=stride,
                       kh_sz=kh_sz, kw_sz=kw_sz)             # (rows, Coutp)
    s = jnp.sum(y, axis=0, keepdims=True)                    # (1, Coutp)
    mu = s * (1.0 / rows)
    d = y - mu
    m2 = jnp.sum(d * d, axis=0, keepdims=True)               # (1, Coutp)
    st_ref[0, 0] = jnp.concatenate([s, m2], axis=0)          # (2, Coutp)


def _bn_apply_kernel(x_ref, w_ref, b_ref, sc_ref, sh_ref, o_ref, *,
                     toh, ow, stride, kh_sz, kw_sz, cout):
    """Pass 2: recompute the conv tile, apply folded BN, store NCHW f32."""
    y = _conv_act_tile(x_ref, w_ref, b_ref, toh=toh, ow=ow, stride=stride,
                       kh_sz=kh_sz, kw_sz=kw_sz)             # (rows, Coutp) f32
    z = y * sc_ref[...] + sh_ref[...]                        # folded BN
    zt = jnp.transpose(z, (1, 0))                            # (Coutp, rows)
    o_ref[0] = zt[:cout, :].astype(o_ref.dtype)              # NCHW-layout store


def conv_block(x, w, b, gamma, beta, *, stride, padding):
    N, Cin, H, W = x.shape
    Cout, _, KH, KW = w.shape
    OH = (H + 2 * padding - KH) // stride + 1
    OW = (W + 2 * padding - KW) // stride + 1
    Hp, Wp = H + 2 * padding, W + 2 * padding
    Coutp = pl.cdiv(Cout, LANES) * LANES                     # lane-dense matmul N
    K = KH * KW * Cin                                        # single contraction dim

    toh = _pick_row_tile(OH, OW, 256)                        # <=256-row tiles
    T = OH // toh
    rows = toh * OW
    M = N * OH * OW

    # ---- layout prep: one un-inflated NHWC bf16 copy of the activations ----
    xh = jnp.transpose(x, (0, 2, 3, 1))
    xp = jnp.pad(xh, ((0, 0), (padding, padding), (padding, padding), (0, 0)))
    xp = xp.astype(jnp.bfloat16)
    # TODO(synk): for very large images on v7x, window the H axis of this input
    # block (or go memory_space=pl.ANY + manual DMA) instead of keeping the
    # whole padded image resident per grid step.

    # weights in (kh, kw, cin)-major order to match the lhs concatenation order
    wt = jnp.transpose(w, (2, 3, 1, 0)).reshape(K, Cout)
    wt = jnp.pad(wt, ((0, 0), (0, Coutp - Cout))).astype(jnp.bfloat16)
    b2 = jnp.pad(b, (0, Coutp - Cout)).reshape(1, Coutp).astype(jnp.float32)
    g2 = jnp.pad(gamma, (0, Coutp - Cout)).astype(jnp.float32)
    be2 = jnp.pad(beta, (0, Coutp - Cout)).astype(jnp.float32)

    kern_kw = dict(toh=toh, ow=OW, stride=stride, kh_sz=KH, kw_sz=KW)

    # ---- pass 1: conv + bias + LeakyReLU + per-tile statistics (no y store) ----
    part = pl.pallas_call(
        functools.partial(_stats_kernel, **kern_kw),
        out_shape=jax.ShapeDtypeStruct((N, T, 2, Coutp), jnp.float32),
        grid_spec=pltpu.PrefetchScalarGridSpec(
            num_scalar_prefetch=0,
            grid=(N, T),
            in_specs=[
                pl.BlockSpec((1, Hp, Wp, Cin), lambda n, t: (n, 0, 0, 0)),
                # TODO(synk): resident weight/bias blocks are double-buffered
                # by default; single-buffer them for large Cin*Cout layers.
                pl.BlockSpec((K, Coutp), lambda n, t: (0, 0)),
                pl.BlockSpec((1, Coutp), lambda n, t: (0, 0)),
            ],
            out_specs=pl.BlockSpec((1, 1, 2, Coutp), lambda n, t: (n, t, 0, 0))),
        compiler_params=pltpu.CompilerParams(
            dimension_semantics=("parallel", "parallel"),
            vmem_limit_bytes=_VMEM_LIMIT),
    )(xp, wt, b2)

    # ---- combine per-tile stats (Chan parallel variance; stable) ----
    sums = part[:, :, 0, :].reshape(N * T, Coutp)
    m2s = part[:, :, 1, :].reshape(N * T, Coutp)
    mean = jnp.sum(sums, axis=0) / M
    mus = sums / rows
    m2 = jnp.sum(m2s, axis=0) + rows * jnp.sum((mus - mean[None, :]) ** 2, axis=0)
    var = m2 / M                                 # biased, as BN normalization uses
    inv_std = lax.rsqrt(var + BN_EPS)
    scale = (g2 * inv_std).reshape(1, Coutp)
    shift = (be2 - mean * g2 * inv_std).reshape(1, Coutp)

    # ---- pass 2: recompute conv tile, apply folded BN, write NCHW f32 ----
    out_flat = pl.pallas_call(
        functools.partial(_bn_apply_kernel, cout=Cout, **kern_kw),
        out_shape=jax.ShapeDtypeStruct((N, Cout, OH * OW), jnp.float32),
        grid_spec=pltpu.PrefetchScalarGridSpec(
            num_scalar_prefetch=0,
            grid=(N, T),
            in_specs=[
                pl.BlockSpec((1, Hp, Wp, Cin), lambda n, t: (n, 0, 0, 0)),
                pl.BlockSpec((K, Coutp), lambda n, t: (0, 0)),
                pl.BlockSpec((1, Coutp), lambda n, t: (0, 0)),
                pl.BlockSpec((1, Coutp), lambda n, t: (0, 0)),
                pl.BlockSpec((1, Coutp), lambda n, t: (0, 0)),
            ],
            out_specs=pl.BlockSpec((1, Cout, rows), lambda n, t: (n, 0, t))),
        compiler_params=pltpu.CompilerParams(
            dimension_semantics=("parallel", "parallel"),
            vmem_limit_bytes=_VMEM_LIMIT),
    )(xp, wt, b2, scale, shift)

    # Free metadata reshape (row-major compatible): (N, Cout, OH*OW) -> NCHW.
    return out_flat.reshape(N, Cout, OH, OW)


def reference(x, w, b, gamma, beta, *, stride, padding):
    """Pure-JAX reference matching PyTorch ConvBlock forward (training mode)."""
    y = lax.conv_general_dilated(
        x, w, (stride, stride),
        [(padding, padding), (padding, padding)],
        dimension_numbers=("NCHW", "OIHW", "NCHW"))
    y = y + b.reshape(1, -1, 1, 1)
    y = jnp.where(y >= 0, y, NEG_SLOPE * y)
    mean = y.mean(axis=(0, 2, 3), keepdims=True)
    var = y.var(axis=(0, 2, 3), keepdims=True)   # biased, as BN uses for normalization
    yn = (y - mean) * lax.rsqrt(var + BN_EPS)
    return yn * gamma.reshape(1, -1, 1, 1) + beta.reshape(1, -1, 1, 1)


if __name__ == "__main__":
    # ConvBlock(in_channels=4, out_channels=8, kernel_size=3, stride=1, padding=1)
    N, Cin, H, W = 2, 4, 16, 16
    Cout, KH, KW = 8, 3, 3
    stride, padding = 1, 1

    key = jax.random.PRNGKey(0)
    k_x, k_w, k_b = jax.random.split(key, 3)
    x = jax.random.normal(k_x, (N, Cin, H, W), jnp.float32)
    w = jax.random.normal(k_w, (Cout, Cin, KH, KW), jnp.float32) * 0.2
    b = jax.random.normal(k_b, (Cout,), jnp.float32) * 0.1
    gamma = jnp.ones((Cout,), jnp.float32)   # BatchNorm2d default init
    beta = jnp.zeros((Cout,), jnp.float32)
    # TODO(synk): BatchNorm running_mean/running_var update is a training-time
    # buffer side effect and is not modeled; forward uses batch statistics.

    fn = jax.jit(functools.partial(conv_block, stride=stride, padding=padding))
    out = jax.block_until_ready(fn(x, w, b, gamma, beta))

    ref = reference(x, w, b, gamma, beta, stride=stride, padding=padding)
    assert out.shape == ref.shape == (N, Cout, H, W)
    err = jnp.max(jnp.abs(out - ref))
    # bf16 matmul operands vs f32 reference conv -> slightly wider tolerance.
    assert jnp.allclose(out, ref, atol=3e-2, rtol=3e-2), f"max abs err {err}"

    print("KERNEL_OK")
</pallas_src>

<mosaic_0001>
module attributes {stable_mosaic.version = 11 : i64} {
  func.func @_stats_kernel(%arg0: i32, %arg1: i32, %arg2: memref<1x18x18x4xbf16, #tpu.memory_space<vmem>>, %arg3: memref<36x128xbf16, #tpu.memory_space<vmem>>, %arg4: memref<1x128xf32, #tpu.memory_space<vmem>>, %arg5: memref<1x1x2x128xf32, #tpu.memory_space<vmem>>) attributes {dimension_semantics = [#tpu.dimension_semantics<parallel>, #tpu.dimension_semantics<parallel>], iteration_bounds = array<i64: 2, 1>, scalar_prefetch = 0 : i64, scratch_operands = 0 : i64, tpu.core_type = #tpu.core_type<tc>, window_params = [{transform_indices = @transform_0, window_bounds = array<i64: 1, 18, 18, 4>}, {pipeline_mode = #tpu.pipeline_mode<synchronous>, transform_indices = @transform_1, window_bounds = array<i64: 36, 128>}, {pipeline_mode = #tpu.pipeline_mode<synchronous>, transform_indices = @transform_2, window_bounds = array<i64: 1, 128>}, {transform_indices = @transform_3, window_bounds = array<i64: 1, 1, 2, 128>}]} {
    %c16_i32 = arith.constant 16 : i32
    %0 = arith.muli %arg1, %c16_i32 : i32
    %c1_i32 = arith.constant 1 : i32
    %1 = arith.muli %0, %c1_i32 : i32
    %2 = tpu.assume_multiple %1, 8 : i32
    %c0 = arith.constant 0 : index
    %3 = arith.index_cast %2 : i32 to index
    %c0_0 = arith.constant 0 : index
    %c0_1 = arith.constant 0 : index
    %4 = vector.load %arg2[%c0, %3, %c0_0, %c0_1] : memref<1x18x18x4xbf16, #tpu.memory_space<vmem>>, vector<1x18x18x4xbf16>
    %5 = vector.shape_cast %4 : vector<1x18x18x4xbf16> to vector<18x18x4xbf16>
    %6 = vector.extract_strided_slice %5 {offsets = [0, 0, 0], sizes = [16, 16, 4], strides = [1, 1, 1]} : vector<18x18x4xbf16> to vector<16x16x4xbf16>
    %7 = vector.extract_strided_slice %5 {offsets = [0, 1, 0], sizes = [16, 16, 4], strides = [1, 1, 1]} : vector<18x18x4xbf16> to vector<16x16x4xbf16>
    %8 = vector.extract_strided_slice %5 {offsets = [0, 2, 0], sizes = [16, 16, 4], strides = [1, 1, 1]} : vector<18x18x4xbf16> to vector<16x16x4xbf16>
    %9 = vector.extract_strided_slice %5 {offsets = [1, 0, 0], sizes = [16, 16, 4], strides = [1, 1, 1]} : vector<18x18x4xbf16> to vector<16x16x4xbf16>
    %10 = vector.extract_strided_slice %5 {offsets = [1, 1, 0], sizes = [16, 16, 4], strides = [1, 1, 1]} : vector<18x18x4xbf16> to vector<16x16x4xbf16>
    %11 = vector.extract_strided_slice %5 {offsets = [1, 2, 0], sizes = [16, 16, 4], strides = [1, 1, 1]} : vector<18x18x4xbf16> to vector<16x16x4xbf16>
    %12 = vector.extract_strided_slice %5 {offsets = [2, 0, 0], sizes = [16, 16, 4], strides = [1, 1, 1]} : vector<18x18x4xbf16> to vector<16x16x4xbf16>
    %13 = vector.extract_strided_slice %5 {offsets = [2, 1, 0], sizes = [16, 16, 4], strides = [1, 1, 1]} : vector<18x18x4xbf16> to vector<16x16x4xbf16>
    %14 = vector.extract_strided_slice %5 {offsets = [2, 2, 0], sizes = [16, 16, 4], strides = [1, 1, 1]} : vector<18x18x4xbf16> to vector<16x16x4xbf16>
    %15 = tpu.concatenate %6, %7, %8, %9, %10, %11, %12, %13, %14 in 2 : vector<16x16x4xbf16>, vector<16x16x4xbf16>, vector<16x16x4xbf16>, vector<16x16x4xbf16>, vector<16x16x4xbf16>, vector<16x16x4xbf16>, vector<16x16x4xbf16>, vector<16x16x4xbf16>, vector<16x16x4xbf16> -> vector<16x16x36xbf16>
    %16 = vector.shape_cast %15 : vector<16x16x36xbf16> to vector<256x36xbf16>
    %c0_2 = arith.constant 0 : index
    %c0_3 = arith.constant 0 : index
    %17 = vector.load %arg3[%c0_2, %c0_3] : memref<36x128xbf16, #tpu.memory_space<vmem>>, vector<36x128xbf16>
    %cst = arith.constant dense<0.000000e+00> : vector<256x128xf32>
    %18 = tpu.matmul %16, %17, %cst {dimension_numbers = #tpu.dot_dimension_numbers<[1], [0], [0], [1], [0, 0, 1, 1], [], []>} : vector<256x36xbf16>, vector<36x128xbf16>, vector<256x128xf32> -> vector<256x128xf32>
    %c0_4 = arith.constant 0 : index
    %c0_5 = arith.constant 0 : index
    %19 = vector.load %arg4[%c0_4, %c0_5] : memref<1x128xf32, #tpu.memory_space<vmem>>, vector<1x128xf32>
    %20 = vector.broadcast %19 : vector<1x128xf32> to vector<256x128xf32>
    %21 = arith.addf %18, %20 : vector<256x128xf32>
    %cst_6 = arith.constant 0.000000e+00 : f32
    %22 = vector.broadcast %cst_6 : f32 to vector<256x128xf32>
    %23 = arith.cmpf oge, %21, %22 : vector<256x128xf32>
    %cst_7 = arith.constant 0.00999999977 : f32
    %24 = vector.broadcast %cst_7 : f32 to vector<256x128xf32>
    %25 = arith.mulf %24, %21 : vector<256x128xf32>
    %26 = arith.select %23, %21, %25 : vector<256x128xi1>, vector<256x128xf32>
    %cst_8 = arith.constant dense<0.000000e+00> : vector<128xf32>
    %27 = vector.multi_reduction <add>, %26, %cst_8 [0] : vector<256x128xf32> to vector<128xf32>
    %28 = vector.shape_cast %27 : vector<128xf32> to vector<1x128xf32>
    %cst_9 = arith.constant 3.906250e-03 : f32
    %29 = vector.broadcast %cst_9 : f32 to vector<1x128xf32>
    %30 = arith.mulf %28, %29 : vector<1x128xf32>
    %31 = vector.broadcast %30 : vector<1x128xf32> to vector<256x128xf32>
    %32 = arith.subf %26, %31 : vector<256x128xf32>
    %33 = arith.mulf %32, %32 : vector<256x128xf32>
    %cst_10 = arith.constant dense<0.000000e+00> : vector<128xf32>
    %34 = vector.multi_reduction <add>, %33, %cst_10 [0] : vector<256x128xf32> to vector<128xf32>
    %35 = vector.shape_cast %34 : vector<128xf32> to vector<1x128xf32>
    %36 = tpu.concatenate %28, %35 in 0 : vector<1x128xf32>, vector<1x128xf32> -> vector<2x128xf32>
    %c0_11 = arith.constant 0 : index
    %c0_12 = arith.constant 0 : index
    %c0_13 = arith.constant 0 : index
    %c0_14 = arith.constant 0 : index
    %37 = vector.load %arg5[%c0_11, %c0_12, %c0_13, %c0_14] : memref<1x1x2x128xf32, #tpu.memory_space<vmem>>, vector<1x1x2x128xf32>
    %38 = vector.shape_cast %37 : vector<1x1x2x128xf32> to vector<2x128xf32>
    %39 = vector.shape_cast %36 : vector<2x128xf32> to vector<1x1x2x128xf32>
    tpu.vector_store %arg5[%c0_11, %c0_12, %c0_13, %c0_14], %39 {strides = array<i32>} : memref<1x1x2x128xf32, #tpu.memory_space<vmem>>, vector<1x1x2x128xf32>,
    return
  }
  func.func @transform_0(%arg0: i32, %arg1: i32) -> (i32, i32, i32, i32) {
    %c0_i32 = arith.constant 0 : i32
    %c0_i32_0 = arith.constant 0 : i32
    %c0_i32_1 = arith.constant 0 : i32
    %c0_i32_2 = arith.constant 0 : i32
    return %arg0, %c0_i32, %c0_i32_0, %c0_i32_1 : i32, i32, i32, i32
  }
  func.func @transform_1(%arg0: i32, %arg1: i32) -> (i32, i32) {
    %c0_i32 = arith.constant 0 : i32
    %c0_i32_0 = arith.constant 0 : i32
    %c0_i32_1 = arith.constant 0 : i32
    return %c0_i32, %c0_i32_0 : i32, i32
  }
  func.func @transform_2(%arg0: i32, %arg1: i32) -> (i32, i32) {
    %c0_i32 = arith.constant 0 : i32
    %c0_i32_0 = arith.constant 0 : i32
    %c0_i32_1 = arith.constant 0 : i32
    return %c0_i32, %c0_i32_0 : i32, i32
  }
  func.func @transform_3(%arg0: i32, %arg1: i32) -> (i32, i32, i32, i32) {
    %c0_i32 = arith.constant 0 : i32
    %c0_i32_0 = arith.constant 0 : i32
    %c0_i32_1 = arith.constant 0 : i32
    return %arg0, %arg1, %c0_i32, %c0_i32_0 : i32, i32, i32, i32
  }
}

module attributes {stable_mosaic.version = 11 : i64} {
  func.func @_bn_apply_kernel(%arg0: i32, %arg1: i32, %arg2: memref<1x18x18x4xbf16, #tpu.memory_space<vmem>>, %arg3: memref<36x128xbf16, #tpu.memory_space<vmem>>, %arg4: memref<1x128xf32, #tpu.memory_space<vmem>>, %arg5: memref<1x128xf32, #tpu.memory_space<vmem>>, %arg6: memref<1x128xf32, #tpu.memory_space<vmem>>, %arg7: memref<1x8x256xf32, #tpu.memory_space<vmem>>) attributes {dimension_semantics = [#tpu.dimension_semantics<parallel>, #tpu.dimension_semantics<parallel>], iteration_bounds = array<i64: 2, 1>, scalar_prefetch = 0 : i64, scratch_operands = 0 : i64, tpu.core_type = #tpu.core_type<tc>, window_params = [{transform_indices = @transform_0, window_bounds = array<i64: 1, 18, 18, 4>}, {pipeline_mode = #tpu.pipeline_mode<synchronous>, transform_indices = @transform_1, window_bounds = array<i64: 36, 128>}, {pipeline_mode = #tpu.pipeline_mode<synchronous>, transform_indices = @transform_2, window_bounds = array<i64: 1, 128>}, {pipeline_mode = #tpu.pipeline_mode<synchronous>, transform_indices = @transform_3, window_bounds = array<i64: 1, 128>}, {pipeline_mode = #tpu.pipeline_mode<synchronous>, transform_indices = @transform_4, window_bounds = array<i64: 1, 128>}, {transform_indices = @transform_5, window_bounds = array<i64: 1, 8, 256>}]} {
    %c16_i32 = arith.constant 16 : i32
    %0 = arith.muli %arg1, %c16_i32 : i32
    %c1_i32 = arith.constant 1 : i32
    %1 = arith.muli %0, %c1_i32 : i32
    %2 = tpu.assume_multiple %1, 8 : i32
    %c0 = arith.constant 0 : index
    %3 = arith.index_cast %2 : i32 to index
    %c0_0 = arith.constant 0 : index
    %c0_1 = arith.constant 0 : index
    %4 = vector.load %arg2[%c0, %3, %c0_0, %c0_1] : memref<1x18x18x4xbf16, #tpu.memory_space<vmem>>, vector<1x18x18x4xbf16>
    %5 = vector.shape_cast %4 : vector<1x18x18x4xbf16> to vector<18x18x4xbf16>
    %6 = vector.extract_strided_slice %5 {offsets = [0, 0, 0], sizes = [16, 16, 4], strides = [1, 1, 1]} : vector<18x18x4xbf16> to vector<16x16x4xbf16>
    %7 = vector.extract_strided_slice %5 {offsets = [0, 1, 0], sizes = [16, 16, 4], strides = [1, 1, 1]} : vector<18x18x4xbf16> to vector<16x16x4xbf16>
    %8 = vector.extract_strided_slice %5 {offsets = [0, 2, 0], sizes = [16, 16, 4], strides = [1, 1, 1]} : vector<18x18x4xbf16> to vector<16x16x4xbf16>
    %9 = vector.extract_strided_slice %5 {offsets = [1, 0, 0], sizes = [16, 16, 4], strides = [1, 1, 1]} : vector<18x18x4xbf16> to vector<16x16x4xbf16>
    %10 = vector.extract_strided_slice %5 {offsets = [1, 1, 0], sizes = [16, 16, 4], strides = [1, 1, 1]} : vector<18x18x4xbf16> to vector<16x16x4xbf16>
    %11 = vector.extract_strided_slice %5 {offsets = [1, 2, 0], sizes = [16, 16, 4], strides = [1, 1, 1]} : vector<18x18x4xbf16> to vector<16x16x4xbf16>
    %12 = vector.extract_strided_slice %5 {offsets = [2, 0, 0], sizes = [16, 16, 4], strides = [1, 1, 1]} : vector<18x18x4xbf16> to vector<16x16x4xbf16>
    %13 = vector.extract_strided_slice %5 {offsets = [2, 1, 0], sizes = [16, 16, 4], strides = [1, 1, 1]} : vector<18x18x4xbf16> to vector<16x16x4xbf16>
    %14 = vector.extract_strided_slice %5 {offsets = [2, 2, 0], sizes = [16, 16, 4], strides = [1, 1, 1]} : vector<18x18x4xbf16> to vector<16x16x4xbf16>
    %15 = tpu.concatenate %6, %7, %8, %9, %10, %11, %12, %13, %14 in 2 : vector<16x16x4xbf16>, vector<16x16x4xbf16>, vector<16x16x4xbf16>, vector<16x16x4xbf16>, vector<16x16x4xbf16>, vector<16x16x4xbf16>, vector<16x16x4xbf16>, vector<16x16x4xbf16>, vector<16x16x4xbf16> -> vector<16x16x36xbf16>
    %16 = vector.shape_cast %15 : vector<16x16x36xbf16> to vector<256x36xbf16>
    %c0_2 = arith.constant 0 : index
    %c0_3 = arith.constant 0 : index
    %17 = vector.load %arg3[%c0_2, %c0_3] : memref<36x128xbf16, #tpu.memory_space<vmem>>, vector<36x128xbf16>
    %cst = arith.constant dense<0.000000e+00> : vector<256x128xf32>
    %18 = tpu.matmul %16, %17, %cst {dimension_numbers = #tpu.dot_dimension_numbers<[1], [0], [0], [1], [0, 0, 1, 1], [], []>} : vector<256x36xbf16>, vector<36x128xbf16>, vector<256x128xf32> -> vector<256x128xf32>
    %c0_4 = arith.constant 0 : index
    %c0_5 = arith.constant 0 : index
    %19 = vector.load %arg4[%c0_4, %c0_5] : memref<1x128xf32, #tpu.memory_space<vmem>>, vector<1x128xf32>
    %20 = vector.broadcast %19 : vector<1x128xf32> to vector<256x128xf32>
    %21 = arith.addf %18, %20 : vector<256x128xf32>
    %cst_6 = arith.constant 0.000000e+00 : f32
    %22 = vector.broadcast %cst_6 : f32 to vector<256x128xf32>
    %23 = arith.cmpf oge, %21, %22 : vector<256x128xf32>
    %cst_7 = arith.constant 0.00999999977 : f32
    %24 = vector.broadcast %cst_7 : f32 to vector<256x128xf32>
    %25 = arith.mulf %24, %21 : vector<256x128xf32>
    %26 = arith.select %23, %21, %25 : vector<256x128xi1>, vector<256x128xf32>
    %c0_8 = arith.constant 0 : index
    %c0_9 = arith.constant 0 : index
    %27 = vector.load %arg5[%c0_8, %c0_9] : memref<1x128xf32, #tpu.memory_space<vmem>>, vector<1x128xf32>
    %28 = vector.broadcast %27 : vector<1x128xf32> to vector<256x128xf32>
    %29 = arith.mulf %26, %28 : vector<256x128xf32>
    %c0_10 = arith.constant 0 : index
    %c0_11 = arith.constant 0 : index
    %30 = vector.load %arg6[%c0_10, %c0_11] : memref<1x128xf32, #tpu.memory_space<vmem>>, vector<1x128xf32>
    %31 = vector.broadcast %30 : vector<1x128xf32> to vector<256x128xf32>
    %32 = arith.addf %29, %31 : vector<256x128xf32>
    %33 = tpu.transpose %32, [1, 0] : vector<256x128xf32> -> vector<128x256xf32>
    %34 = vector.extract_strided_slice %33 {offsets = [0, 0], sizes = [8, 256], strides = [1, 1]} : vector<128x256xf32> to vector<8x256xf32>
    %c0_12 = arith.constant 0 : index
    %c0_13 = arith.constant 0 : index
    %c0_14 = arith.constant 0 : index
    %35 = vector.load %arg7[%c0_12, %c0_13, %c0_14] : memref<1x8x256xf32, #tpu.memory_space<vmem>>, vector<1x8x256xf32>
    %36 = vector.shape_cast %35 : vector<1x8x256xf32> to vector<8x256xf32>
    %37 = vector.shape_cast %34 : vector<8x256xf32> to vector<1x8x256xf32>
    tpu.vector_store %arg7[%c0_12, %c0_13, %c0_14], %37 {strides = array<i32>} : memref<1x8x256xf32, #tpu.memory_space<vmem>>, vector<1x8x256xf32>,
    return
  }
  func.func @transform_0(%arg0: i32, %arg1: i32) -> (i32, i32, i32, i32) {
    %c0_i32 = arith.constant 0 : i32
    %c0_i32_0 = arith.constant 0 : i32
    %c0_i32_1 = arith.constant 0 : i32
    %c0_i32_2 = arith.constant 0 : i32
    return %arg0, %c0_i32, %c0_i32_0, %c0_i32_1 : i32, i32, i32, i32
  }
  func.func @transform_1(%arg0: i32, %arg1: i32) -> (i32, i32) {
    %c0_i32 = arith.constant 0 : i32
    %c0_i32_0 = arith.constant 0 : i32
    %c0_i32_1 = arith.constant 0 : i32
    return %c0_i32, %c0_i32_0 : i32, i32
  }
  func.func @transform_2(%arg0: i32, %arg1: i32) -> (i32, i32) {
    %c0_i32 = arith.constant 0 : i32
    %c0_i32_0 = arith.constant 0 : i32
    %c0_i32_1 = arith.constant 0 : i32
    return %c0_i32, %c0_i32_0 : i32, i32
  }
  func.func @transform_3(%arg0: i32, %arg1: i32) -> (i32, i32) {
    %c0_i32 = arith.constant 0 : i32
    %c0_i32_0 = arith.constant 0 : i32
    %c0_i32_1 = arith.constant 0 : i32
    return %c0_i32, %c0_i32_0 : i32, i32
  }
  func.func @transform_4(%arg0: i32, %arg1: i32) -> (i32, i32) {
    %c0_i32 = arith.constant 0 : i32
    %c0_i32_0 = arith.constant 0 : i32
    %c0_i32_1 = arith.constant 0 : i32
    return %c0_i32, %c0_i32_0 : i32, i32
  }
  func.func @transform_5(%arg0: i32, %arg1: i32) -> (i32, i32, i32) {
    %c0_i32 = arith.constant 0 : i32
    %c0_i32_0 = arith.constant 0 : i32
    return %arg0, %c0_i32, %arg1 : i32, i32, i32
  }
}

</mosaic_0001>

<bundles_post_ra>
// kernel: conv_block.3
= control target key start
LH: loop header
LB: loop body
LE: loop exit
PB: predicated region body
PF: predicated region fallthrough
CT: control target
= control target key end

     0   :  { %s2060_s18 = smov 0   ;;  %s2062_s19 = smov 0   ;;  %s2875_s0 = inlined_call_operand.vmem [shape: bf16[2,18,18,4], index: 0, kind: input, shape index: {}]   ;;  %s2876_s1 = inlined_call_operand.vmem [shape: bf16[36,128], index: 1, kind: input, shape index: {}]   ;;  %s2877_s2 = inlined_call_operand.vmem [shape: f32[1,128], index: 2, kind: input, shape index: {}]   ;;  %s2878_s3 = inlined_call_operand.vmem [shape: f32[1,128], index: 3, kind: input, shape index: {}]   ;;  %s2879_s4 = inlined_call_operand.vmem [shape: f32[1,128], index: 4, kind: input, shape index: {}]   ;;  %s2880_s5 = inlined_call_operand.vmem [shape: f32[2,8,256], index: 5, kind: output, shape index: {}]  }
   0x1   :  { %s2064_s20 = smov 0  }
   0x2 LB: > { %s27_s21 = sadd.s32 1, %s2016_s19  ;;  %p1795_p0 = scmp.ge.s32.totalorder %s2020_s20, 1  ;;  %s2020_s20 = sphi %s2064_s20, %s15_s20   ;;  %s2016_s19 = sphi %s2062_s19, %s2882_s19   ;;  %s2012_s18 = sphi %s2060_s18, %s2881_s18  }
   0x3   : > { %p29_p1 = scmp.ge.s32.totalorder %s27_s21, 2  ;;  %p201_p2 = scmp.lt.s32.totalorder %s2020_s20, 3 }
   0x5   : > { %s2884_s21 = smov (%p29_p1, %s27_s21), 0  ;;  %p202_p3 = pnand %p1795_p0, %p201_p2 }
   0x6   : > { %p233_p4 = scmp.lt.s32.totalorder (!%p202_p3), %s2012_s18, 1  ;;  %vm660_vm0 = vcmask (!%p202_p3), 1046528   ;;  %s2022_s26 = smov (!%p202_p3), 12   ;;  %vm435_vm1 = vsmask.f32 (!%p202_p3), 7424  ;;  %vm1303_vm2 = vcmask (!%p202_p3), 1041408  }
   0x7   : > { %205 = sbr.rel (%p202_p3) target bundleno = 692 (0x2b4), region = 40  ;;  %s2023_s27 = smov (!%p202_p3), 8   ;;  %vm979_vm3 = vcmask (!%p202_p3), 31744   ;;  %vm1012_vm4 = vcmask (!%p202_p3), 64512   ;;  %vm1078_vm5 = vcmask (!%p202_p3), 130048   ;;  %vm1045_vm6 = vcmask (!%p202_p3), 97280  }
   0x8   : > { %s2024_s28 = smov (!%p202_p3), 4   ;;  %s2025_s29 = smov (!%p202_p3), 16   ;;  %vm1111_vm7 = vcmask (!%p202_p3), 162816   ;;  %vm1144_vm8 = vcmask (!%p202_p3), 195584   ;;  %vm1177_vm9 = vcmask (!%p202_p3), 228352   ;;  %vm1210_vm10 = vcmask (!%p202_p3), 261120  }
   0x9   : > { %s2026_s30 = smov (!%p202_p3), 20   ;;  %s2027_s6 = smov (!%p202_p3), 24   ;;  %vm1270_vm11 = vcmask (!%p202_p3), 293888  }
   0xa   : > { %s2028_s11 = smov (!%p202_p3), 28   ;;  %s2029_s14 = smov (!%p202_p3), 32  }
   0xe   : > { %s2886_s18 = smov (!%p233_p4, %s2012_s18), 1 }
   0xf   : > { %s1925_s22 = smul.u32 216, %s2886_s18 }
  0x11   : > { %s2084_s25 = scalar_lea.vmem %s2875_s0, %s1925_s22 }
  0x12   : > { %v2087_v0 = vld [vmem:[%s2084_s25 + $0x6c] sm:$0xff]   ;;  %v2097_v2 = vld [vmem:[%s2084_s25 + $0x60] sm:$0xff]   ;;  %v1961_v3 = vld [vmem:[%s2084_s25 + $0x68] ss:$0 sps:$4 sm:$0x11]  }
  0x13   : > { %v2090_v1 = vld [vmem:[%s2084_s25 + $0xc] sm:$0xff]   ;;  %762 = vrot.lane.b32.xlu1 %v2087_v0, %s2022_s26  ;;  %v2101_v4 = vld [vmem:[%s2084_s25] sm:$0xff]   ;;  %v688_v5 = vrot.slane %v2087_v0, 1  ;;  %v685_v6 = vrot.slane %v2097_v2, 1  ;;  %v686_v7 = vrot.slane %v1961_v3, 1  ;;  %v545_v26 = vshrl.u32 %v2087_v0, 16 }
  0x14   : > { %746 = vrot.lane.b32.xlu0 %v2090_v1, %s2022_s26  ;;  %v1963_v8 = vld [vmem:[%s2084_s25 + $0x8] ss:$0 sps:$4 sm:$0x11]   ;;  %v664_v9 = vrot.slane %v2090_v1, 1  ;;  %v661_v10 = vrot.slane %v2101_v4, 1  ;;  %v449_v16 = vshrl.u32 %v2090_v1, 16 }
  0x15   : > { %v1964_v11 = vld [vmem:[%s2084_s25 + $0x74] ss:$0 sps:$4 sm:$0x11]   ;;  %v2110_v12 = vsel %vm660_vm0, %v685_v6, %v686_v7  ;;  %v662_v13 = vrot.slane %v1963_v8, 1  ;;  %v451_v17 = vshll.u32 %v2090_v1, 16  ;;  %v437_v18 = vshrl.u32 %v2101_v4, 16 }
  0x16   : > { %v1965_v14 = vld [vmem:[%s2084_s25 + $0x14] ss:$0 sps:$4 sm:$0x11]   ;;  %v689_v15 = vrot.slane %v1964_v11, 1  ;;  %v439_v22 = vshll.u32 %v2101_v4, 16  ;;  %v444_v25 = vshll.u32 %v1963_v8, 16 }
  0x17   : > { %725 = vrot.lane.b32.xlu1 %v2110_v12, %s2023_s27  ;;  %v663_v19 = vsel %vm660_vm0, %v661_v10, %v662_v13  ;;  %v665_v20 = vrot.slane %v1965_v14, 1  ;;  %v456_v21 = vshll.u32 %v1965_v14, 16  ;;  %v453_v24 = vrot.slane %v451_v17, 1  ;;  %v2132_v39 = vld [vmem:[%s2084_s25 + $0x78] sm:$0xff]   ;;  %v2180_v10 = vld [vmem:[%s2084_s25 + $0x84] sm:$0xff]  }
  0x18   : > { %709 = vrot.lane.b32.xlu0 %v663_v19, %s2023_s27  ;;  %v2122_v23 = vsel %vm660_vm0, %v688_v5, %v689_v15  ;;  %v441_v29 = vrot.slane %v439_v22, 1  ;;  %v547_v30 = vshll.u32 %v2087_v0, 16  ;;  %v446_v32 = vrot.slane %v444_v25, 1  ;;  %v2138_v46 = vld [vmem:[%s2084_s25 + $0x18] sm:$0xff]   ;;  %v2190_v14 = vld [vmem:[%s2084_s25 + $0x24] sm:$0xff]  }
  0x19   : > { %v666_v27 = vsel %vm660_vm0, %v664_v9, %v665_v20  ;;  %v458_v28 = vrot.slane %v456_v21, 1  ;;  %v454_v31 = vor.u32 %v453_v24, %v449_v16  ;;  %v552_v33 = vshll.u32 %v1964_v11, 16  ;;  %v1968_v47 = vld [vmem:[%s2084_s25 + $0x80] ss:$0 sps:$4 sm:$0x11]  }
  0x1a   : > { %v533_v34 = vshrl.u32 %v2097_v2, 16  ;;  %v442_v35 = vor.u32 %v441_v29, %v437_v18  ;;  %v549_v36 = vrot.slane %v547_v30, 1  ;;  %v535_v37 = vshll.u32 %v2097_v2, 16  ;;  %v1969_v52 = vld [vmem:[%s2084_s25 + $0x20] ss:$0 sps:$4 sm:$0x11]  }
  0x1b   : > { %727 = vrot.lane.b32.xlu1 %v2122_v23, %s2023_s27  ;;  %v540_v38 = vshll.u32 %v1961_v3, 16  ;;  %v459_v40 = vsel %vm435_vm1, %v454_v31, %v458_v28  ;;  %v554_v41 = vrot.slane %v552_v33, 1  ;;  %v559_v50 = vshll.u32 %v2132_v39, 16  ;;  %v1972_v15 = vld [vmem:[%s2084_s25 + $0x8c] ss:$0 sps:$4 sm:$0x11]  }
  0x1c   : > { %711 = vrot.lane.b32.xlu0 %v666_v27, %s2023_s27  ;;  %v447_v42 = vsel %vm435_vm1, %v442_v35, %v446_v32  ;;  %v550_v43 = vor.u32 %v549_v36, %v545_v26  ;;  %v537_v44 = vrot.slane %v535_v37, 1  ;;  %v463_v53 = vshll.u32 %v2138_v46, 16  ;;  %v1973_v18 = vld [vmem:[%s2084_s25 + $0x2c] ss:$0 sps:$4 sm:$0x11]   ;;  %v1986_v22 = vld [vmem:[%s2876_s1] sm:$0xff]  }
  0x1d   : > { %v542_v45 = vrot.slane %v540_v38, 1  ;;  %v557_v54 = vshrl.u32 %v2132_v39, 16  ;;  %v561_v55 = vrot.slane %v559_v50, 1  ;;  %v564_v56 = vshll.u32 %v1968_v47, 16  ;;  %1879 = vmatprep.subr.bf16.mxu0 %v1986_v22  ;;  %1917 = vmatprep.subr.bf16.mxu1 %v1986_v22 }
  0x1e   : > { %v2143_v48 = vsel %vm435_vm1, %v550_v43, %v554_v41  ;;  %v538_v49 = vor.u32 %v537_v44, %v533_v34  ;;  %v461_v57 = vshrl.u32 %v2138_v46, 16  ;;  %v465_v58 = vrot.slane %v463_v53, 1  ;;  %1880 = vmatpush3.bf16.msra.mxu0 %v1986_v22  ;;  %1920 = vmatpush3.bf16.msra.mxu1 %v1986_v22  ;;  %v1990_v32 = vld [vmem:[%s2876_s1 + $0x10] ss:$0 sps:$4 sm:$0x33]  }
  0x1f   : > { %630 = vrot.lane.b32.xlu1 %v459_v40, %s2024_s28  ;;  %v468_v59 = vshll.u32 %v1969_v52, 16  ;;  %v562_v60 = vor.u32 %v561_v55, %v557_v54  ;;  %v566_v61 = vrot.slane %v564_v56, 1  ;;  %v691_v6 = vrot.slane %v2132_v39, 1  ;;  %v2246_v43 = vld [vmem:[%s2084_s25 + $0x90] sm:$0xff]  }
  0x20   : > { %628 = vrot.lane.b32.xlu0 %v447_v42, %s2024_s28  ;;  %v2148_v51 = vsel %vm435_vm1, %v538_v49, %v542_v45  ;;  %v466_v62 = vor.u32 %v465_v58, %v461_v57  ;;  %v692_v7 = vrot.slane %v1968_v47, 1  ;;  %v667_v8 = vrot.slane %v2138_v46, 1  ;;  %v2251_v44 = vld [vmem:[%s2084_s25 + $0x30] sm:$0xff]   ;;  %v1976_v45 = vld [vmem:[%s2084_s25 + $0x98] ss:$0 sps:$4 sm:$0x11]  }
  0x21   : > { %v470_v63 = vrot.slane %v468_v59, 1  ;;  %v2165_v3 = vsel %vm435_vm1, %v562_v60, %v566_v61  ;;  %v668_v9 = vrot.slane %v1969_v52, 1  ;;  %v571_v16 = vshll.u32 %v2180_v10, 16  ;;  %v1977_v49 = vld [vmem:[%s2084_s25 + $0x38] ss:$0 sps:$4 sm:$0x11]  }
  0x22   : > { %v2183_v11 = vsel %vm660_vm0, %v691_v6, %v692_v7  ;;  %v569_v17 = vshrl.u32 %v2180_v10, 16  ;;  %v576_v19 = vshll.u32 %v1972_v15, 16  ;;  %v475_v20 = vshll.u32 %v2190_v14, 16 }
  0x23   : > { %646 = vrot.lane.b32.xlu1 %v2143_v48, %s2024_s28  ;;  %v2169_v5 = vsel %vm435_vm1, %v466_v62, %v470_v63  ;;  %v2187_v13 = vsel %vm660_vm0, %v667_v8, %v668_v9  ;;  %v573_v21 = vrot.slane %v571_v16, 1  ;;  %v473_v24 = vshrl.u32 %v2190_v14, 16  ;;  %v2280_v9 = vld [vmem:[%s2084_s25 + $0x9c] sm:$0xff]  }
  0x24   : > { %644 = vrot.lane.b32.xlu0 %v2148_v51, %s2024_s28  ;;  %v477_v25 = vrot.slane %v475_v20, 1  ;;  %v480_v26 = vshll.u32 %v1973_v18, 16  ;;  %v578_v29 = vrot.slane %v576_v19, 1  ;;  %v1305_v34 = vsel %vm1303_vm2, %v1990_v32, 0 }
  0x25   : > { %v574_v28 = vor.u32 %v573_v21, %v569_v17  ;;  %v694_v36 = vrot.slane %v2180_v10, 1  ;;  %v695_v37 = vrot.slane %v1972_v15, 1  ;;  %v670_v38 = vrot.slane %v2190_v14, 1  ;;  %v1980_v15 = vld [vmem:[%s2084_s25 + $0xa4] ss:$0 sps:$4 sm:$0x11]  }
  0x26   : > { %v478_v30 = vor.u32 %v477_v25, %v473_v24  ;;  %v482_v31 = vrot.slane %v480_v26, 1  ;;  %v583_v47 = vshll.u32 %v2246_v43, 16  ;;  %v487_v50 = vshll.u32 %v2251_v44, 16  ;;  %v1981_v17 = vld [vmem:[%s2084_s25 + $0x44] ss:$0 sps:$4 sm:$0x11]  }
  0x27   : > { %764 = vrot.lane.b32.xlu1 %v2132_v39, %s2022_s26  ;;  %v579_v33 = vsel %vm435_vm1, %v574_v28, %v578_v29  ;;  %v696_v41 = vsel %vm660_vm0, %v694_v36, %v695_v37  ;;  %v581_v52 = vshrl.u32 %v2246_v43, 16  ;;  %v588_v54 = vshll.u32 %v1976_v45, 16 }
  0x28   : > { %748 = vrot.lane.b32.xlu0 %v2138_v46, %s2022_s26  ;;  %v483_v35 = vsel %vm435_vm1, %v478_v30, %v482_v31  ;;  %v585_v53 = vrot.slane %v583_v47, 1  ;;  %v485_v55 = vshrl.u32 %v2251_v44, 16  ;;  %v489_v56 = vrot.slane %v487_v50, 1 }
  0x29   : > { %v492_v57 = vshll.u32 %v1977_v49, 16  ;;  %v590_v59 = vrot.slane %v588_v54, 1  ;;  %v673_v6 = vrot.slane %v2251_v44, 1  ;;  %v674_v7 = vrot.slane %v1977_v49, 1 }
  0x2a   : > { %v586_v58 = vor.u32 %v585_v53, %v581_v52  ;;  %v490_v60 = vor.u32 %v489_v56, %v485_v55  ;;  %v595_v16 = vshll.u32 %v2280_v9, 16  ;;  %v593_v19 = vshrl.u32 %v2280_v9, 16  ;;  %v2346_v56 = vld [vmem:[%s2084_s25 + $0xa8] sm:$0xff]  }
  0x2b   : > { %809 = vrot.lane.b32.xlu1 %v2143_v48, %s2025_s29  ;;  %v494_v61 = vrot.slane %v492_v57, 1  ;;  %v600_v21 = vshll.u32 %v1980_v15, 16  ;;  %v504_v25 = vshll.u32 %v1981_v17, 16  ;;  %v700_v36 = vrot.slane %v2280_v9, 1 }
  0x2c   : > { %793 = vrot.lane.b32.xlu0 %v459_v40, %s2025_s29  ;;  %v671_v40 = vrot.slane %v1973_v18, 1  ;;  %v591_v62 = vsel %vm435_vm1, %v586_v58, %v590_v59  ;;  %v597_v20 = vrot.slane %v595_v16, 1  ;;  %v701_v37 = vrot.slane %v1980_v15, 1  ;;  %v2352_v58 = vld [vmem:[%s2084_s25 + $0x48] sm:$0xff]  }
  0x2d   : > { %v495_v63 = vsel %vm435_vm1, %v490_v60, %v494_v61  ;;  %v506_v29 = vrot.slane %v504_v25, 1  ;;  %v1984_v60 = vld [vmem:[%s2084_s25 + $0xb0] ss:$0 sps:$4 sm:$0x11]   ;;  %v607_v61 = vshll.u32 %v2346_v56, 16  ;;  %v509_v15 = vshrl.u32 %v2352_v58, 16 }
  0x2e   : > { %v672_v42 = vsel %vm660_vm0, %v670_v38, %v671_v40  ;;  %v598_v26 = vor.u32 %v597_v20, %v593_v19 }
  0x2f   : > { %811 = vrot.lane.b32.xlu1 %v2165_v3, %s2025_s29 }
  0x30   : > { %795 = vrot.lane.b32.xlu0 %v2169_v5, %s2025_s29 }
  0x33   : > { %844 = vrot.lane.b32.xlu1 %v2122_v23, %s2026_s30 }
  0x34   : > { %828 = vrot.lane.b32.xlu0 %v666_v27, %s2026_s30  ;;  %v1987_v27 = vld [vmem:[%s2876_s1 + $0x8] sm:$0xff]  }
  0x35   : > { %1881 = vmatprep.subr.bf16.mxu0 %v1987_v27  ;;  %1918 = vmatprep.subr.bf16.mxu1 %v1987_v27 }
  0x36   : > { %1882 = vmatpush3.bf16.msra.mxu0 %v1987_v27  ;;  %1921 = vmatpush3.bf16.msra.mxu1 %v1987_v27  ;;  %v602_v27 = vrot.slane %v600_v21, 1 }
  0x37   : > { %846 = vrot.lane.b32.xlu1 %v2183_v11, %s2026_s30  ;;  %1923 = vmatprep.subr.msk.bf16.mxu0 %vm1303_vm2, %v1990_v32 }
  0x38   : > { %830 = vrot.lane.b32.xlu0 %v2187_v13, %s2026_s30  ;;  %1924 = vmatprep.subr.msk.bf16.mxu1 %vm1303_vm2, %v1990_v32  ;;  %v603_v31 = vsel %vm435_vm1, %v598_v26, %v602_v27 }
  0x3a   : > { %1884 = vmatpush3.bf16.msra.mxu0 %v1305_v34  ;;  %1922 = vmatpush3.bf16.msra.mxu1 %v1305_v34 }
  0x3b   : > { %881 = vrot.lane.b32.xlu1 %v2132_v39, %s2027_s6 }
  0x3c   : > { %865 = vrot.lane.b32.xlu0 %v2138_v46, %s2027_s6 }
  0x3f   : > { %883 = vrot.lane.b32.xlu1 %v2180_v10, %s2027_s6 }
  0x40   : > { %867 = vrot.lane.b32.xlu0 %v2190_v14, %s2027_s6 }
  0x43   : > { %928 = vrot.lane.b32.xlu1 %v2165_v3, %s2028_s11 }
  0x44   : > { %912 = vrot.lane.b32.xlu0 %v2169_v5, %s2028_s11 }
  0x47   : > { %930 = vrot.lane.b32.xlu1 %v579_v33, %s2028_s11 }
  0x48   : > { %914 = vrot.lane.b32.xlu0 %v483_v35, %s2028_s11 }
  0x4b   : > { %963 = vrot.lane.b32.xlu1 %v2183_v11, %s2029_s14 }
  0x4c   : > { %947 = vrot.lane.b32.xlu0 %v2187_v13, %s2029_s14 }
  0x4f   : > { %648 = vrot.lane.b32.xlu1 %v2165_v3, %s2024_s28  ;;  %v697_v3 = vrot.slane %v2246_v43, 1 }
  0x50   : > { %632 = vrot.lane.b32.xlu0 %v2169_v5, %s2024_s28  ;;  %v698_v5 = vrot.slane %v1976_v45, 1  ;;  %v702_v45 = vsel %vm660_vm0, %v700_v36, %v701_v37  ;;  %v703_v36 = vrot.slane %v2346_v56, 1  ;;  %v704_v37 = vrot.slane %v1984_v60, 1 }
  0x52   : > { %v699_v8 = vsel %vm660_vm0, %v697_v3, %v698_v5  ;;  %v511_v3 = vshll.u32 %v2352_v58, 16 }
  0x53   : > { %965 = vrot.lane.b32.xlu1 %v696_v41, %s2029_s14 }
  0x54   : > { %949 = vrot.lane.b32.xlu0 %v672_v42, %s2029_s14  ;;  %v513_v16 = vrot.slane %v511_v3, 1  ;;  %v2408_v3 = vld [vmem:[%s2084_s25 + $0xb4] sm:$0xff]  }
  0x57   : > { %650 = vrot.lane.b32.xlu1 %v579_v33, %s2024_s28 }
  0x58   : > { %634 = vrot.lane.b32.xlu0 %v483_v35, %s2024_s28 }
  0x5b   : > { %729 = vrot.lane.b32.xlu1 %v2183_v11, %s2023_s27  ;;  %v675_v11 = vsel %vm660_vm0, %v673_v6, %v674_v7  ;;  %v605_v6 = vshrl.u32 %v2346_v56, 16  ;;  %v609_v7 = vrot.slane %v607_v61, 1 }
  0x5c   : > { %713 = vrot.lane.b32.xlu0 %v2187_v13, %s2023_s27  ;;  %v2285_v13 = vld [vmem:[%s2084_s25 + $0x3c] sm:$0xff]  }
  0x5d   : > { %v499_v18 = vshll.u32 %v2285_v13, 16  ;;  %v497_v22 = vshrl.u32 %v2285_v13, 16  ;;  %v676_v40 = vrot.slane %v2285_v13, 1  ;;  %v610_v19 = vor.u32 %v609_v7, %v605_v6 }
  0x5f   : > { %731 = vrot.lane.b32.xlu1 %v696_v41, %s2023_s27  ;;  %v501_v24 = vrot.slane %v499_v18, 1 }
  0x60   : > { %715 = vrot.lane.b32.xlu0 %v672_v42, %s2023_s27 }
  0x61   : > { %v502_v28 = vor.u32 %v501_v24, %v497_v22  ;;  %v514_v22 = vor.u32 %v513_v16, %v509_v15 }
  0x63   : > { %766 = vrot.lane.b32.xlu1 %v2180_v10, %s2022_s26 }
  0x64   : > { %750 = vrot.lane.b32.xlu0 %v2190_v14, %s2022_s26 }
  0x67   : > { %768 = vrot.lane.b32.xlu1 %v2246_v43, %s2022_s26 }
  0x68   : > { %752 = vrot.lane.b32.xlu0 %v2251_v44, %s2022_s26 }
  0x6b   : > { %813 = vrot.lane.b32.xlu1 %v579_v33, %s2025_s29  ;;  %v507_v33 = vsel %vm435_vm1, %v502_v28, %v506_v29 }
  0x6c   : > { %797 = vrot.lane.b32.xlu0 %v483_v35, %s2025_s29 }
  0x6f   : > { %815 = vrot.lane.b32.xlu1 %v591_v62, %s2025_s29 }
  0x70   : > { %799 = vrot.lane.b32.xlu0 %v495_v63, %s2025_s29 }
  0x73   : > { %848 = vrot.lane.b32.xlu1 %v696_v41, %s2026_s30  ;;  %v677_v41 = vrot.slane %v1981_v17, 1 }
  0x74   : > { %832 = vrot.lane.b32.xlu0 %v672_v42, %s2026_s30 }
  0x75   : > { %v2331_v49 = vsel %vm660_vm0, %v676_v40, %v677_v41 }
  0x77   : > { %850 = vrot.lane.b32.xlu1 %v699_v8, %s2026_s30 }
  0x78   : > { %834 = vrot.lane.b32.xlu0 %v675_v11, %s2026_s30 }
  0x7b   : > { %885 = vrot.lane.b32.xlu1 %v2246_v43, %s2027_s6 }
  0x7c   : > { %869 = vrot.lane.b32.xlu0 %v2251_v44, %s2027_s6 }
  0x7f   : > { %887 = vrot.lane.b32.xlu1 %v2280_v9, %s2027_s6 }
  0x80   : > { %871 = vrot.lane.b32.xlu0 %v2285_v13, %s2027_s6 }
  0x83   : > { %932 = vrot.lane.b32.xlu1 %v591_v62, %s2028_s11 }
  0x84   : > { %916 = vrot.lane.b32.xlu0 %v495_v63, %s2028_s11 }
  0x85   : > { %v2304_v30 = vpop.permute.xlu1 %762 }
  0x86   : > { %v2308_v32 = vpop.permute.xlu0 %746 }
  0x87   : > { %934 = vrot.lane.b32.xlu1 %v603_v31, %s2028_s11 }
  0x88   : > { %918 = vrot.lane.b32.xlu0 %v507_v33, %s2028_s11 }
  0x89   : > { %v2313_v34 = vpop.permute.xlu1 %725 }
  0x8a   : > { %v2315_v35 = vpop.permute.xlu0 %709 }
  0x8b   : > { %967 = vrot.lane.b32.xlu1 %v699_v8, %s2029_s14 }
  0x8c   : > { %951 = vrot.lane.b32.xlu0 %v675_v11, %s2029_s14 }
  0x8d   : > { %v2320_v38 = vpop.permute.xlu1 %727 }
  0x8e   : > { %v2323_v42 = vpop.permute.xlu0 %711 }
  0x8f   : > { %652 = vrot.lane.b32.xlu1 %v591_v62, %s2024_s28 }
  0x90   : > { %636 = vrot.lane.b32.xlu0 %v495_v63, %s2024_s28  ;;  %v1985_v63 = vld [vmem:[%s2084_s25 + $0x50] ss:$0 sps:$4 sm:$0x11]  }
  0x91   : > { %v2328_v47 = vpop.permute.xlu1 %630  ;;  %v516_v17 = vshll.u32 %v1985_v63, 16  ;;  %v680_v40 = vrot.slane %v1985_v63, 1 }
  0x92   : > { %v629_v50 = vpop.permute.xlu0 %628 }
  0x93   : > { %969 = vrot.lane.b32.xlu1 %v702_v45, %s2029_s14  ;;  %v518_v24 = vrot.slane %v516_v17, 1  ;;  %v981_v6 = vsel %vm979_vm3, %v2101_v4, %v629_v50 }
  0x94   : > { %953 = vrot.lane.b32.xlu0 %v2331_v49, %s2029_s14  ;;  %v1014_v4 = vsel %vm1012_vm4, %v981_v6, %v2315_v35  ;;  %v2437_v35 = vld [vmem:[%s2084_s25 + $0x5c] ss:$0 sps:$4 sm:$0x11]  }
  0x95   : > { %v2336_v52 = vpop.permute.xlu1 %646  ;;  %v2389_v28 = vsel %vm435_vm1, %v514_v22, %v518_v24  ;;  %v617_v22 = vshrl.u32 %v2408_v3, 16 }
  0x96   : > { %v645_v53 = vpop.permute.xlu0 %644 }
  0x97   : > { %654 = vrot.lane.b32.xlu1 %v603_v31, %s2024_s28  ;;  %v997_v41 = vsel %vm979_vm3, %v2097_v2, %v645_v53 }
  0x98   : > { %638 = vrot.lane.b32.xlu0 %v507_v33, %s2024_s28  ;;  %v1030_v53 = vsel %vm1012_vm4, %v997_v41, %v2313_v34  ;;  %v619_v34 = vshll.u32 %v2408_v3, 16 }
  0x99   : > { %v2340_v54 = vpop.permute.xlu1 %764  ;;  %v1063_v50 = vsel %vm1045_vm6, %v1030_v53, %v2304_v30  ;;  %v528_v53 = vshll.u32 %v2437_v35, 16 }
  0x9a   : > { %v2342_v55 = vpop.permute.xlu0 %748 }
  0x9b   : > { %733 = vrot.lane.b32.xlu1 %v699_v8, %s2023_s27  ;;  %v612_v8 = vshll.u32 %v1984_v60, 16  ;;  %v2405_v60 = vsel %vm660_vm0, %v703_v36, %v704_v37  ;;  %v621_v36 = vrot.slane %v619_v34, 1 }
  0x9c   : > { %717 = vrot.lane.b32.xlu0 %v675_v11, %s2023_s27 }
  0x9d   : > { %v2349_v57 = vpop.permute.xlu1 %809  ;;  %v614_v20 = vrot.slane %v612_v8, 1 }
  0x9e   : > { %v2354_v59 = vpop.permute.xlu0 %793  ;;  %v1096_v16 = vsel %vm1078_vm5, %v1063_v50, %v2349_v57 }
  0x9f   : > { %735 = vrot.lane.b32.xlu1 %v702_v45, %s2023_s27  ;;  %v2385_v26 = vsel %vm435_vm1, %v610_v19, %v614_v20  ;;  %v1047_v19 = vsel %vm1045_vm6, %v1014_v4, %v2308_v32  ;;  %v999_v32 = vsel %vm979_vm3, %v2087_v0, %v2336_v52  ;;  %v983_v0 = vsel %vm979_vm3, %v2090_v1, %v2328_v47 }
  0xa0   : > { %719 = vrot.lane.b32.xlu0 %v2331_v49, %s2023_s27  ;;  %v1080_v57 = vsel %vm1078_vm5, %v1047_v19, %v2354_v59  ;;  %v622_v4 = vor.u32 %v621_v36, %v617_v22  ;;  %v1016_v47 = vsel %vm1012_vm4, %v983_v0, %v2323_v42 }
  0xa1   : > { %v2361_v62 = vpop.permute.xlu1 %811 }
  0xa2   : > { %v2365_v5 = vpop.permute.xlu0 %795 }
  0xa3   : > { %770 = vrot.lane.b32.xlu1 %v2280_v9, %s2022_s26 }
  0xa4   : > { %754 = vrot.lane.b32.xlu0 %v2285_v13, %s2022_s26 }
  0xa5   : > { %v845_v11 = vpop.permute.xlu1 %844 }
  0xa6   : > { %v2373_v18 = vpop.permute.xlu0 %828  ;;  %v1129_v20 = vsel %vm1111_vm7, %v1096_v16, %v845_v11  ;;  %v530_v16 = vrot.slane %v528_v53, 1  ;;  %v1993_v53 = vld [vmem:[%s2084_s25 + $0xc0] sm:$0xff]  }
  0xa7   : > { %772 = vrot.lane.b32.xlu1 %v2346_v56, %s2022_s26  ;;  %v1113_v11 = vsel %vm1111_vm7, %v1080_v57, %v2373_v18 }
  0xa8   : > { %756 = vrot.lane.b32.xlu0 %v2352_v58, %s2022_s26 }
  0xa9   : > { %v2379_v21 = vpop.permute.xlu1 %846 }
  0xaa   : > { %v2381_v25 = vpop.permute.xlu0 %830 }
  0xab   : > { %817 = vrot.lane.b32.xlu1 %v603_v31, %s2025_s29 }
  0xac   : > { %801 = vrot.lane.b32.xlu0 %v507_v33, %s2025_s29  ;;  %v679_v33 = vrot.slane %v2352_v58, 1 }
  0xad   : > { %v882_v27 = vpop.permute.xlu1 %881 }
  0xae   : > { %v866_v29 = vpop.permute.xlu0 %865  ;;  %v2417_v7 = vsel %vm660_vm0, %v679_v33, %v680_v40  ;;  %v1162_v24 = vsel %vm1144_vm8, %v1129_v20, %v882_v27 }
  0xaf   : > { %819 = vrot.lane.b32.xlu1 %v2385_v26, %s2025_s29  ;;  %v1146_v27 = vsel %vm1144_vm8, %v1113_v11, %v866_v29  ;;  %v1032_v29 = vsel %vm1012_vm4, %v999_v32, %v2320_v38 }
  0xb0   : > { %803 = vrot.lane.b32.xlu0 %v2389_v28, %s2025_s29  ;;  %v1065_v50 = vsel %vm1045_vm6, %v1032_v29, %v2340_v54  ;;  %v784_v29 = vshll.u32 %v1993_v53, 16 }
  0xb1   : > { %v2396_v31 = vpop.permute.xlu1 %883  ;;  %v1098_v38 = vsel %vm1078_vm5, %v1065_v50, %v2361_v62 }
  0xb2   : > { %v2401_v61 = vpop.permute.xlu0 %867  ;;  %v1131_v54 = vsel %vm1111_vm7, %v1098_v38, %v2379_v21 }
  0xb3   : > { %852 = vrot.lane.b32.xlu1 %v702_v45, %s2026_s30  ;;  %v2420_v45 = vld [vmem:[%s2084_s25 + $0x54] sm:$0xff]   ;;  %v1164_v42 = vsel %vm1144_vm8, %v1131_v54, %v2396_v31 }
  0xb4   : > { %836 = vrot.lane.b32.xlu0 %v2331_v49, %s2026_s30  ;;  %v2427_v49 = vld [vmem:[%s2084_s25 + $0xbc] ss:$0 sps:$4 sm:$0x11]   ;;  %v523_v17 = vshll.u32 %v2420_v45, 16  ;;  %v521_v59 = vshrl.u32 %v2420_v45, 16  ;;  %v682_v11 = vrot.slane %v2420_v45, 1 }
  0xb5   : > { %v929_v63 = vpop.permute.xlu1 %928  ;;  %v624_v37 = vshll.u32 %v2427_v49, 16 }
  0xb6   : > { %v913_v8 = vpop.permute.xlu0 %912  ;;  %v1195_v33 = vsel %vm1177_vm9, %v1162_v24, %v929_v63  ;;  %v525_v6 = vrot.slane %v523_v17, 1  ;;  %v1049_v17 = vsel %vm1045_vm6, %v1016_v47, %v2342_v55 }
  0xb7   : > { %854 = vrot.lane.b32.xlu1 %v2405_v60, %s2026_s30  ;;  %v1179_v52 = vsel %vm1177_vm9, %v1146_v27, %v913_v8  ;;  %v626_v34 = vrot.slane %v624_v37, 1  ;;  %v1082_v20 = vsel %vm1078_vm5, %v1049_v17, %v2365_v5  ;;  %v707_v37 = vrot.slane %v2427_v49, 1 }
  0xb8   : > { %838 = vrot.lane.b32.xlu0 %v2417_v7, %s2026_s30  ;;  %v526_v8 = vor.u32 %v525_v6, %v521_v59  ;;  %v1115_v22 = vsel %vm1111_vm7, %v1082_v20, %v2381_v25 }
  0xb9   : > { %v931_v15 = vpop.permute.xlu1 %930  ;;  %v627_v62 = vsel %vm435_vm1, %v622_v4, %v626_v34  ;;  %v1148_v57 = vsel %vm1144_vm8, %v1115_v22, %v2401_v61  ;;  %v786_v34 = vrot.slane %v784_v29, 1  ;;  %v825_v22 = vrot.slane %v1993_v53, 1 }
  0xba   : > { %v915_v30 = vpop.permute.xlu0 %914  ;;  %v1197_v55 = vsel %vm1177_vm9, %v1164_v42, %v931_v15  ;;  %v531_v5 = vsel %vm435_vm1, %v526_v8, %v530_v16 }
  0xbb   : > { %889 = vrot.lane.b32.xlu1 %v2346_v56, %s2027_s6  ;;  %v1181_v31 = vsel %vm1177_vm9, %v1148_v57, %v915_v30  ;;  %v706_v30 = vrot.slane %v2408_v3, 1 }
  0xbc   : > { %873 = vrot.lane.b32.xlu0 %v2352_v58, %s2027_s6 }
  0xbd   : > { %v964_v40 = vpop.permute.xlu1 %963  ;;  %v708_v59 = vsel %vm660_vm0, %v706_v30, %v707_v37  ;;  %v2587_v30 = vld [vmem:[%s2084_s25 + $0xd4] ss:$0 sps:$4 sm:$0x11]  }
  0xbe   : > { %v1228_v41 = vsel %vm1210_vm10, %v1195_v33, %v964_v40  ;;  %v948_v18 = vpop.permute.xlu0 %947  ;;  %v683_v33 = vrot.slane %v2437_v35, 1 }
  0xbf   : > { %891 = vrot.lane.b32.xlu1 %v2408_v3, %s2027_s6  ;;  %1901 = vmatprep.mubr.msk.bf16.mxu1 %vm1270_vm11, %v1228_v41  ;;  %v1212_v63 = vsel %vm1210_vm10, %v1179_v52, %v948_v18  ;;  %v1994_v18 = vld [vmem:[%s2084_s25 + $0xc8] ss:$0 sps:$4 sm:$0x11]  }
  0xc0   : > { %875 = vrot.lane.b32.xlu0 %v2420_v45, %s2027_s6  ;;  %1885 = vmatprep.mubr.msk.bf16.mxu0 %vm1270_vm11, %v1212_v63  ;;  %v684_v27 = vsel %vm660_vm0, %v682_v11, %v683_v33  ;;  %v789_v50 = vshll.u32 %v1994_v18, 16 }
  0xc1   : > { %v2477_v1 = vpop.permute.xlu1 %648 }
  0xc2   : > { %v2487_v19 = vpop.permute.xlu0 %632  ;;  %v791_v8 = vrot.slane %v789_v50, 1 }
  0xc3   : > { %936 = vrot.lane.b32.xlu1 %v2385_v26, %s2028_s11  ;;  %v985_v11 = vsel %vm979_vm3, %v2138_v46, %v2487_v19 }
  0xc4   : > { %920 = vrot.lane.b32.xlu0 %v2389_v28, %s2028_s11 }
  0xc5   : > { %v966_v21 = vpop.permute.xlu1 %965 }
  0xc6   : > { %v1230_v24 = vsel %vm1210_vm10, %v1197_v55, %v966_v21  ;;  %v950_v36 = vpop.permute.xlu0 %949  ;;  %v826_v55 = vrot.slane %v1994_v18, 1 }
  0xc7   : > { %938 = vrot.lane.b32.xlu1 %v627_v62, %s2028_s11  ;;  %1902 = vmatmul.mubr.msk.bf16.vlgmr.msra.gmra.mrb[0].mxu1 %vm1270_vm11, %v1230_v24  ;;  %v1214_v25 = vsel %vm1210_vm10, %v1181_v31, %v950_v36  ;;  %v2577_v24 = vld [vmem:[%s2084_s25 + $0xcc] sm:$0xff]   ;;  %v1001_v31 = vsel %vm979_vm3, %v2132_v39, %v2477_v1 }
  0xc8   : > { %922 = vrot.lane.b32.xlu0 %v531_v5, %s2028_s11  ;;  %1886 = vmatmul.mubr.msk.bf16.vlgmr.msra.gmra.mrb[0].mxu0 %vm1270_vm11, %v1214_v25  ;;  %v903_v37 = vshll.u32 %v2577_v24, 16  ;;  %v901_v46 = vshrl.u32 %v2577_v24, 16 }
  0xc9   : > { %v2511_v15 = vpop.permute.xlu1 %650 }
  0xca   : > { %v2513_v61 = vpop.permute.xlu0 %634  ;;  %v905_v29 = vrot.slane %v903_v37, 1 }
  0xcb   : > { %971 = vrot.lane.b32.xlu1 %v2405_v60, %s2029_s14 }
  0xcc   : > { %955 = vrot.lane.b32.xlu0 %v2417_v7, %s2029_s14 }
  0xcd   : > { %v730_v32 = vpop.permute.xlu1 %729 }
  0xce   : > { %v2523_v40 = vpop.permute.xlu0 %713  ;;  %v1034_v25 = vsel %vm1012_vm4, %v1001_v31, %v730_v32 }
  0xcf   : > { %656 = vrot.lane.b32.xlu1 %v2385_v26, %s2024_s28  ;;  %v1018_v1 = vsel %vm1012_vm4, %v985_v11, %v2523_v40 }
  0xd0   : > { %640 = vrot.lane.b32.xlu0 %v2389_v28, %s2024_s28 }
  0xd1   : > { %v2530_v49 = vpop.permute.xlu1 %731 }
  0xd2   : > { %v2533_v41 = vpop.permute.xlu0 %715 }
  0xd3   : > { %973 = vrot.lane.b32.xlu1 %v708_v59, %s2029_s14 }
  0xd4   : > { %957 = vrot.lane.b32.xlu0 %v684_v27, %s2029_s14 }
  0xd5   : > { %v767_v35 = vpop.permute.xlu1 %766 }
  0xd6   : > { %v751_v6 = vpop.permute.xlu0 %750  ;;  %v1067_v33 = vsel %vm1045_vm6, %v1034_v25, %v767_v35  ;;  %v945_v25 = vrot.slane %v2587_v30, 1 }
  0xd7   : > { %658 = vrot.lane.b32.xlu1 %v627_v62, %s2024_s28  ;;  %v1051_v32 = vsel %vm1045_vm6, %v1018_v1, %v751_v6 }
  0xd8   : > { %642 = vrot.lane.b32.xlu0 %v531_v5, %s2024_s28 }
  0xd9   : > { %v2539_v26 = vpop.permute.xlu1 %768 }
  0xda   : > { %v2541_v28 = vpop.permute.xlu0 %752 }
  0xdb   : > { %737 = vrot.lane.b32.xlu1 %v2405_v60, %s2023_s27  ;;  %v782_v60 = vshrl.u32 %v1993_v53, 16 }
  0xdc   : > { %721 = vrot.lane.b32.xlu0 %v2417_v7, %s2023_s27 }
  0xdd   : > { %v814_v0 = vpop.permute.xlu1 %813  ;;  %v787_v38 = vor.u32 %v786_v34, %v782_v60  ;;  %v908_v60 = vshll.u32 %v2587_v30, 16 }
  0xde   : > { %v798_v52 = vpop.permute.xlu0 %797 }
  0xdf   : > { %739 = vrot.lane.b32.xlu1 %v708_v59, %s2023_s27  ;;  %v792_v54 = vsel %vm435_vm1, %v787_v38, %v791_v8  ;;  %v1084_v19 = vsel %vm1078_vm5, %v1051_v32, %v798_v52  ;;  %v1003_v52 = vsel %vm979_vm3, %v2180_v10, %v2511_v15  ;;  %v906_v38 = vor.u32 %v905_v29, %v901_v46  ;;  %v1997_v15 = vld [vmem:[%s2084_s25 + $0x6c] sm:$0xff]   ;;  %s1859_s25 = sshll.u32 %s2886_s18, 4 }
  0xe0   : > { %723 = vrot.lane.b32.xlu0 %v684_v27, %s2023_s27  ;;  %v910_v8 = vrot.slane %v908_v60, 1  ;;  %s246_s28 = scalar_lea.vmem %s2880_s5, %s1859_s25 }
  0xe1   : > { %v2551_v63 = vpop.permute.xlu1 %815 }
  0xe2   : > { %v2553_v4 = vpop.permute.xlu0 %799  ;;  %v911_v31 = vsel %vm435_vm1, %v906_v38, %v910_v8 }
  0xe3   : > { %774 = vrot.lane.b32.xlu1 %v2408_v3, %s2022_s26 }
  0xe4   : > { %758 = vrot.lane.b32.xlu0 %v2420_v45, %s2022_s26 }
  0xe5   : > { %v849_v7 = vpop.permute.xlu1 %848 }
  0xe6   : > { %v833_v47 = vpop.permute.xlu0 %832 }
  0xe7   : > { %776 = vrot.lane.b32.xlu1 %v1993_v53, %s2022_s26  ;;  %v1117_v40 = vsel %vm1111_vm7, %v1084_v19, %v833_v47 }
  0xe8   : > { %760 = vrot.lane.b32.xlu0 %v2097_v2, %s2022_s26 }
  0xe9   : > { %v2562_v16 = vpop.permute.xlu1 %850 }
  0xea   : > { %v2564_v17 = vpop.permute.xlu0 %834 }
  0xeb   : > { %821 = vrot.lane.b32.xlu1 %v627_v62, %s2025_s29  ;;  %v2574_v62 = vsel %vm660_vm0, %v825_v22, %v826_v55 }
  0xec   : > { %805 = vrot.lane.b32.xlu0 %v531_v5, %s2025_s29 }
  0xed   : > { %v886_v20 = vpop.permute.xlu1 %885 }
  0xee   : > { %v870_v42 = vpop.permute.xlu0 %869 }
  0xef   : > { %823 = vrot.lane.b32.xlu1 %v792_v54, %s2025_s29 }
  0xf0   : > { %807 = vrot.lane.b32.xlu0 %v2148_v51, %s2025_s29 }
  0xf1   : > { %v888_v21 = vpop.permute.xlu1 %887 }
  0xf2   : > { %v872_v57 = vpop.permute.xlu0 %871 }
  0xf3   : > { %856 = vrot.lane.b32.xlu1 %v708_v59, %s2026_s30  ;;  %v1100_v59 = vsel %vm1078_vm5, %v1067_v33, %v814_v0 }
  0xf4   : > { %840 = vrot.lane.b32.xlu0 %v684_v27, %s2026_s30  ;;  %v1133_v27 = vsel %vm1111_vm7, %v1100_v59, %v849_v7 }
  0xf5   : > { %v933_v5 = vpop.permute.xlu1 %932  ;;  %v1166_v35 = vsel %vm1144_vm8, %v1133_v27, %v886_v20  ;;  %v987_v20 = vsel %vm979_vm3, %v2190_v14, %v2513_v61 }
  0xf6   : > { %v917_v36 = vpop.permute.xlu0 %916  ;;  %v1199_v0 = vsel %vm1177_vm9, %v1166_v35, %v933_v5 }
  0xf7   : > { %858 = vrot.lane.b32.xlu1 %v2574_v62, %s2026_s30 }
  0xf8   : > { %842 = vrot.lane.b32.xlu0 %v2110_v12, %s2026_s30 }
  0xf9   : > { %v935_v39 = vpop.permute.xlu1 %934 }
  0xfa   : > { %v919_v18 = vpop.permute.xlu0 %918 }
  0xfb   : > { %893 = vrot.lane.b32.xlu1 %v1993_v53, %s2027_s6  ;;  %v1150_v53 = vsel %vm1144_vm8, %v1117_v40, %v870_v42 }
  0xfc   : > { %877 = vrot.lane.b32.xlu0 %v2097_v2, %s2027_s6  ;;  %v1183_v50 = vsel %vm1177_vm9, %v1150_v53, %v917_v36  ;;  %v1036_v2 = vsel %vm1012_vm4, %v1003_v52, %v2530_v49  ;;  %v1020_v49 = vsel %vm1012_vm4, %v987_v20, %v2533_v41 }
  0xfd   : > { %v968_v6 = vpop.permute.xlu1 %967  ;;  %v1069_v10 = vsel %vm1045_vm6, %v1036_v2, %v2539_v26  ;;  %v1053_v55 = vsel %vm1045_vm6, %v1020_v49, %v2541_v28 }
  0xfe   : > { %v1232_v34 = vsel %vm1210_vm10, %v1199_v0, %v968_v6  ;;  %v952_v7 = vpop.permute.xlu0 %951  ;;  %v1102_v22 = vsel %vm1078_vm5, %v1069_v10, %v2551_v63  ;;  %v1086_v26 = vsel %vm1078_vm5, %v1053_v55, %v2553_v4 }
  0xff   : > { %895 = vrot.lane.b32.xlu1 %v2577_v24, %s2027_s6  ;;  %1905 = vmatprep.mubr.msk.bf16.mxu1 %vm1270_vm11, %v1232_v34  ;;  %v1216_v47 = vsel %vm1210_vm10, %v1183_v50, %v952_v7  ;;  %v1135_v14 = vsel %vm1111_vm7, %v1102_v22, %v2562_v16  ;;  %v1119_v41 = vsel %vm1111_vm7, %v1086_v26, %v2564_v17  ;;  %v944_v17 = vrot.slane %v2577_v24, 1 }
 0x100   : > { %879 = vrot.lane.b32.xlu0 %v1997_v15, %s2027_s6  ;;  %1889 = vmatprep.mubr.msk.bf16.mxu0 %vm1270_vm11, %v1216_v47  ;;  %v1168_v5 = vsel %vm1144_vm8, %v1135_v14, %v888_v21  ;;  %v1152_v16 = vsel %vm1144_vm8, %v1119_v41, %v872_v57 }
 0x101   : > { %v653_v42 = vpop.permute.xlu1 %652  ;;  %v1201_v63 = vsel %vm1177_vm9, %v1168_v5, %v935_v39  ;;  %v1185_v36 = vsel %vm1177_vm9, %v1152_v16, %v919_v18  ;;  %v946_v37 = vsel %vm660_vm0, %v944_v17, %v945_v25 }
 0x102   : > { %v637_v61 = vpop.permute.xlu0 %636 }
 0x103   : > { %940 = vrot.lane.b32.xlu1 %v792_v54, %s2028_s11  ;;  %v989_v52 = vsel %vm979_vm3, %v2251_v44, %v637_v61 }
 0x104   : > { %924 = vrot.lane.b32.xlu0 %v2148_v51, %s2028_s11 }
 0x105   : > { %v970_v28 = vpop.permute.xlu1 %969 }
 0x106   : > { %v1234_v54 = vsel %vm1210_vm10, %v1201_v63, %v970_v28  ;;  %v954_v4 = vpop.permute.xlu0 %953 }
 0x107   : > { %942 = vrot.lane.b32.xlu1 %v911_v31, %s2028_s11  ;;  %1906 = vmatmul.mubr.msk.bf16.gmra.mrb[4].mxu1 %vm1270_vm11, %v1234_v54  ;;  %v1218_v21 = vsel %vm1210_vm10, %v1185_v36, %v954_v4 }
 0x108   : > { %926 = vrot.lane.b32.xlu0 %v2143_v48, %s2028_s11  ;;  %1890 = vmatmul.mubr.msk.bf16.gmra.mrb[4].mxu0 %vm1270_vm11, %v1218_v21 }
 0x109   : > { %v655_v51 = vpop.permute.xlu1 %654 }
 0x10a   : > { %v639_v57 = vpop.permute.xlu0 %638  ;;  %v1007_v55 = vsel %vm979_vm3, %v2280_v9, %v655_v51 }
 0x10b   : > { %975 = vrot.lane.b32.xlu1 %v2574_v62, %s2029_s14  ;;  %v991_v31 = vsel %vm979_vm3, %v2285_v13, %v639_v57 }
 0x10c   : > { %959 = vrot.lane.b32.xlu0 %v2110_v12, %s2029_s14 }
 0x10d   : > { %v734_v11 = vpop.permute.xlu1 %733 }
 0x10e   : > { %v718_v33 = vpop.permute.xlu0 %717 }
 0x10f   : > { %977 = vrot.lane.b32.xlu1 %v946_v37, %s2029_s14  ;;  %v1022_v2 = vsel %vm1012_vm4, %v989_v52, %v718_v33 }
 0x110   : > { %961 = vrot.lane.b32.xlu0 %v2122_v23, %s2029_s14  ;;  %v1005_v23 = vsel %vm979_vm3, %v2246_v43, %v653_v42 }
 0x111   : > { %v736_v48 = vpop.permute.xlu1 %735  ;;  %v1038_v34 = vsel %vm1012_vm4, %v1005_v23, %v734_v11 }
 0x112   : > { %v720_v24 = vpop.permute.xlu0 %719  ;;  %v1040_v26 = vsel %vm1012_vm4, %v1007_v55, %v736_v48 }
 0x113   : > { %v1024_v28 = vsel %vm1012_vm4, %v991_v31, %v720_v24 }
 0x115   : > { %v771_v30 = vpop.permute.xlu1 %770 }
 0x116   : > { %v755_v39 = vpop.permute.xlu0 %754  ;;  %v1071_v50 = vsel %vm1045_vm6, %v1038_v34, %v771_v30 }
 0x117   : > { %v1055_v38 = vsel %vm1045_vm6, %v1022_v2, %v755_v39 }
 0x119   : > { %v773_v1 = vpop.permute.xlu1 %772 }
 0x11a   : > { %v757_v59 = vpop.permute.xlu0 %756  ;;  %v1073_v41 = vsel %vm1045_vm6, %v1040_v26, %v773_v1 }
 0x11b   : > { %v1057_v16 = vsel %vm1045_vm6, %v1024_v28, %v757_v59 }
 0x11d   : > { %v818_v32 = vpop.permute.xlu1 %817 }
 0x11e   : > { %v802_v62 = vpop.permute.xlu0 %801  ;;  %v1104_v47 = vsel %vm1078_vm5, %v1071_v50, %v818_v32 }
 0x11f   : > { %v1088_v43 = vsel %vm1078_vm5, %v1055_v38, %v802_v62 }
 0x121   : > { %v820_v27 = vpop.permute.xlu1 %819 }
 0x122   : > { %v804_v18 = vpop.permute.xlu0 %803  ;;  %v1106_v9 = vsel %vm1078_vm5, %v1073_v41, %v820_v27 }
 0x123   : > { %v1090_v4 = vsel %vm1078_vm5, %v1057_v16, %v804_v18 }
 0x125   : > { %v853_v46 = vpop.permute.xlu1 %852 }
 0x126   : > { %v837_v19 = vpop.permute.xlu0 %836  ;;  %v1137_v8 = vsel %vm1111_vm7, %v1104_v47, %v853_v46 }
 0x127   : > { %v1121_v15 = vsel %vm1111_vm7, %v1088_v43, %v837_v19 }
 0x129   : > { %v855_v12 = vpop.permute.xlu1 %854 }
 0x12a   : > { %v839_v35 = vpop.permute.xlu0 %838  ;;  %v1139_v54 = vsel %vm1111_vm7, %v1106_v9, %v855_v12 }
 0x12b   : > { %v1123_v13 = vsel %vm1111_vm7, %v1090_v4, %v839_v35 }
 0x12d   : > { %v890_v29 = vpop.permute.xlu1 %889 }
 0x12e   : > { %v874_v60 = vpop.permute.xlu0 %873  ;;  %v1170_v10 = vsel %vm1144_vm8, %v1137_v8, %v890_v29 }
 0x12f   : > { %v1154_v49 = vsel %vm1144_vm8, %v1121_v15, %v874_v60 }
 0x131   : > { %v892_v40 = vpop.permute.xlu1 %891 }
 0x132   : > { %v876_v0 = vpop.permute.xlu0 %875  ;;  %v1172_v21 = vsel %vm1144_vm8, %v1139_v54, %v892_v40 }
 0x133   : > { %v1156_v51 = vsel %vm1144_vm8, %v1123_v13, %v876_v0 }
 0x135   : > { %v937_v6 = vpop.permute.xlu1 %936 }
 0x136   : > { %v921_v53 = vpop.permute.xlu0 %920  ;;  %v1203_v44 = vsel %vm1177_vm9, %v1170_v10, %v937_v6 }
 0x137   : > { %v1187_v14 = vsel %vm1177_vm9, %v1154_v49, %v921_v53 }
 0x139   : > { %v939_v7 = vpop.permute.xlu1 %938 }
 0x13a   : > { %v923_v20 = vpop.permute.xlu0 %922  ;;  %v1205_v17 = vsel %vm1177_vm9, %v1172_v21, %v939_v7 }
 0x13b   : > { %v1189_v37 = vsel %vm1177_vm9, %v1156_v51, %v923_v20 }
 0x13d   : > { %v972_v42 = vpop.permute.xlu1 %971 }
 0x13e   : > { %v1236_v22 = vsel %vm1210_vm10, %v1203_v44, %v972_v42  ;;  %v956_v61 = vpop.permute.xlu0 %955 }
 0x13f   : > { %1909 = vmatprep.mubr.msk.bf16.mxu1 %vm1270_vm11, %v1236_v22  ;;  %v1220_v5 = vsel %vm1210_vm10, %v1187_v14, %v956_v61 }
 0x140   : > { %1893 = vmatprep.mubr.msk.bf16.mxu0 %vm1270_vm11, %v1220_v5 }
 0x141   : > { %v657_v63 = vpop.permute.xlu1 %656 }
 0x142   : > { %v641_v36 = vpop.permute.xlu0 %640  ;;  %v1009_v50 = vsel %vm979_vm3, %v2346_v56, %v657_v63 }
 0x143   : > { %v993_v47 = vsel %vm979_vm3, %v2352_v58, %v641_v36 }
 0x145   : > { %v974_v25 = vpop.permute.xlu1 %973 }
 0x146   : > { %v1238_v57 = vsel %vm1210_vm10, %v1205_v17, %v974_v25  ;;  %v958_v11 = vpop.permute.xlu0 %957 }
 0x147   : > { %1910 = vmatmul.mubr.msk.bf16.gmra.mrb[8].mxu1 %vm1270_vm11, %v1238_v57  ;;  %v1222_v33 = vsel %vm1210_vm10, %v1189_v37, %v958_v11  ;;  %v2750_v11 = vld [vmem:[%s2877_s2] ss:$0 sm:$0xff] }
 0x148   : > { %1894 = vmatmul.mubr.msk.bf16.gmra.mrb[8].mxu0 %vm1270_vm11, %v1222_v33 }
 0x149   : > { %v659_v48 = vpop.permute.xlu1 %658 }
 0x14a   : > { %v643_v24 = vpop.permute.xlu0 %642  ;;  %v1011_v10 = vsel %vm979_vm3, %v2408_v3, %v659_v48 }
 0x14b   : > { %v995_v22 = vsel %vm979_vm3, %v2420_v45, %v643_v24 }
 0x14d   : > { %v738_v30 = vpop.permute.xlu1 %737 }
 0x14e   : > { %v722_v39 = vpop.permute.xlu0 %721  ;;  %v1042_v2 = vsel %vm1012_vm4, %v1009_v50, %v738_v30  ;;  %v2768_v50 = vld [vmem:[%s2879_s4] ss:$0 sm:$0xff] }
 0x14f   : > { %v1026_v20 = vsel %vm1012_vm4, %v993_v47, %v722_v39 }
 0x151   : > { %v740_v1 = vpop.permute.xlu1 %739 }
 0x152   : > { %v724_v59 = vpop.permute.xlu0 %723  ;;  %v1044_v42 = vsel %vm1012_vm4, %v1011_v10, %v740_v1 }
 0x153   : > { %v1028_v26 = vsel %vm1012_vm4, %v995_v22, %v724_v59 }
 0x155   : > { %v775_v32 = vpop.permute.xlu1 %774 }
 0x156   : > { %v759_v62 = vpop.permute.xlu0 %758  ;;  %v1075_v38 = vsel %vm1045_vm6, %v1042_v2, %v775_v32 }
 0x157   : > { %v1059_v15 = vsel %vm1045_vm6, %v1026_v20, %v759_v62 }
 0x159   : > { %v777_v27 = vpop.permute.xlu1 %776 }
 0x15a   : > { %v761_v18 = vpop.permute.xlu0 %760  ;;  %v1077_v55 = vsel %vm1045_vm6, %v1044_v42, %v777_v27 }
 0x15b   : > { %v1061_v63 = vsel %vm1045_vm6, %v1028_v26, %v761_v18 }
 0x15d   : > { %v822_v46 = vpop.permute.xlu1 %821 }
 0x15e   : > { %v806_v19 = vpop.permute.xlu0 %805  ;;  %v1108_v43 = vsel %vm1078_vm5, %v1075_v38, %v822_v46 }
 0x15f   : > { %v1092_v49 = vsel %vm1078_vm5, %v1059_v15, %v806_v19 }
 0x161   : > { %v824_v12 = vpop.permute.xlu1 %823 }
 0x162   : > { %v808_v35 = vpop.permute.xlu0 %807  ;;  %v1110_v5 = vsel %vm1078_vm5, %v1077_v55, %v824_v12 }
 0x163   : > { %v1094_v16 = vsel %vm1078_vm5, %v1061_v63, %v808_v35 }
 0x165   : > { %v857_v29 = vpop.permute.xlu1 %856 }
 0x166   : > { %v841_v60 = vpop.permute.xlu0 %840  ;;  %v1141_v56 = vsel %vm1111_vm7, %v1108_v43, %v857_v29 }
 0x167   : > { %v1125_v14 = vsel %vm1111_vm7, %v1092_v49, %v841_v60  ;;  %v2760_v60 = vld [vmem:[%s2878_s3] ss:$0 sm:$0xff] }
 0x169   : > { %v859_v40 = vpop.permute.xlu1 %858 }
 0x16a   : > { %v843_v0 = vpop.permute.xlu0 %842  ;;  %v1143_v28 = vsel %vm1111_vm7, %v1110_v5, %v859_v40 }
 0x16b   : > { %v1127_v4 = vsel %vm1111_vm7, %v1094_v16, %v843_v0 }
 0x16d   : > { %v894_v6 = vpop.permute.xlu1 %893 }
 0x16e   : > { %v878_v23 = vpop.permute.xlu0 %877  ;;  %v1174_v58 = vsel %vm1144_vm8, %v1141_v56, %v894_v6 }
 0x16f   : > { %v1158_v31 = vsel %vm1144_vm8, %v1125_v14, %v878_v23 }
 0x171   : > { %v896_v53 = vpop.permute.xlu1 %895 }
 0x172   : > { %v880_v34 = vpop.permute.xlu0 %879  ;;  %v1176_v54 = vsel %vm1144_vm8, %v1143_v28, %v896_v53 }
 0x173   : > { %v1160_v17 = vsel %vm1144_vm8, %v1127_v4, %v880_v34 }
 0x175   : > { %v941_v52 = vpop.permute.xlu1 %940 }
 0x176   : > { %v925_v7 = vpop.permute.xlu0 %924  ;;  %v1207_v3 = vsel %vm1177_vm9, %v1174_v58, %v941_v52 }
 0x177   : > { %v1191_v45 = vsel %vm1177_vm9, %v1158_v31, %v925_v7 }
 0x179   : > { %v943_v8 = vpop.permute.xlu1 %942 }
 0x17a   : > { %v927_v44 = vpop.permute.xlu0 %926  ;;  %v1209_v21 = vsel %vm1177_vm9, %v1176_v54, %v943_v8 }
 0x17b   : > { %v1193_v51 = vsel %vm1177_vm9, %v1160_v17, %v927_v44 }
 0x17d   : > { %v976_v61 = vpop.permute.xlu1 %975 }
 0x17e   : > { %v1240_v41 = vsel %vm1210_vm10, %v1207_v3, %v976_v61  ;;  %v960_v9 = vpop.permute.xlu0 %959 }
 0x17f   : > { %1913 = vmatprep.mubr.msk.bf16.mxu1 %vm1270_vm11, %v1240_v41  ;;  %v1224_v36 = vsel %vm1210_vm10, %v1191_v45, %v960_v9 }
 0x180   : > { %1897 = vmatprep.mubr.msk.bf16.mxu0 %vm1270_vm11, %v1224_v36 }
 0x181   : > { %v978_v13 = vpop.permute.xlu1 %977 }
 0x182   : > { %v1242_v25 = vsel %vm1210_vm10, %v1209_v21, %v978_v13  ;;  %v962_v57 = vpop.permute.xlu0 %961 }
 0x183   : > { %1914 = vmatmul.mubr.msk.bf16.gmra.mrb[12].mxu1 %vm1270_vm11, %v1242_v25  ;;  %v1226_v37 = vsel %vm1210_vm10, %v1193_v51, %v962_v57 }
 0x184   : > { %1898 = vmatmul.mubr.msk.bf16.gmra.mrb[12].mxu0 %vm1270_vm11, %v1226_v37 }
 0x19a   : > { %v1903_v33 = vpop.f32.mrb[0].mxu1 }
 0x19b   : > { %v1405_v48 = vpop.f32.mrb[1].mxu1  ;;  %v1887_v24 = vpop.f32.mrb[0].mxu0  ;;  %v1414_v30 = vadd.f32 %v1903_v33, %v2750_v11 }
 0x19c   : > { %v1406_v39 = vadd.f32 %v2750_v11, %v1405_v48  ;;  %v1904_v1 = vpop.f32.mrb[2].mxu1  ;;  %v1350_v59 = vadd.f32 %v1887_v24, %v2750_v11  ;;  %v1341_v32 = vpop.f32.mrb[1].mxu0 }
 0x19d   : > { %v1408_v62 = vpop.f32.mrb[3].mxu1  ;;  %v1342_v27 = vadd.f32 %v2750_v11, %v1341_v32  ;;  %v1888_v46 = vpop.f32.mrb[2].mxu0  ;;  %vm1486_vm13 = vcmp.ge.f32.partialorder %v1414_v30, 0.0  ;;  %v1518_v0 = vmul.f32 0.01, %v1414_v30  ;;  %v1417_v23 = vadd.f32 %v1904_v1, %v2750_v11 }
 0x19e   : > { %vm1484_vm12 = vcmp.ge.f32.partialorder %v1406_v39, 0.0  ;;  %v1516_v18 = vmul.f32 0.01, %v1406_v39  ;;  %v1409_v19 = vadd.f32 %v2750_v11, %v1408_v62  ;;  %v1344_v12 = vpop.f32.mrb[3].mxu0  ;;  %v1502_v40 = vmul.f32 0.01, %v1350_v59 }
 0x19f   : > { %vm1468_vm14 = vcmp.ge.f32.partialorder %v1342_v27, 0.0  ;;  %v1500_v35 = vmul.f32 0.01, %v1342_v27  ;;  %v1353_v6 = vadd.f32 %v1888_v46, %v2750_v11  ;;  %v1345_v34 = vadd.f32 %v2750_v11, %v1344_v12 }
 0x1a0   : > { %v1548_v29 = vsel %vm1484_vm12, %v1406_v39, %v1516_v18  ;;  %vm1485_vm15 = vcmp.ge.f32.partialorder %v1409_v19, 0.0  ;;  %v1517_v52 = vmul.f32 0.01, %v1409_v19  ;;  %vm1470_vm0 = vcmp.ge.f32.partialorder %v1350_v59, 0.0 }
 0x1a1   : > { %v1532_v53 = vsel %vm1468_vm14, %v1342_v27, %v1500_v35  ;;  %v1587_v7 = vmul.f32 %v2760_v60, %v1548_v29  ;;  %vm1469_vm1 = vcmp.ge.f32.partialorder %v1345_v34, 0.0  ;;  %v1501_v47 = vmul.f32 0.01, %v1345_v34 }
 0x1a2   : > { %v1571_v2 = vmul.f32 %v2760_v60, %v1532_v53  ;;  %v1549_v38 = vsel %vm1485_vm15, %v1409_v19, %v1517_v52  ;;  %v1550_v8 = vsel %vm1486_vm13, %v1414_v30, %v1518_v0  ;;  %v1534_v15 = vsel %vm1470_vm0, %v1350_v59, %v1502_v40 }
 0x1a3   : > { %v1626_v20 = vadd.f32 %v2768_v50, %v1587_v7  ;;  %v1588_v10 = vmul.f32 %v2760_v60, %v1549_v38  ;;  %v1503_v56 = vmul.f32 0.01, %v1353_v6  ;;  %v1519_v44 = vmul.f32 0.01, %v1417_v23 }
 0x1a4   : > { %v1610_v43 = vadd.f32 %v2768_v50, %v1571_v2  ;;  %v1533_v42 = vsel %vm1469_vm1, %v1345_v34, %v1501_v47  ;;  %vm1471_vm2 = vcmp.ge.f32.partialorder %v1353_v6, 0.0  ;;  %vm1487_vm3 = vcmp.ge.f32.partialorder %v1417_v23, 0.0 }
 0x1a5   : > { %1674 = vxpose.xlu1.b32.start [1/16] (narrow) %v1626_v20, 8  ;;  %v1572_v49 = vmul.f32 %v2760_v60, %v1533_v42  ;;  %v1627_v58 = vadd.f32 %v2768_v50, %v1588_v10  ;;  %v1589_v55 = vmul.f32 %v2760_v60, %v1550_v8  ;;  %v1573_v14 = vmul.f32 %v2760_v60, %v1534_v15 }
 0x1a6   : > { %1642 = vxpose.xlu0.b32.start [1/16] (narrow) %v1610_v43, 8  ;;  %v1535_v3 = vsel %vm1471_vm2, %v1353_v6, %v1503_v56  ;;  %v1551_v61 = vsel %vm1487_vm3, %v1417_v23, %v1519_v44 }
 0x1a7   : > { %v1611_v22 = vadd.f32 %v2768_v50, %v1572_v49  ;;  %v1628_v26 = vadd.f32 %v2768_v50, %v1589_v55  ;;  %v1612_v5 = vadd.f32 %v2768_v50, %v1573_v14  ;;  %v1590_v31 = vmul.f32 %v2760_v60, %v1551_v61 }
 0x1a8   : > { %v1574_v41 = vmul.f32 %v2760_v60, %v1535_v3 }
 0x1a9   : > { %1675 = vxpose.xlu1.b32.cont [2/16] (narrow) %v1627_v58, 8  ;;  %v1629_v63 = vadd.f32 %v2768_v50, %v1590_v31 }
 0x1aa   : > { %1643 = vxpose.xlu0.b32.cont [2/16] (narrow) %v1611_v22, 8  ;;  %v1613_v28 = vadd.f32 %v2768_v50, %v1574_v41 }
 0x1ad   : > { %1676 = vxpose.xlu1.b32.cont [3/16] (narrow) %v1628_v26, 8 }
 0x1ae   : > { %1644 = vxpose.xlu0.b32.cont [3/16] (narrow) %v1612_v5, 8 }
 0x1b1   : > { %1677 = vxpose.xlu1.b32.cont [4/16] (narrow) %v1629_v63, 8 }
 0x1b2   : > { %1645 = vxpose.xlu0.b32.cont [4/16] (narrow) %v1613_v28, 8 }
 0x1da   : > { %v1907_v45 = vpop.f32.mrb[4].mxu1 }
 0x1db   : > { %v1421_v9 = vpop.f32.mrb[5].mxu1  ;;  %v1891_v16 = vpop.f32.mrb[4].mxu0  ;;  %v1430_v54 = vadd.f32 %v1907_v45, %v2750_v11 }
 0x1dc   : > { %v1422_v36 = vadd.f32 %v2750_v11, %v1421_v9  ;;  %v1908_v4 = vpop.f32.mrb[6].mxu1  ;;  %v1366_v21 = vadd.f32 %v1891_v16, %v2750_v11  ;;  %v1357_v13 = vpop.f32.mrb[5].mxu0 }
 0x1dd   : > { %v1424_v17 = vpop.f32.mrb[7].mxu1  ;;  %v1358_v25 = vadd.f32 %v2750_v11, %v1357_v13  ;;  %v1892_v57 = vpop.f32.mrb[6].mxu0  ;;  %vm1490_vm5 = vcmp.ge.f32.partialorder %v1430_v54, 0.0  ;;  %v1522_v39 = vmul.f32 0.01, %v1430_v54  ;;  %v1433_v59 = vadd.f32 %v1908_v4, %v2750_v11 }
 0x1de   : > { %vm1488_vm4 = vcmp.ge.f32.partialorder %v1422_v36, 0.0  ;;  %v1520_v51 = vmul.f32 0.01, %v1422_v36  ;;  %v1425_v37 = vadd.f32 %v2750_v11, %v1424_v17  ;;  %v1360_v33 = vpop.f32.mrb[7].mxu0  ;;  %v1506_v30 = vmul.f32 0.01, %v1366_v21 }
 0x1df   : > { %vm1472_vm6 = vcmp.ge.f32.partialorder %v1358_v25, 0.0  ;;  %v1504_v48 = vmul.f32 0.01, %v1358_v25  ;;  %v1369_v1 = vadd.f32 %v1892_v57, %v2750_v11  ;;  %v1361_v62 = vadd.f32 %v2750_v11, %v1360_v33 }
 0x1e0   : > { %v1552_v24 = vsel %vm1488_vm4, %v1422_v36, %v1520_v51  ;;  %vm1489_vm7 = vcmp.ge.f32.partialorder %v1425_v37, 0.0  ;;  %v1521_v27 = vmul.f32 0.01, %v1425_v37  ;;  %vm1474_vm8 = vcmp.ge.f32.partialorder %v1366_v21, 0.0 }
 0x1e1   : > { %v1536_v32 = vsel %vm1472_vm6, %v1358_v25, %v1504_v48  ;;  %v1591_v18 = vmul.f32 %v2760_v60, %v1552_v24  ;;  %vm1473_vm9 = vcmp.ge.f32.partialorder %v1361_v62, 0.0  ;;  %v1505_v19 = vmul.f32 0.01, %v1361_v62 }
 0x1e2   : > { %v1575_v46 = vmul.f32 %v2760_v60, %v1536_v32  ;;  %v1553_v12 = vsel %vm1489_vm7, %v1425_v37, %v1521_v27  ;;  %v1554_v35 = vsel %vm1490_vm5, %v1430_v54, %v1522_v39  ;;  %v1538_v6 = vsel %vm1474_vm8, %v1366_v21, %v1506_v30 }
 0x1e3   : > { %v1630_v29 = vadd.f32 %v2768_v50, %v1591_v18  ;;  %v1592_v0 = vmul.f32 %v2760_v60, %v1553_v12  ;;  %v1507_v23 = vmul.f32 0.01, %v1369_v1  ;;  %v1523_v53 = vmul.f32 0.01, %v1433_v59 }
 0x1e4   : > { %v1614_v40 = vadd.f32 %v2768_v50, %v1575_v46  ;;  %v1537_v34 = vsel %vm1473_vm9, %v1361_v62, %v1505_v19  ;;  %vm1475_vm10 = vcmp.ge.f32.partialorder %v1369_v1, 0.0  ;;  %vm1491_vm11 = vcmp.ge.f32.partialorder %v1433_v59, 0.0 }
 0x1e5   : > { %1678 = vxpose.xlu1.b32.cont [5/16] (narrow) %v1630_v29, 8  ;;  %v1576_v52 = vmul.f32 %v2760_v60, %v1537_v34  ;;  %v1631_v7 = vadd.f32 %v2768_v50, %v1592_v0  ;;  %v1593_v47 = vmul.f32 %v2760_v60, %v1554_v35  ;;  %v1577_v38 = vmul.f32 %v2760_v60, %v1538_v6 }
 0x1e6   : > { %1646 = vxpose.xlu0.b32.cont [5/16] (narrow) %v1614_v40, 8  ;;  %v1539_v8 = vsel %vm1475_vm10, %v1369_v1, %v1507_v23  ;;  %v1555_v20 = vsel %vm1491_vm11, %v1433_v59, %v1523_v53 }
 0x1e7   : > { %v1615_v2 = vadd.f32 %v2768_v50, %v1576_v52  ;;  %v1632_v43 = vadd.f32 %v2768_v50, %v1593_v47  ;;  %v1616_v10 = vadd.f32 %v2768_v50, %v1577_v38  ;;  %v1594_v15 = vmul.f32 %v2760_v60, %v1555_v20 }
 0x1e8   : > { %v1578_v56 = vmul.f32 %v2760_v60, %v1539_v8 }
 0x1e9   : > { %1679 = vxpose.xlu1.b32.cont [6/16] (narrow) %v1631_v7, 8  ;;  %v1633_v44 = vadd.f32 %v2768_v50, %v1594_v15 }
 0x1ea   : > { %1647 = vxpose.xlu0.b32.cont [6/16] (narrow) %v1615_v2, 8  ;;  %v1617_v42 = vadd.f32 %v2768_v50, %v1578_v56 }
 0x1ed   : > { %1680 = vxpose.xlu1.b32.cont [7/16] (narrow) %v1632_v43, 8 }
 0x1ee   : > { %1648 = vxpose.xlu0.b32.cont [7/16] (narrow) %v1616_v10, 8 }
 0x1f1   : > { %1681 = vxpose.xlu1.b32.cont [8/16] (narrow) %v1633_v44, 8 }
 0x1f2   : > { %1649 = vxpose.xlu0.b32.cont [8/16] (narrow) %v1617_v42, 8 }
 0x21a   : > { %v1911_v49 = vpop.f32.mrb[8].mxu1 }
 0x21b   : > { %v1437_v58 = vpop.f32.mrb[9].mxu1  ;;  %v1895_v22 = vpop.f32.mrb[8].mxu0  ;;  %v1446_v55 = vadd.f32 %v1911_v49, %v2750_v11 }
 0x21c   : > { %v1438_v14 = vadd.f32 %v2750_v11, %v1437_v58  ;;  %v1912_v3 = vpop.f32.mrb[10].mxu1  ;;  %v1382_v61 = vadd.f32 %v1895_v22, %v2750_v11  ;;  %v1373_v26 = vpop.f32.mrb[9].mxu0 }
 0x21d   : > { %v1440_v5 = vpop.f32.mrb[11].mxu1  ;;  %v1374_v31 = vadd.f32 %v2750_v11, %v1373_v26  ;;  %v1896_v63 = vpop.f32.mrb[10].mxu0  ;;  %vm1494_vm13 = vcmp.ge.f32.partialorder %v1446_v55, 0.0  ;;  %v1526_v36 = vmul.f32 0.01, %v1446_v55  ;;  %v1449_v21 = vadd.f32 %v1912_v3, %v2750_v11 }
 0x21e   : > { %vm1492_vm12 = vcmp.ge.f32.partialorder %v1438_v14, 0.0  ;;  %v1524_v41 = vmul.f32 0.01, %v1438_v14  ;;  %v1441_v28 = vadd.f32 %v2750_v11, %v1440_v5  ;;  %v1376_v45 = vpop.f32.mrb[11].mxu0  ;;  %v1510_v54 = vmul.f32 0.01, %v1382_v61 }
 0x21f   : > { %vm1476_vm14 = vcmp.ge.f32.partialorder %v1374_v31, 0.0  ;;  %v1508_v9 = vmul.f32 0.01, %v1374_v31  ;;  %v1385_v4 = vadd.f32 %v1896_v63, %v2750_v11  ;;  %v1377_v17 = vadd.f32 %v2750_v11, %v1376_v45 }
 0x220   : > { %v1556_v16 = vsel %vm1492_vm12, %v1438_v14, %v1524_v41  ;;  %vm1493_vm15 = vcmp.ge.f32.partialorder %v1441_v28, 0.0  ;;  %v1525_v25 = vmul.f32 0.01, %v1441_v28  ;;  %vm1478_vm0 = vcmp.ge.f32.partialorder %v1382_v61, 0.0 }
 0x221   : > { %v1540_v13 = vsel %vm1476_vm14, %v1374_v31, %v1508_v9  ;;  %v1595_v51 = vmul.f32 %v2760_v60, %v1556_v16  ;;  %vm1477_vm1 = vcmp.ge.f32.partialorder %v1377_v17, 0.0  ;;  %v1509_v37 = vmul.f32 0.01, %v1377_v17 }
 0x222   : > { %v1579_v57 = vmul.f32 %v2760_v60, %v1540_v13  ;;  %v1557_v33 = vsel %vm1493_vm15, %v1441_v28, %v1525_v25  ;;  %v1558_v48 = vsel %vm1494_vm13, %v1446_v55, %v1526_v36  ;;  %v1542_v1 = vsel %vm1478_vm0, %v1382_v61, %v1510_v54 }
 0x223   : > { %v1634_v24 = vadd.f32 %v2768_v50, %v1595_v51  ;;  %v1596_v39 = vmul.f32 %v2760_v60, %v1557_v33  ;;  %v1511_v59 = vmul.f32 0.01, %v1385_v4  ;;  %v1527_v32 = vmul.f32 0.01, %v1449_v21 }
 0x224   : > { %v1618_v30 = vadd.f32 %v2768_v50, %v1579_v57  ;;  %v1541_v62 = vsel %vm1477_vm1, %v1377_v17, %v1509_v37  ;;  %vm1479_vm2 = vcmp.ge.f32.partialorder %v1385_v4, 0.0  ;;  %vm1495_vm3 = vcmp.ge.f32.partialorder %v1449_v21, 0.0 }
 0x225   : > { %1682 = vxpose.xlu1.b32.cont [9/16] (narrow) %v1634_v24, 8  ;;  %v1580_v27 = vmul.f32 %v2760_v60, %v1541_v62  ;;  %v1635_v18 = vadd.f32 %v2768_v50, %v1596_v39  ;;  %v1597_v19 = vmul.f32 %v2760_v60, %v1558_v48  ;;  %v1581_v12 = vmul.f32 %v2760_v60, %v1542_v1 }
 0x226   : > { %1650 = vxpose.xlu0.b32.cont [9/16] (narrow) %v1618_v30, 8  ;;  %v1543_v35 = vsel %vm1479_vm2, %v1385_v4, %v1511_v59  ;;  %v1559_v29 = vsel %vm1495_vm3, %v1449_v21, %v1527_v32 }
 0x227   : > { %v1619_v46 = vadd.f32 %v2768_v50, %v1580_v27  ;;  %v1636_v40 = vadd.f32 %v2768_v50, %v1597_v19  ;;  %v1620_v0 = vadd.f32 %v2768_v50, %v1581_v12  ;;  %v1598_v6 = vmul.f32 %v2760_v60, %v1559_v29 }
 0x228   : > { %v1582_v23 = vmul.f32 %v2760_v60, %v1543_v35 }
 0x229   : > { %1683 = vxpose.xlu1.b32.cont [10/16] (narrow) %v1635_v18, 8  ;;  %v1637_v53 = vadd.f32 %v2768_v50, %v1598_v6 }
 0x22a   : > { %1651 = vxpose.xlu0.b32.cont [10/16] (narrow) %v1619_v46, 8  ;;  %v1621_v34 = vadd.f32 %v2768_v50, %v1582_v23 }
 0x22d   : > { %1684 = vxpose.xlu1.b32.cont [11/16] (narrow) %v1636_v40, 8 }
 0x22e   : > { %1652 = vxpose.xlu0.b32.cont [11/16] (narrow) %v1620_v0, 8 }
 0x231   : > { %1685 = vxpose.xlu1.b32.cont [12/16] (narrow) %v1637_v53, 8 }
 0x232   : > { %1653 = vxpose.xlu0.b32.cont [12/16] (narrow) %v1621_v34, 8 }
 0x256   : > { %v1915_v52 = vpop.f32.mrb[12].mxu1 }
 0x257   : > { %v1453_v7 = vpop.f32.mrb[13].mxu1  ;;  %v1899_v2 = vpop.f32.mrb[12].mxu0  ;;  %v1462_v47 = vadd.f32 %v1915_v52, %v2750_v11 }
 0x258   : > { %v1454_v38 = vadd.f32 %v2750_v11, %v1453_v7  ;;  %v1916_v8 = vpop.f32.mrb[14].mxu1  ;;  %v1398_v20 = vadd.f32 %v1899_v2, %v2750_v11  ;;  %v1389_v43 = vpop.f32.mrb[13].mxu0 }
 0x259   : > { %v1456_v10 = vpop.f32.mrb[15].mxu1  ;;  %v1390_v15 = vadd.f32 %v2750_v11, %v1389_v43  ;;  %v1900_v44 = vpop.f32.mrb[14].mxu0  ;;  %vm1498_vm5 = vcmp.ge.f32.partialorder %v1462_v47, 0.0  ;;  %v1530_v14 = vmul.f32 0.01, %v1462_v47  ;;  %v1465_v61 = vadd.f32 %v1916_v8, %v2750_v11 }
 0x25a   : > { %vm1496_vm4 = vcmp.ge.f32.partialorder %v1454_v38, 0.0  ;;  %v1528_v56 = vmul.f32 0.01, %v1454_v38  ;;  %v1457_v42 = vadd.f32 %v2750_v11, %v1456_v10  ;;  %v1392_v49 = vpop.f32.mrb[15].mxu0  ;;  %v1514_v55 = vmul.f32 0.01, %v1398_v20 }
 0x25b   : > { %vm1480_vm6 = vcmp.ge.f32.partialorder %v1390_v15, 0.0  ;;  %v1512_v58 = vmul.f32 0.01, %v1390_v15  ;;  %v1401_v3 = vadd.f32 %v1900_v44, %v2750_v11  ;;  %v1393_v5 = vadd.f32 %v2750_v11, %v1392_v49 }
 0x25c   : > { %v1560_v22 = vsel %vm1496_vm4, %v1454_v38, %v1528_v56  ;;  %vm1497_vm7 = vcmp.ge.f32.partialorder %v1457_v42, 0.0  ;;  %v1529_v31 = vmul.f32 0.01, %v1457_v42  ;;  %vm1482_vm8 = vcmp.ge.f32.partialorder %v1398_v20, 0.0 }
 0x25d   : > { %v1544_v26 = vsel %vm1480_vm6, %v1390_v15, %v1512_v58  ;;  %v1599_v41 = vmul.f32 %v2760_v60, %v1560_v22  ;;  %vm1481_vm9 = vcmp.ge.f32.partialorder %v1393_v5, 0.0  ;;  %v1513_v28 = vmul.f32 0.01, %v1393_v5 }
 0x25e   : > { %v1583_v63 = vmul.f32 %v2760_v60, %v1544_v26  ;;  %v1561_v45 = vsel %vm1497_vm7, %v1457_v42, %v1529_v31  ;;  %v1562_v9 = vsel %vm1498_vm5, %v1462_v47, %v1530_v14  ;;  %v1546_v4 = vsel %vm1482_vm8, %v1398_v20, %v1514_v55 }
 0x25f   : > { %v1638_v16 = vadd.f32 %v2768_v50, %v1599_v41  ;;  %v1600_v36 = vmul.f32 %v2760_v60, %v1561_v45  ;;  %v1515_v11 = vmul.f32 0.01, %v1401_v3  ;;  %v1531_v21 = vmul.f32 0.01, %v1465_v61 }
 0x260   : > { %v1622_v54 = vadd.f32 %v2768_v50, %v1583_v63  ;;  %v1545_v13 = vsel %vm1481_vm9, %v1393_v5, %v1513_v28  ;;  %vm1483_vm10 = vcmp.ge.f32.partialorder %v1401_v3, 0.0  ;;  %vm1499_vm11 = vcmp.ge.f32.partialorder %v1465_v61, 0.0 }
 0x261   : > { %1686 = vxpose.xlu1.b32.cont [13/16] (narrow) %v1638_v16, 8  ;;  %v1584_v17 = vmul.f32 %v2760_v60, %v1545_v13  ;;  %v1639_v25 = vadd.f32 %v2768_v50, %v1600_v36  ;;  %v1601_v57 = vmul.f32 %v2760_v60, %v1562_v9  ;;  %v1585_v37 = vmul.f32 %v2760_v60, %v1546_v4 }
 0x262   : > { %1654 = vxpose.xlu0.b32.cont [13/16] (narrow) %v1622_v54, 8  ;;  %v1547_v33 = vsel %vm1483_vm10, %v1401_v3, %v1515_v11  ;;  %v1563_v48 = vsel %vm1499_vm11, %v1465_v61, %v1531_v21 }
 0x263   : > { %v1623_v51 = vadd.f32 %v2768_v50, %v1584_v17  ;;  %v1640_v24 = vadd.f32 %v2768_v50, %v1601_v57  ;;  %v1624_v30 = vadd.f32 %v2768_v50, %v1585_v37  ;;  %v1602_v39 = vmul.f32 %v2760_v60, %v1563_v48 }
 0x264   : > { %v1586_v1 = vmul.f32 %v2760_v60, %v1547_v33 }
 0x265   : > { %1687 = vxpose.xlu1.b32.cont [14/16] (narrow) %v1639_v25, 8  ;;  %v1641_v59 = vadd.f32 %v2768_v50, %v1602_v39 }
 0x266   : > { %1655 = vxpose.xlu0.b32.cont [14/16] (narrow) %v1623_v51, 8  ;;  %v1625_v32 = vadd.f32 %v2768_v50, %v1586_v1 }
 0x269   : > { %1688 = vxpose.xlu1.b32.cont [15/16] (narrow) %v1640_v24, 8 }
 0x26a   : > { %1656 = vxpose.xlu0.b32.cont [15/16] (narrow) %v1624_v30, 8 }
 0x26d   : > { %1689 = vxpose.xlu1.b32.end [16/16] (narrow) %v1641_v59, 8 }
 0x26e   : > { %1657 = vxpose.xlu0.b32.end [16/16] (narrow) %v1625_v32, 8 }
 0x2b1   : > { %v1690_v62 = vpop.trf.xlu1 }
 0x2b2   : > { %v1658_v27 = vpop.trf.xlu0  ;;  %1707 = vst [vmem:[%s246_s28 + $0x8] sm:$0xff] %v1690_v62 }
 0x2b3   : > { %1706 = vst [vmem:[%s246_s28] sm:$0xff] %v1658_v27 }
 0x2b4 PF: > { %s15_s20 = sadd.s32 1, %s2020_s20   ;;  %s2881_s18 = smov %s2016_s19 }
 0x2b5   : > { %p12_p5 = scmp.ge.s32.totalorder %s15_s20, 4   ;;  %s2882_s19 = smov %s2884_s21 }
 0x2b7   :  { %14 = sbr.rel (!%p12_p5) target bundleno = 2 (0x2), region = 71 }

// kernel: conv_block.2
= control target key start
LH: loop header
LB: loop body
LE: loop exit
PB: predicated region body
PF: predicated region fallthrough
CT: control target
= control target key end

     0   :  { %s1974_s12 = smov 0   ;;  %s1976_s13 = smov 0   ;;  %s2716_s0 = inlined_call_operand.vmem [shape: bf16[2,18,18,4], index: 0, kind: input, shape index: {}]   ;;  %s2717_s1 = inlined_call_operand.vmem [shape: bf16[36,128], index: 1, kind: input, shape index: {}]   ;;  %s2718_s2 = inlined_call_operand.vmem [shape: f32[1,128], index: 2, kind: input, shape index: {}]   ;;  %s2719_s3 = inlined_call_operand.vmem [shape: f32[2,1,2,128], index: 3, kind: output, shape index: {}]  }
   0x1   :  { %s1978_s14 = smov 0  }
   0x2 LB: > { %s25_s15 = sadd.s32 1, %s1940_s13  ;;  %p1724_p0 = scmp.ge.s32.totalorder %s1944_s14, 1  ;;  %s1944_s14 = sphi %s1978_s14, %s13_s14   ;;  %s1940_s13 = sphi %s1976_s13, %s2721_s13   ;;  %s1936_s12 = sphi %s1974_s12, %s2720_s12  }
   0x3   : > { %p27_p1 = scmp.ge.s32.totalorder %s25_s15, 2  ;;  %p151_p2 = scmp.lt.s32.totalorder %s1944_s14, 3 }
   0x5   : > { %s2723_s15 = smov (%p27_p1, %s25_s15), 0  ;;  %p152_p3 = pnand %p1724_p0, %p151_p2 }
   0x6   : > { %p177_p4 = scmp.lt.s32.totalorder (!%p152_p3), %s1936_s12, 1  ;;  %vm601_vm0 = vcmask (!%p152_p3), 1046528   ;;  %s1946_s20 = smov (!%p152_p3), 12   ;;  %vm376_vm1 = vsmask.f32 (!%p152_p3), 7424  ;;  %v1903_v44 = vld [vmem:[%s2717_s1] sm:$0xff] (!%p152_p3)  }
   0x7   : > { %155 = sbr.rel (%p152_p3) target bundleno = 708 (0x2c4), region = 32  ;;  %s1947_s21 = smov (!%p152_p3), 20   ;;  %1804 = vmatprep.subr.bf16.mxu0 (!%p152_p3), %v1903_v44  ;;  %v1905_v46 = vld [vmem:[%s2717_s1 + $0x8] sm:$0xff] (!%p152_p3)   ;;  %1842 = vmatprep.subr.bf16.mxu1 (!%p152_p3), %v1903_v44  ;;  %v1907_v50 = vld [vmem:[%s2717_s1 + $0x10] ss:$0 sps:$4 sm:$0x33] (!%p152_p3)  }
   0x8   : > { %s1948_s22 = smov (!%p152_p3), 8   ;;  %s1949_s23 = smov (!%p152_p3), 4   ;;  %1805 = vmatpush3.bf16.msra.mxu0 (!%p152_p3), %v1903_v44  ;;  %1845 = vmatpush3.bf16.msra.mxu1 (!%p152_p3), %v1903_v44  ;;  %vm1244_vm2 = vcmask (!%p152_p3), 1041408   ;;  %vm920_vm3 = vcmask (!%p152_p3), 31744   ;;  %vm953_vm4 = vcmask (!%p152_p3), 64512   ;;  %vm986_vm5 = vcmask (!%p152_p3), 97280  }
   0x9   : > { %s1950_s24 = smov (!%p152_p3), 16   ;;  %s1951_s27 = smov (!%p152_p3), 24   ;;  %1806 = vmatprep.subr.bf16.mxu0 (!%p152_p3), %v1905_v46  ;;  %1843 = vmatprep.subr.bf16.mxu1 (!%p152_p3), %v1905_v46  ;;  %v1246_v54 = vsel (!%p152_p3), %vm1244_vm2, %v1907_v50, 0  ;;  %vm1019_vm6 = vcmask (!%p152_p3), 130048   ;;  %vm1052_vm7 = vcmask (!%p152_p3), 162816   ;;  %vm1085_vm8 = vcmask (!%p152_p3), 195584  }
   0xa   : > { %s1952_s30 = smov (!%p152_p3), 28   ;;  %s1953_s6 = smov (!%p152_p3), 32   ;;  %vm1118_vm9 = vcmask (!%p152_p3), 228352   ;;  %vm1151_vm10 = vcmask (!%p152_p3), 261120   ;;  %vm1211_vm11 = vcmask (!%p152_p3), 293888  }
   0xc   : > { %1807 = vmatpush3.bf16.msra.mxu0 (!%p152_p3), %v1905_v46  ;;  %1846 = vmatpush3.bf16.msra.mxu1 (!%p152_p3), %v1905_v46 }
   0xd   : > { %1848 = vmatprep.subr.msk.bf16.mxu0 (!%p152_p3), %vm1244_vm2, %v1907_v50  ;;  %1849 = vmatprep.subr.msk.bf16.mxu1 (!%p152_p3), %vm1244_vm2, %v1907_v50 }
   0xe   : > { %s2725_s12 = smov (!%p177_p4, %s1936_s12), 1 }
   0xf   : > { %s1850_s16 = smul.u32 216, %s2725_s12  ;;  %s1726_s9 = sshll.u32 %s2725_s12, 1 }
  0x10   : > { %1809 = vmatpush3.bf16.msra.mxu0 %v1246_v54  ;;  %1847 = vmatpush3.bf16.msra.mxu1 %v1246_v54 }
  0x11   : > { %s1998_s19 = scalar_lea.vmem %s2716_s0, %s1850_s16  ;;  %s188_s16 = scalar_lea.vmem %s2719_s3, %s1726_s9 }
  0x12   : > { %v2001_v0 = vld [vmem:[%s1998_s19 + $0x18] sm:$0xff]   ;;  %v2004_v1 = vld [vmem:[%s1998_s19 + $0xc] sm:$0xff]   ;;  %v1885_v2 = vld [vmem:[%s1998_s19 + $0x14] ss:$0 sps:$4 sm:$0x11]  }
  0x13   : > { %689 = vrot.lane.b32.xlu1 %v2001_v0, %s1946_s20  ;;  %v2010_v3 = vld [vmem:[%s1998_s19] sm:$0xff]   ;;  %687 = vrot.lane.b32.xlu0 %v2004_v1, %s1946_s20  ;;  %v605_v4 = vrot.slane %v2004_v1, 1  ;;  %v606_v5 = vrot.slane %v1885_v2, 1  ;;  %v1887_v6 = vld [vmem:[%s1998_s19 + $0x8] ss:$0 sps:$4 sm:$0x11]  }
  0x14   : > { %v602_v7 = vrot.slane %v2010_v3, 1  ;;  %v378_v8 = vshrl.u32 %v2010_v3, 16  ;;  %v380_v9 = vshll.u32 %v2010_v3, 16  ;;  %v390_v10 = vshrl.u32 %v2004_v1, 16  ;;  %v2030_v30 = vld [vmem:[%s1998_s19 + $0x24] sm:$0xff]   ;;  %v2060_v49 = vld [vmem:[%s1998_s19 + $0x30] sm:$0xff]  }
  0x15   : > { %v607_v11 = vsel %vm601_vm0, %v605_v4, %v606_v5  ;;  %v603_v12 = vrot.slane %v1887_v6, 1  ;;  %v385_v13 = vshll.u32 %v1887_v6, 16  ;;  %v1888_v14 = vld [vmem:[%s1998_s19 + $0x20] ss:$0 sps:$4 sm:$0x11]   ;;  %v392_v15 = vshll.u32 %v2004_v1, 16 }
  0x16   : > { %v382_v16 = vrot.slane %v380_v9, 1  ;;  %v397_v17 = vshll.u32 %v1885_v2, 16  ;;  %v404_v18 = vshll.u32 %v2001_v0, 16  ;;  %v608_v23 = vrot.slane %v2001_v0, 1  ;;  %v2076_v60 = vld [vmem:[%s1998_s19 + $0x3c] sm:$0xff]  }
  0x17   : > { %769 = vrot.lane.b32.xlu0 %v607_v11, %s1947_s21  ;;  %v604_v19 = vsel %vm601_vm0, %v602_v7, %v603_v12  ;;  %v387_v20 = vrot.slane %v385_v13, 1  ;;  %v394_v21 = vrot.slane %v392_v15, 1  ;;  %v402_v25 = vshrl.u32 %v2001_v0, 16  ;;  %v1890_v33 = vld [vmem:[%s1998_s19 + $0x2c] ss:$0 sps:$4 sm:$0x11]  }
  0x18   : > { %650 = vrot.lane.b32.xlu1 %v604_v19, %s1948_s22  ;;  %v383_v22 = vor.u32 %v382_v16, %v378_v8  ;;  %v399_v24 = vrot.slane %v397_v17, 1  ;;  %v609_v26 = vrot.slane %v1888_v14, 1  ;;  %v406_v28 = vrot.slane %v404_v18, 1  ;;  %v1892_v51 = vld [vmem:[%s1998_s19 + $0x38] ss:$0 sps:$4 sm:$0x11]  }
  0x19   : > { %v395_v27 = vor.u32 %v394_v21, %v390_v10  ;;  %v409_v29 = vshll.u32 %v1888_v14, 16  ;;  %v416_v37 = vshll.u32 %v2030_v30, 16  ;;  %v414_v39 = vshrl.u32 %v2030_v30, 16  ;;  %v1894_v2 = vld [vmem:[%s1998_s19 + $0x44] ss:$0 sps:$4 sm:$0x11]  }
  0x1a   : > { %v388_v31 = vsel %vm376_vm1, %v383_v22, %v387_v20  ;;  %v610_v34 = vsel %vm601_vm0, %v608_v23, %v609_v26  ;;  %v407_v35 = vor.u32 %v406_v28, %v402_v25  ;;  %v421_v41 = vshll.u32 %v1890_v33, 16  ;;  %v2101_v14 = vld [vmem:[%s1998_s19 + $0x48] sm:$0xff]   ;;  %v1896_v16 = vld [vmem:[%s1998_s19 + $0x50] ss:$0 sps:$4 sm:$0x11]   ;;  %v2114_v23 = vld [vmem:[%s1998_s19 + $0x54] sm:$0xff]  }
  0x1b   : > { %569 = vrot.lane.b32.xlu0 %v388_v31, %s1949_s23  ;;  %v400_v32 = vsel %vm376_vm1, %v395_v27, %v399_v24  ;;  %v411_v36 = vrot.slane %v409_v29, 1  ;;  %v418_v40 = vrot.slane %v416_v37, 1  ;;  %v611_v47 = vrot.slane %v2030_v30, 1  ;;  %v1898_v27 = vld [vmem:[%s1998_s19 + $0x5c] ss:$0 sps:$4 sm:$0x11]  }
  0x1c   : > { %652 = vrot.lane.b32.xlu1 %v607_v11, %s1948_s22  ;;  %v423_v43 = vrot.slane %v421_v41, 1  ;;  %v612_v48 = vrot.slane %v1890_v33, 1  ;;  %v428_v53 = vshll.u32 %v2060_v49, 16  ;;  %v426_v55 = vshrl.u32 %v2060_v49, 16 }
  0x1d   : > { %v412_v38 = vsel %vm376_vm1, %v407_v35, %v411_v36  ;;  %v419_v42 = vor.u32 %v418_v40, %v414_v39  ;;  %v433_v57 = vshll.u32 %v1892_v51, 16  ;;  %v614_v62 = vrot.slane %v2060_v49, 1  ;;  %v2139_v39 = vld [vmem:[%s1998_s19 + $0x60] sm:$0xff]   ;;  %v1900_v41 = vld [vmem:[%s1998_s19 + $0x68] ss:$0 sps:$4 sm:$0x11]  }
  0x1e   : > { %v613_v52 = vsel %vm601_vm0, %v611_v47, %v612_v48  ;;  %v430_v56 = vrot.slane %v428_v53, 1  ;;  %v615_v63 = vrot.slane %v1892_v51, 1  ;;  %v440_v4 = vshll.u32 %v2076_v60, 16  ;;  %v2152_v48 = vld [vmem:[%s1998_s19 + $0x6c] sm:$0xff]  }
  0x1f   : > { %571 = vrot.lane.b32.xlu0 %v400_v32, %s1949_s23  ;;  %v424_v45 = vsel %vm376_vm1, %v419_v42, %v423_v43  ;;  %v435_v59 = vrot.slane %v433_v57, 1  ;;  %v438_v6 = vshrl.u32 %v2076_v60, 16  ;;  %v445_v8 = vshll.u32 %v1894_v2, 16  ;;  %v1902_v53 = vld [vmem:[%s1998_s19 + $0x74] ss:$0 sps:$4 sm:$0x11]  }
  0x20   : > { %771 = vrot.lane.b32.xlu1 %v610_v34, %s1947_s21  ;;  %v431_v58 = vor.u32 %v430_v56, %v426_v55  ;;  %v616_v5 = vsel %vm601_vm0, %v614_v62, %v615_v63  ;;  %v442_v7 = vrot.slane %v440_v4, 1  ;;  %v617_v12 = vrot.slane %v2076_v60, 1 }
  0x21   : > { %v447_v10 = vrot.slane %v445_v8, 1  ;;  %v618_v13 = vrot.slane %v1894_v2, 1  ;;  %v452_v17 = vshll.u32 %v2101_v14, 16  ;;  %v450_v18 = vshrl.u32 %v2101_v14, 16 }
  0x22   : > { %v436_v61 = vsel %vm376_vm1, %v431_v58, %v435_v59  ;;  %v443_v9 = vor.u32 %v442_v7, %v438_v6  ;;  %v457_v20 = vshll.u32 %v1896_v16, 16  ;;  %v620_v25 = vrot.slane %v2101_v14, 1 }
  0x23   : > { %734 = vrot.lane.b32.xlu0 %v400_v32, %s1950_s24  ;;  %v619_v15 = vsel %vm601_vm0, %v617_v12, %v618_v13  ;;  %v454_v19 = vrot.slane %v452_v17, 1  ;;  %v621_v26 = vrot.slane %v1896_v16, 1  ;;  %v464_v28 = vshll.u32 %v2114_v23, 16  ;;  %v1906_v13 = vld [vmem:[%s1998_s19 + $0x80] ss:$0 sps:$4 sm:$0x11]  }
  0x24   : > { %736 = vrot.lane.b32.xlu1 %v412_v38, %s1950_s24  ;;  %v448_v11 = vsel %vm376_vm1, %v443_v9, %v447_v10  ;;  %v459_v22 = vrot.slane %v457_v20, 1  ;;  %v462_v31 = vshrl.u32 %v2114_v23, 16  ;;  %v469_v33 = vshll.u32 %v1898_v27, 16  ;;  %v2177_v9 = vld [vmem:[%s1998_s19 + $0x78] sm:$0xff]  }
  0x25   : > { %v455_v21 = vor.u32 %v454_v19, %v450_v18  ;;  %v622_v29 = vsel %vm601_vm0, %v620_v25, %v621_v26  ;;  %v466_v32 = vrot.slane %v464_v28, 1  ;;  %v623_v37 = vrot.slane %v2114_v23, 1  ;;  %v2195_v28 = vld [vmem:[%s1998_s19 + $0x84] sm:$0xff]  }
  0x26   : > { %v471_v35 = vrot.slane %v469_v33, 1  ;;  %v476_v42 = vshll.u32 %v2139_v39, 16  ;;  %v474_v43 = vshrl.u32 %v2139_v39, 16  ;;  %v626_v51 = vrot.slane %v2139_v39, 1 }
  0x27   : > { %806 = vrot.lane.b32.xlu0 %v2001_v0, %s1951_s27  ;;  %v460_v24 = vsel %vm376_vm1, %v455_v21, %v459_v22  ;;  %v488_v54 = vshll.u32 %v2152_v48, 16  ;;  %v486_v56 = vshrl.u32 %v2152_v48, 16  ;;  %v493_v58 = vshll.u32 %v1902_v53, 16 }
  0x28   : > { %808 = vrot.lane.b32.xlu1 %v2030_v30, %s1951_s27  ;;  %v478_v44 = vrot.slane %v476_v42, 1  ;;  %v629_v6 = vrot.slane %v2152_v48, 1  ;;  %v630_v7 = vrot.slane %v1902_v53, 1  ;;  %v498_v19 = vshrl.u32 %v2177_v9, 16 }
  0x29   : > { %v490_v57 = vrot.slane %v488_v54, 1  ;;  %v495_v63 = vrot.slane %v493_v58, 1  ;;  %v505_v21 = vshll.u32 %v1906_v13, 16  ;;  %v632_v33 = vrot.slane %v2177_v9, 1 }
  0x2a   : > { %v479_v46 = vor.u32 %v478_v44, %v474_v43 }
  0x2b   : > { %853 = vrot.lane.b32.xlu0 %v412_v38, %s1952_s30  ;;  %v491_v62 = vor.u32 %v490_v57, %v486_v56 }
  0x2c   : > { %855 = vrot.lane.b32.xlu1 %v424_v45, %s1952_s30 }
  0x2d   : > { %v496_v4 = vsel %vm376_vm1, %v491_v62, %v495_v63 }
  0x2f   : > { %888 = vrot.lane.b32.xlu0 %v610_v34, %s1953_s6 }
  0x30   : > { %573 = vrot.lane.b32.xlu1 %v412_v38, %s1949_s23  ;;  %v624_v38 = vrot.slane %v1898_v27, 1 }
  0x32   : > { %v625_v40 = vsel %vm601_vm0, %v623_v37, %v624_v38  ;;  %v1909_v38 = vld [vmem:[%s1998_s19 + $0x8c] ss:$0 sps:$4 sm:$0x11]  }
  0x33   : > { %890 = vrot.lane.b32.xlu0 %v613_v52, %s1953_s6 }
  0x34   : > { %575 = vrot.lane.b32.xlu1 %v424_v45, %s1949_s23 }
  0x37   : > { %654 = vrot.lane.b32.xlu0 %v610_v34, %s1948_s22  ;;  %v467_v34 = vor.u32 %v466_v32, %v462_v31 }
  0x38   : > { %656 = vrot.lane.b32.xlu1 %v613_v52, %s1948_s22 }
  0x39   : > { %v472_v36 = vsel %vm376_vm1, %v467_v34, %v471_v35  ;;  %v633_v34 = vrot.slane %v1906_v13, 1 }
  0x3b   : > { %691 = vrot.lane.b32.xlu0 %v2030_v30, %s1946_s20 }
  0x3c   : > { %693 = vrot.lane.b32.xlu1 %v2060_v49, %s1946_s20 }
  0x3f   : > { %738 = vrot.lane.b32.xlu0 %v424_v45, %s1950_s24  ;;  %v481_v45 = vshll.u32 %v1900_v41, 16 }
  0x40   : > { %740 = vrot.lane.b32.xlu1 %v436_v61, %s1950_s24 }
  0x41   : > { %v483_v47 = vrot.slane %v481_v45, 1  ;;  %v634_v45 = vsel %vm601_vm0, %v632_v33, %v633_v34 }
  0x43   : > { %773 = vrot.lane.b32.xlu0 %v613_v52, %s1947_s21  ;;  %v484_v50 = vsel %vm376_vm1, %v479_v46, %v483_v47  ;;  %v627_v52 = vrot.slane %v1900_v41, 1 }
  0x44   : > { %775 = vrot.lane.b32.xlu1 %v616_v5, %s1947_s21 }
  0x45   : > { %v628_v55 = vsel %vm601_vm0, %v626_v51, %v627_v52  ;;  %v517_v52 = vshll.u32 %v1909_v38, 16 }
  0x47   : > { %810 = vrot.lane.b32.xlu0 %v2060_v49, %s1951_s27 }
  0x48   : > { %812 = vrot.lane.b32.xlu1 %v2076_v60, %s1951_s27 }
  0x4b   : > { %857 = vrot.lane.b32.xlu0 %v436_v61, %s1952_s30 }
  0x4c   : > { %859 = vrot.lane.b32.xlu1 %v448_v11, %s1952_s30 }
  0x4f   : > { %892 = vrot.lane.b32.xlu0 %v616_v5, %s1953_s6 }
  0x50   : > { %577 = vrot.lane.b32.xlu1 %v436_v61, %s1949_s23 }
  0x53   : > { %894 = vrot.lane.b32.xlu0 %v619_v15, %s1953_s6 }
  0x54   : > { %579 = vrot.lane.b32.xlu1 %v448_v11, %s1949_s23 }
  0x57   : > { %658 = vrot.lane.b32.xlu0 %v616_v5, %s1948_s22 }
  0x58   : > { %660 = vrot.lane.b32.xlu1 %v619_v15, %s1948_s22 }
  0x5b   : > { %695 = vrot.lane.b32.xlu0 %v2076_v60, %s1946_s20 }
  0x5c   : > { %697 = vrot.lane.b32.xlu1 %v2101_v14, %s1946_s20 }
  0x5f   : > { %742 = vrot.lane.b32.xlu0 %v448_v11, %s1950_s24  ;;  %v631_v11 = vsel %vm601_vm0, %v629_v6, %v630_v7  ;;  %v635_v6 = vrot.slane %v2195_v28, 1  ;;  %v636_v7 = vrot.slane %v1909_v38, 1 }
  0x60   : > { %744 = vrot.lane.b32.xlu1 %v460_v24, %s1950_s24 }
  0x63   : > { %777 = vrot.lane.b32.xlu0 %v619_v15, %s1947_s21  ;;  %v500_v15 = vshll.u32 %v2177_v9, 16 }
  0x64   : > { %779 = vrot.lane.b32.xlu1 %v622_v29, %s1947_s21 }
  0x65   : > { %v502_v20 = vrot.slane %v500_v15, 1  ;;  %v1911_v15 = vld [vmem:[%s1998_s19 + $0x98] ss:$0 sps:$4 sm:$0x11]  }
  0x67   : > { %814 = vrot.lane.b32.xlu0 %v2101_v14, %s1951_s27  ;;  %v503_v27 = vor.u32 %v502_v20, %v498_v19 }
  0x68   : > { %816 = vrot.lane.b32.xlu1 %v2114_v23, %s1951_s27 }
  0x6b   : > { %861 = vrot.lane.b32.xlu0 %v460_v24, %s1952_s30 }
  0x6c   : > { %863 = vrot.lane.b32.xlu1 %v472_v36, %s1952_s30 }
  0x6f   : > { %896 = vrot.lane.b32.xlu0 %v622_v29, %s1953_s6 }
  0x70   : > { %581 = vrot.lane.b32.xlu1 %v460_v24, %s1949_s23 }
  0x73   : > { %898 = vrot.lane.b32.xlu0 %v625_v40, %s1953_s6 }
  0x74   : > { %583 = vrot.lane.b32.xlu1 %v472_v36, %s1949_s23 }
  0x77   : > { %662 = vrot.lane.b32.xlu0 %v622_v29, %s1948_s22 }
  0x78   : > { %664 = vrot.lane.b32.xlu1 %v625_v40, %s1948_s22 }
  0x7b   : > { %699 = vrot.lane.b32.xlu0 %v2114_v23, %s1946_s20 }
  0x7c   : > { %701 = vrot.lane.b32.xlu1 %v2139_v39, %s1946_s20 }
  0x7f   : > { %746 = vrot.lane.b32.xlu0 %v472_v36, %s1950_s24 }
  0x80   : > { %748 = vrot.lane.b32.xlu1 %v484_v50, %s1950_s24 }
  0x83   : > { %781 = vrot.lane.b32.xlu0 %v625_v40, %s1947_s21  ;;  %v512_v40 = vshll.u32 %v2195_v28, 16 }
  0x84   : > { %783 = vrot.lane.b32.xlu1 %v628_v55, %s1947_s21 }
  0x85   : > { %v690_v59 = vpop.permute.xlu1 %689  ;;  %v688_v61 = vpop.permute.xlu0 %687  ;;  %v514_v51 = vrot.slane %v512_v40, 1 }
  0x87   : > { %818 = vrot.lane.b32.xlu0 %v2139_v39, %s1951_s27 }
  0x88   : > { %820 = vrot.lane.b32.xlu1 %v2152_v48, %s1951_s27 }
  0x89   : > { %v770_v2 = vpop.permute.xlu0 %769 }
  0x8a   : > { %v651_v5 = vpop.permute.xlu1 %650 }
  0x8b   : > { %865 = vrot.lane.b32.xlu0 %v484_v50, %s1952_s30 }
  0x8c   : > { %867 = vrot.lane.b32.xlu1 %v496_v4, %s1952_s30 }
  0x8d   : > { %v570_v8 = vpop.permute.xlu0 %569 }
  0x8e   : > { %v653_v10 = vpop.permute.xlu1 %652  ;;  %v922_v17 = vsel %vm920_vm3, %v2010_v3, %v570_v8  ;;  %v507_v3 = vrot.slane %v505_v21, 1  ;;  %v529_v21 = vshll.u32 %v1911_v15, 16 }
  0x8f   : > { %900 = vrot.lane.b32.xlu0 %v628_v55, %s1953_s6  ;;  %v955_v25 = vsel %vm953_vm4, %v922_v17, %v651_v5 }
  0x90   : > { %585 = vrot.lane.b32.xlu1 %v484_v50, %s1949_s23  ;;  %v988_v32 = vsel %vm986_vm5, %v955_v25, %v688_v61  ;;  %v508_v37 = vsel %vm376_vm1, %v503_v27, %v507_v3  ;;  %v510_v50 = vshrl.u32 %v2195_v28, 16  ;;  %v519_v61 = vrot.slane %v517_v52, 1  ;;  %v2248_v27 = vld [vmem:[%s1998_s19 + $0x9c] sm:$0xff]  }
  0x91   : > { %v572_v12 = vpop.permute.xlu0 %571 }
  0x92   : > { %v772_v16 = vpop.permute.xlu1 %771  ;;  %v924_v24 = vsel %vm920_vm3, %v2004_v1, %v572_v12  ;;  %v637_v12 = vsel %vm601_vm0, %v635_v6, %v636_v7  ;;  %v641_v6 = vrot.slane %v2248_v27, 1 }
  0x93   : > { %902 = vrot.lane.b32.xlu0 %v631_v11, %s1953_s6  ;;  %v957_v29 = vsel %vm953_vm4, %v924_v24, %v653_v10  ;;  %v2235_v10 = vld [vmem:[%s1998_s19 + $0x90] sm:$0xff]  }
  0x94   : > { %587 = vrot.lane.b32.xlu1 %v496_v4, %s1949_s23  ;;  %v990_v35 = vsel %vm986_vm5, %v957_v29, %v690_v59  ;;  %v515_v59 = vor.u32 %v514_v51, %v510_v50  ;;  %v522_v19 = vshrl.u32 %v2235_v10, 16 }
  0x95   : > { %v735_v18 = vpop.permute.xlu0 %734 }
  0x96   : > { %v737_v22 = vpop.permute.xlu1 %736  ;;  %v1021_v1 = vsel %vm1019_vm6, %v988_v32, %v735_v18  ;;  %v638_v32 = vrot.slane %v2235_v10, 1 }
  0x97   : > { %666 = vrot.lane.b32.xlu0 %v628_v55, %s1948_s22  ;;  %v1054_v42 = vsel %vm1052_vm7, %v1021_v1, %v770_v2  ;;  %v1023_v43 = vsel %vm1019_vm6, %v990_v35, %v737_v22  ;;  %v639_v1 = vrot.slane %v1911_v15, 1 }
  0x98   : > { %668 = vrot.lane.b32.xlu1 %v631_v11, %s1948_s22  ;;  %v1056_v55 = vsel %vm1052_vm7, %v1023_v43, %v772_v16  ;;  %v524_v16 = vshll.u32 %v2235_v10, 16 }
  0x99   : > { %v807_v26 = vpop.permute.xlu0 %806 }
  0x9a   : > { %v809_v31 = vpop.permute.xlu1 %808  ;;  %v1087_v44 = vsel %vm1085_vm8, %v1054_v42, %v807_v26  ;;  %v526_v20 = vrot.slane %v524_v16, 1  ;;  %v531_v26 = vrot.slane %v529_v21, 1  ;;  %v1915_v16 = vld [vmem:[%s1998_s19 + $0xb0] ss:$0 sps:$4 sm:$0x11]  }
  0x9b   : > { %703 = vrot.lane.b32.xlu0 %v2152_v48, %s1946_s20  ;;  %v1089_v56 = vsel %vm1085_vm8, %v1056_v55, %v809_v31 }
  0x9c   : > { %705 = vrot.lane.b32.xlu1 %v2177_v9, %s1946_s20  ;;  %v527_v25 = vor.u32 %v526_v20, %v522_v19 }
  0x9d   : > { %v854_v36 = vpop.permute.xlu0 %853 }
  0x9e   : > { %v856_v41 = vpop.permute.xlu1 %855  ;;  %v1120_v46 = vsel %vm1118_vm9, %v1087_v44, %v854_v36  ;;  %v532_v35 = vsel %vm376_vm1, %v527_v25, %v531_v26  ;;  %v1913_v36 = vld [vmem:[%s1998_s19 + $0xa4] ss:$0 sps:$4 sm:$0x11]   ;;  %v640_v44 = vsel %vm601_vm0, %v638_v32, %v639_v1 }
  0x9f   : > { %750 = vrot.lane.b32.xlu0 %v496_v4, %s1950_s24  ;;  %v1122_v57 = vsel %vm1118_vm9, %v1089_v56, %v856_v41  ;;  %v520_v4 = vsel %vm376_vm1, %v515_v59, %v519_v61  ;;  %v541_v51 = vshll.u32 %v1913_v36, 16  ;;  %v642_v7 = vrot.slane %v1913_v36, 1 }
  0xa0   : > { %752 = vrot.lane.b32.xlu1 %v508_v37, %s1950_s24 }
  0xa1   : > { %v889_v47 = vpop.permute.xlu0 %888  ;;  %v543_v61 = vrot.slane %v541_v51, 1 }
  0xa2   : > { %v574_v53 = vpop.permute.xlu1 %573  ;;  %v1153_v54 = vsel %vm1151_vm10, %v1120_v46, %v889_v47 }
  0xa3   : > { %785 = vrot.lane.b32.xlu0 %v631_v11, %s1947_s21  ;;  %1810 = vmatprep.mubr.msk.bf16.mxu0 %vm1211_vm11, %v1153_v54  ;;  %v926_v29 = vsel %vm920_vm3, %v2001_v0, %v574_v53 }
  0xa4   : > { %787 = vrot.lane.b32.xlu1 %v634_v45, %s1947_s21 }
  0xa5   : > { %v891_v58 = vpop.permute.xlu0 %890 }
  0xa6   : > { %v576_v62 = vpop.permute.xlu1 %575  ;;  %v1155_v63 = vsel %vm1151_vm10, %v1122_v57, %v891_v58 }
  0xa7   : > { %822 = vrot.lane.b32.xlu0 %v2177_v9, %s1951_s27  ;;  %1811 = vmatmul.mubr.msk.bf16.vlgmr.msra.gmra.mrb[0].mxu0 %vm1211_vm11, %v1155_v63  ;;  %v928_v40 = vsel %vm920_vm3, %v2030_v30, %v576_v62 }
  0xa8   : > { %824 = vrot.lane.b32.xlu1 %v2195_v28, %s1951_s27 }
  0xa9   : > { %v655_v2 = vpop.permute.xlu0 %654 }
  0xaa   : > { %v657_v5 = vpop.permute.xlu1 %656  ;;  %v959_v31 = vsel %vm953_vm4, %v926_v29, %v655_v2  ;;  %v2306_v29 = vld [vmem:[%s1998_s19 + $0xb4] sm:$0xff]  }
  0xab   : > { %869 = vrot.lane.b32.xlu0 %v508_v37, %s1952_s30  ;;  %v961_v42 = vsel %vm953_vm4, %v928_v40, %v657_v5 }
  0xac   : > { %871 = vrot.lane.b32.xlu1 %v520_v4, %s1952_s30 }
  0xad   : > { %v692_v8 = vpop.permute.xlu0 %691 }
  0xae   : > { %v694_v11 = vpop.permute.xlu1 %693  ;;  %v992_v33 = vsel %vm986_vm5, %v959_v31, %v692_v8 }
  0xaf   : > { %904 = vrot.lane.b32.xlu0 %v634_v45, %s1953_s6  ;;  %v994_v46 = vsel %vm986_vm5, %v961_v42, %v694_v11  ;;  %v2293_v11 = vld [vmem:[%s1998_s19 + $0xa8] sm:$0xff]  }
  0xb0   : > { %589 = vrot.lane.b32.xlu1 %v508_v37, %s1949_s23  ;;  %v536_v37 = vshll.u32 %v2248_v27, 16  ;;  %v546_v20 = vshrl.u32 %v2293_v11, 16 }
  0xb1   : > { %v739_v13 = vpop.permute.xlu0 %738 }
  0xb2   : > { %v741_v17 = vpop.permute.xlu1 %740  ;;  %v1025_v0 = vsel %vm1019_vm6, %v992_v33, %v739_v13  ;;  %v538_v30 = vrot.slane %v536_v37, 1  ;;  %v643_v13 = vsel %vm601_vm0, %v641_v6, %v642_v7  ;;  %v644_v33 = vrot.slane %v2293_v11, 1 }
  0xb3   : > { %906 = vrot.lane.b32.xlu0 %v637_v12, %s1953_s6  ;;  %v1027_v52 = vsel %vm1019_vm6, %v994_v46, %v741_v17  ;;  %v548_v17 = vshll.u32 %v2293_v11, 16  ;;  %v558_v46 = vshrl.u32 %v2306_v29, 16  ;;  %v647_v6 = vrot.slane %v2306_v29, 1 }
  0xb4   : > { %591 = vrot.lane.b32.xlu1 %v520_v4, %s1949_s23 }
  0xb5   : > { %v774_v18 = vpop.permute.xlu0 %773  ;;  %v550_v21 = vrot.slane %v548_v17, 1  ;;  %v1919_v17 = vld [vmem:[%s1998_s19 + $0xc8] ss:$0 sps:$4 sm:$0x11]  }
  0xb6   : > { %v776_v22 = vpop.permute.xlu1 %775  ;;  %v1058_v41 = vsel %vm1052_vm7, %v1025_v0, %v774_v18  ;;  %v1917_v0 = vld [vmem:[%s1998_s19 + $0xbc] ss:$0 sps:$4 sm:$0x11]  }
  0xb7   : > { %670 = vrot.lane.b32.xlu0 %v634_v45, %s1948_s22  ;;  %v534_v45 = vshrl.u32 %v2248_v27, 16  ;;  %v1060_v55 = vsel %vm1052_vm7, %v1027_v52, %v776_v22  ;;  %v553_v22 = vshll.u32 %v1915_v16, 16  ;;  %v551_v26 = vor.u32 %v550_v21, %v546_v20 }
  0xb8   : > { %672 = vrot.lane.b32.xlu1 %v637_v12, %s1948_s22  ;;  %v565_v51 = vshll.u32 %v1917_v0, 16  ;;  %v648_v7 = vrot.slane %v1917_v0, 1 }
  0xb9   : > { %v811_v24 = vpop.permute.xlu0 %810  ;;  %v539_v59 = vor.u32 %v538_v30, %v534_v45 }
  0xba   : > { %v813_v3 = vpop.permute.xlu1 %812  ;;  %v1091_v43 = vsel %vm1085_vm8, %v1058_v41, %v811_v24 }
  0xbb   : > { %707 = vrot.lane.b32.xlu0 %v2195_v28, %s1946_s20  ;;  %v1093_v56 = vsel %vm1085_vm8, %v1060_v55, %v813_v3  ;;  %v555_v3 = vrot.slane %v553_v22, 1 }
  0xbc   : > { %709 = vrot.lane.b32.xlu1 %v2235_v10, %s1946_s20 }
  0xbd   : > { %v858_v34 = vpop.permute.xlu0 %857  ;;  %v556_v37 = vsel %vm376_vm1, %v551_v26, %v555_v3 }
  0xbe   : > { %v860_v38 = vpop.permute.xlu1 %859  ;;  %v1124_v47 = vsel %vm1118_vm9, %v1091_v43, %v858_v34  ;;  %v645_v34 = vrot.slane %v1915_v16, 1 }
  0xbf   : > { %754 = vrot.lane.b32.xlu0 %v520_v4, %s1950_s24  ;;  %v1126_v57 = vsel %vm1118_vm9, %v1093_v56, %v860_v38  ;;  %v544_v4 = vsel %vm376_vm1, %v539_v59, %v543_v61  ;;  %v560_v38 = vshll.u32 %v2306_v29, 16  ;;  %v567_v61 = vrot.slane %v565_v51, 1 }
  0xc0   : > { %756 = vrot.lane.b32.xlu1 %v532_v35, %s1950_s24  ;;  %v646_v45 = vsel %vm601_vm0, %v644_v33, %v645_v34 }
  0xc1   : > { %v893_v50 = vpop.permute.xlu0 %892 }
  0xc2   : > { %v578_v53 = vpop.permute.xlu1 %577  ;;  %v1157_v54 = vsel %vm1151_vm10, %v1124_v47, %v893_v50 }
  0xc3   : > { %789 = vrot.lane.b32.xlu0 %v637_v12, %s1947_s21  ;;  %1814 = vmatprep.mubr.msk.bf16.mxu0 %vm1211_vm11, %v1157_v54  ;;  %v930_v32 = vsel %vm920_vm3, %v2060_v49, %v578_v53 }
  0xc4   : > { %791 = vrot.lane.b32.xlu1 %v640_v44, %s1947_s21 }
  0xc5   : > { %v895_v58 = vpop.permute.xlu0 %894 }
  0xc6   : > { %v580_v62 = vpop.permute.xlu1 %579  ;;  %v1159_v63 = vsel %vm1151_vm10, %v1126_v57, %v895_v58 }
  0xc7   : > { %826 = vrot.lane.b32.xlu0 %v2235_v10, %s1951_s27  ;;  %1815 = vmatmul.mubr.msk.bf16.gmra.mrb[4].mxu0 %vm1211_vm11, %v1159_v63  ;;  %v932_v41 = vsel %vm920_vm3, %v2076_v60, %v580_v62  ;;  %v562_v60 = vrot.slane %v560_v38, 1 }
  0xc8   : > { %828 = vrot.lane.b32.xlu1 %v2248_v27, %s1951_s27 }
  0xc9   : > { %v659_v2 = vpop.permute.xlu0 %658  ;;  %v563_v59 = vor.u32 %v562_v60, %v558_v46 }
  0xca   : > { %v661_v5 = vpop.permute.xlu1 %660  ;;  %v963_v1 = vsel %vm953_vm4, %v930_v32, %v659_v2  ;;  %v1920_v32 = vld [vmem:[%s1998_s19 + $0xcc] sm:$0xff]  }
  0xcb   : > { %873 = vrot.lane.b32.xlu0 %v532_v35, %s1952_s30  ;;  %v965_v43 = vsel %vm953_vm4, %v932_v41, %v661_v5 }
  0xcc   : > { %875 = vrot.lane.b32.xlu1 %v544_v4, %s1952_s30 }
  0xcd   : > { %v696_v8 = vpop.permute.xlu0 %695 }
  0xce   : > { %v698_v12 = vpop.permute.xlu1 %697 }
  0xcf   : > { %908 = vrot.lane.b32.xlu0 %v640_v44, %s1953_s6  ;;  %v998_v47 = vsel %vm986_vm5, %v965_v43, %v698_v12  ;;  %v2351_v12 = vld [vmem:[%s1998_s19 + $0xc0] sm:$0xff]  }
  0xd0   : > { %593 = vrot.lane.b32.xlu1 %v532_v35, %s1949_s23  ;;  %v996_v35 = vsel %vm986_vm5, %v963_v1, %v696_v8  ;;  %v723_v21 = vshrl.u32 %v2351_v12, 16 }
  0xd1   : > { %v743_v15 = vpop.permute.xlu0 %742 }
  0xd2   : > { %v745_v18 = vpop.permute.xlu1 %744  ;;  %v1029_v49 = vsel %vm1019_vm6, %v996_v35, %v743_v15  ;;  %v649_v15 = vsel %vm601_vm0, %v647_v6, %v648_v7  ;;  %v766_v35 = vrot.slane %v2351_v12, 1 }
  0xd3   : > { %910 = vrot.lane.b32.xlu0 %v643_v13, %s1953_s6  ;;  %v1031_v52 = vsel %vm1019_vm6, %v998_v47, %v745_v18  ;;  %v725_v18 = vshll.u32 %v2351_v12, 16  ;;  %v842_v47 = vshrl.u32 %v1920_v32, 16 }
  0xd4   : > { %595 = vrot.lane.b32.xlu1 %v544_v4, %s1949_s23 }
  0xd5   : > { %v778_v19 = vpop.permute.xlu0 %777  ;;  %v727_v22 = vrot.slane %v725_v18, 1 }
  0xd6   : > { %v780_v24 = vpop.permute.xlu1 %779  ;;  %v1062_v42 = vsel %vm1052_vm7, %v1029_v49, %v778_v19  ;;  %v1921_v49 = vld [vmem:[%s1998_s19 + $0xd4] ss:$0 sps:$4 sm:$0x11]  }
  0xd7   : > { %674 = vrot.lane.b32.xlu0 %v640_v44, %s1948_s22  ;;  %v1064_v55 = vsel %vm1052_vm7, %v1031_v52, %v780_v24  ;;  %v730_v24 = vshll.u32 %v1919_v17, 16  ;;  %v728_v3 = vor.u32 %v727_v22, %v723_v21  ;;  %v886_v6 = vrot.slane %v1921_v49, 1 }
  0xd8   : > { %676 = vrot.lane.b32.xlu1 %v643_v13, %s1948_s22 }
  0xd9   : > { %v815_v25 = vpop.permute.xlu0 %814 }
  0xda   : > { %v817_v31 = vpop.permute.xlu1 %816  ;;  %v1095_v44 = vsel %vm1085_vm8, %v1062_v42, %v815_v25 }
  0xdb   : > { %711 = vrot.lane.b32.xlu0 %v2248_v27, %s1946_s20  ;;  %v1097_v56 = vsel %vm1085_vm8, %v1064_v55, %v817_v31  ;;  %v732_v31 = vrot.slane %v730_v24, 1 }
  0xdc   : > { %713 = vrot.lane.b32.xlu1 %v2293_v11, %s1946_s20 }
  0xdd   : > { %v862_v36 = vpop.permute.xlu0 %861  ;;  %v733_v38 = vsel %vm376_vm1, %v728_v3, %v732_v31 }
  0xde   : > { %v864_v40 = vpop.permute.xlu1 %863  ;;  %v1128_v50 = vsel %vm1118_vm9, %v1095_v44, %v862_v36  ;;  %v767_v36 = vrot.slane %v1919_v17, 1 }
  0xdf   : > { %758 = vrot.lane.b32.xlu0 %v544_v4, %s1950_s24  ;;  %v1130_v57 = vsel %vm1118_vm9, %v1097_v56, %v864_v40  ;;  %v568_v4 = vsel %vm376_vm1, %v563_v59, %v567_v61  ;;  %v844_v40 = vshll.u32 %v1920_v32, 16 }
  0xe0   : > { %760 = vrot.lane.b32.xlu1 %v556_v37, %s1950_s24  ;;  %v768_v46 = vsel %vm601_vm0, %v766_v35, %v767_v36 }
  0xe1   : > { %v897_v30 = vpop.permute.xlu0 %896  ;;  %v846_v51 = vrot.slane %v844_v40, 1 }
  0xe2   : > { %v582_v53 = vpop.permute.xlu1 %581  ;;  %v1161_v54 = vsel %vm1151_vm10, %v1128_v50, %v897_v30 }
  0xe3   : > { %793 = vrot.lane.b32.xlu0 %v643_v13, %s1947_s21  ;;  %1818 = vmatprep.mubr.msk.bf16.mxu0 %vm1211_vm11, %v1161_v54  ;;  %v934_v33 = vsel %vm920_vm3, %v2101_v14, %v582_v53  ;;  %v847_v59 = vor.u32 %v846_v51, %v842_v47 }
  0xe4   : > { %795 = vrot.lane.b32.xlu1 %v646_v45, %s1947_s21 }
  0xe5   : > { %v899_v58 = vpop.permute.xlu0 %898 }
  0xe6   : > { %v584_v62 = vpop.permute.xlu1 %583  ;;  %v1163_v63 = vsel %vm1151_vm10, %v1130_v57, %v899_v58 }
  0xe7   : > { %830 = vrot.lane.b32.xlu0 %v2293_v11, %s1951_s27  ;;  %1819 = vmatmul.mubr.msk.bf16.gmra.mrb[8].mxu0 %vm1211_vm11, %v1163_v63  ;;  %v936_v42 = vsel %vm920_vm3, %v2114_v23, %v584_v62  ;;  %v849_v23 = vshll.u32 %v1921_v49, 16 }
  0xe8   : > { %832 = vrot.lane.b32.xlu1 %v2306_v29, %s1951_s27 }
  0xe9   : > { %v663_v2 = vpop.permute.xlu0 %662  ;;  %v851_v61 = vrot.slane %v849_v23, 1 }
  0xea   : > { %v665_v5 = vpop.permute.xlu1 %664  ;;  %v967_v34 = vsel %vm953_vm4, %v934_v33, %v663_v2 }
  0xeb   : > { %877 = vrot.lane.b32.xlu0 %v556_v37, %s1952_s30  ;;  %v969_v44 = vsel %vm953_vm4, %v936_v42, %v665_v5  ;;  %v885_v5 = vrot.slane %v1920_v32, 1 }
  0xec   : > { %879 = vrot.lane.b32.xlu1 %v568_v4, %s1952_s30 }
  0xed   : > { %v700_v8 = vpop.permute.xlu0 %699 }
  0xee   : > { %v702_v13 = vpop.permute.xlu1 %701 }
  0xef   : > { %912 = vrot.lane.b32.xlu0 %v646_v45, %s1953_s6  ;;  %v1002_v50 = vsel %vm986_vm5, %v969_v44, %v702_v13  ;;  %v887_v13 = vsel %vm601_vm0, %v885_v5, %v886_v6 }
  0xf0   : > { %597 = vrot.lane.b32.xlu1 %v556_v37, %s1949_s23  ;;  %v1000_v37 = vsel %vm986_vm5, %v967_v34, %v700_v8 }
  0xf1   : > { %v747_v16 = vpop.permute.xlu0 %746 }
  0xf2   : > { %v749_v19 = vpop.permute.xlu1 %748  ;;  %v1033_v14 = vsel %vm1019_vm6, %v1000_v37, %v747_v16 }
  0xf3   : > { %914 = vrot.lane.b32.xlu0 %v649_v15, %s1953_s6  ;;  %v1035_v52 = vsel %vm1019_vm6, %v1002_v50, %v749_v19 }
  0xf4   : > { %599 = vrot.lane.b32.xlu1 %v568_v4, %s1949_s23 }
  0xf5   : > { %v782_v20 = vpop.permute.xlu0 %781 }
  0xf6   : > { %v784_v25 = vpop.permute.xlu1 %783  ;;  %v1066_v43 = vsel %vm1052_vm7, %v1033_v14, %v782_v20 }
  0xf7   : > { %678 = vrot.lane.b32.xlu0 %v646_v45, %s1948_s22  ;;  %v1068_v55 = vsel %vm1052_vm7, %v1035_v52, %v784_v25 }
  0xf8   : > { %680 = vrot.lane.b32.xlu1 %v649_v15, %s1948_s22 }
  0xf9   : > { %v819_v26 = vpop.permute.xlu0 %818 }
  0xfa   : > { %v821_v1 = vpop.permute.xlu1 %820  ;;  %v1099_v45 = vsel %vm1085_vm8, %v1066_v43, %v819_v26 }
  0xfb   : > { %715 = vrot.lane.b32.xlu0 %v2306_v29, %s1946_s20  ;;  %v1101_v56 = vsel %vm1085_vm8, %v1068_v55, %v821_v1 }
  0xfc   : > { %717 = vrot.lane.b32.xlu1 %v2351_v12, %s1946_s20 }
  0xfd   : > { %v866_v0 = vpop.permute.xlu0 %865 }
  0xfe   : > { %v868_v41 = vpop.permute.xlu1 %867  ;;  %v1132_v30 = vsel %vm1118_vm9, %v1099_v45, %v866_v0 }
  0xff   : > { %762 = vrot.lane.b32.xlu0 %v568_v4, %s1950_s24  ;;  %v1134_v57 = vsel %vm1118_vm9, %v1101_v56, %v868_v41  ;;  %v852_v4 = vsel %vm376_vm1, %v847_v59, %v851_v61 }
 0x100   : > { %764 = vrot.lane.b32.xlu1 %v733_v38, %s1950_s24 }
 0x101   : > { %v901_v60 = vpop.permute.xlu0 %900 }
 0x102   : > { %v586_v53 = vpop.permute.xlu1 %585  ;;  %v1165_v54 = vsel %vm1151_vm10, %v1132_v30, %v901_v60 }
 0x103   : > { %797 = vrot.lane.b32.xlu0 %v649_v15, %s1947_s21  ;;  %1822 = vmatprep.mubr.msk.bf16.mxu0 %vm1211_vm11, %v1165_v54  ;;  %v938_v21 = vsel %vm920_vm3, %v2139_v39, %v586_v53 }
 0x104   : > { %799 = vrot.lane.b32.xlu1 %v768_v46, %s1947_s21 }
 0x105   : > { %v903_v58 = vpop.permute.xlu0 %902 }
 0x106   : > { %v588_v62 = vpop.permute.xlu1 %587  ;;  %v1167_v63 = vsel %vm1151_vm10, %v1134_v57, %v903_v58 }
 0x107   : > { %834 = vrot.lane.b32.xlu0 %v2351_v12, %s1951_s27  ;;  %1823 = vmatmul.mubr.msk.bf16.gmra.mrb[12].mxu0 %vm1211_vm11, %v1167_v63  ;;  %v940_v31 = vsel %vm920_vm3, %v2152_v48, %v588_v62 }
 0x108   : > { %836 = vrot.lane.b32.xlu1 %v1920_v32, %s1951_s27 }
 0x109   : > { %v667_v2 = vpop.permute.xlu0 %666 }
 0x10a   : > { %v669_v7 = vpop.permute.xlu1 %668  ;;  %v971_v22 = vsel %vm953_vm4, %v938_v21, %v667_v2 }
 0x10b   : > { %881 = vrot.lane.b32.xlu0 %v733_v38, %s1952_s30  ;;  %v973_v1 = vsel %vm953_vm4, %v940_v31, %v669_v7 }
 0x10c   : > { %883 = vrot.lane.b32.xlu1 %v852_v4, %s1952_s30 }
 0x10d   : > { %v704_v8 = vpop.permute.xlu0 %703 }
 0x10e   : > { %v706_v15 = vpop.permute.xlu1 %705  ;;  %v1004_v24 = vsel %vm986_vm5, %v971_v22, %v704_v8 }
 0x10f   : > { %916 = vrot.lane.b32.xlu0 %v768_v46, %s1953_s6  ;;  %v1006_v34 = vsel %vm986_vm5, %v973_v1, %v706_v15 }
 0x110   : > { %918 = vrot.lane.b32.xlu1 %v887_v13, %s1953_s6 }
 0x111   : > { %v751_v12 = vpop.permute.xlu0 %750 }
 0x112   : > { %v753_v16 = vpop.permute.xlu1 %752  ;;  %v1037_v26 = vsel %vm1019_vm6, %v1004_v24, %v751_v12 }
 0x113   : > { %v1039_v36 = vsel %vm1019_vm6, %v1006_v34, %v753_v16 }
 0x115   : > { %v786_v17 = vpop.permute.xlu0 %785 }
 0x116   : > { %v788_v18 = vpop.permute.xlu1 %787  ;;  %v1070_v32 = vsel %vm1052_vm7, %v1037_v26, %v786_v17 }
 0x117   : > { %v1072_v38 = vsel %vm1052_vm7, %v1039_v36, %v788_v18 }
 0x119   : > { %v823_v19 = vpop.permute.xlu0 %822 }
 0x11a   : > { %v825_v20 = vpop.permute.xlu1 %824  ;;  %v1103_v33 = vsel %vm1085_vm8, %v1070_v32, %v823_v19 }
 0x11b   : > { %v1105_v48 = vsel %vm1085_vm8, %v1072_v38, %v825_v20 }
 0x11d   : > { %v870_v25 = vpop.permute.xlu0 %869 }
 0x11e   : > { %v872_v3 = vpop.permute.xlu1 %871  ;;  %v1136_v39 = vsel %vm1118_vm9, %v1103_v33, %v870_v25 }
 0x11f   : > { %v1138_v49 = vsel %vm1118_vm9, %v1105_v48, %v872_v3 }
 0x121   : > { %v905_v35 = vpop.permute.xlu0 %904 }
 0x122   : > { %v590_v37 = vpop.permute.xlu1 %589  ;;  %v1169_v0 = vsel %vm1151_vm10, %v1136_v39, %v905_v35 }
 0x123   : > { %1826 = vmatprep.mubr.msk.bf16.mxu1 %vm1211_vm11, %v1169_v0  ;;  %v942_v23 = vsel %vm920_vm3, %v2177_v9, %v590_v37 }
 0x125   : > { %v907_v40 = vpop.permute.xlu0 %906 }
 0x126   : > { %v592_v14 = vpop.permute.xlu1 %591  ;;  %v1171_v41 = vsel %vm1151_vm10, %v1138_v49, %v907_v40 }
 0x127   : > { %1827 = vmatmul.mubr.msk.bf16.vlgmr.msra.gmra.mrb[0].mxu1 %vm1211_vm11, %v1171_v41  ;;  %v944_v57 = vsel %vm920_vm3, %v2195_v28, %v592_v14 }
 0x129   : > { %v671_v42 = vpop.permute.xlu0 %670 }
 0x12a   : > { %v673_v43 = vpop.permute.xlu1 %672  ;;  %v975_v52 = vsel %vm953_vm4, %v942_v23, %v671_v42 }
 0x12b   : > { %v977_v59 = vsel %vm953_vm4, %v944_v57, %v673_v43 }
 0x12d   : > { %v708_v44 = vpop.permute.xlu0 %707 }
 0x12e   : > { %v710_v45 = vpop.permute.xlu1 %709  ;;  %v1008_v53 = vsel %vm986_vm5, %v975_v52, %v708_v44 }
 0x12f   : > { %v1010_v62 = vsel %vm986_vm5, %v977_v59, %v710_v45 }
 0x131   : > { %v755_v46 = vpop.permute.xlu0 %754 }
 0x132   : > { %v757_v47 = vpop.permute.xlu1 %756  ;;  %v1041_v55 = vsel %vm1019_vm6, %v1008_v53, %v755_v46 }
 0x133   : > { %v1043_v2 = vsel %vm1019_vm6, %v1010_v62, %v757_v47 }
 0x135   : > { %v790_v50 = vpop.permute.xlu0 %789 }
 0x136   : > { %v792_v30 = vpop.permute.xlu1 %791  ;;  %v1074_v58 = vsel %vm1052_vm7, %v1041_v55, %v790_v50 }
 0x137   : > { %v1076_v6 = vsel %vm1052_vm7, %v1043_v2, %v792_v30 }
 0x139   : > { %v827_v60 = vpop.permute.xlu0 %826 }
 0x13a   : > { %v829_v51 = vpop.permute.xlu1 %828  ;;  %v1107_v61 = vsel %vm1085_vm8, %v1074_v58, %v827_v60 }
 0x13b   : > { %v1109_v28 = vsel %vm1085_vm8, %v1076_v6, %v829_v51 }
 0x13d   : > { %v874_v54 = vpop.permute.xlu0 %873 }
 0x13e   : > { %v876_v56 = vpop.permute.xlu1 %875  ;;  %v1140_v9 = vsel %vm1118_vm9, %v1107_v61, %v874_v54 }
 0x13f   : > { %v1142_v7 = vsel %vm1118_vm9, %v1109_v28, %v876_v56 }
 0x141   : > { %v909_v63 = vpop.permute.xlu0 %908 }
 0x142   : > { %v594_v4 = vpop.permute.xlu1 %593  ;;  %v1173_v5 = vsel %vm1151_vm10, %v1140_v9, %v909_v63 }
 0x143   : > { %1830 = vmatprep.mubr.msk.bf16.mxu1 %vm1211_vm11, %v1173_v5  ;;  %v946_v26 = vsel %vm920_vm3, %v2235_v10, %v594_v4 }
 0x145   : > { %v911_v8 = vpop.permute.xlu0 %910 }
 0x146   : > { %v596_v13 = vpop.permute.xlu1 %595  ;;  %v1175_v15 = vsel %vm1151_vm10, %v1142_v7, %v911_v8 }
 0x147   : > { %1831 = vmatmul.mubr.msk.bf16.gmra.mrb[4].mxu1 %vm1211_vm11, %v1175_v15  ;;  %v948_v34 = vsel %vm920_vm3, %v2248_v27, %v596_v13 }
 0x149   : > { %v675_v12 = vpop.permute.xlu0 %674 }
 0x14a   : > { %v677_v16 = vpop.permute.xlu1 %676  ;;  %v979_v3 = vsel %vm953_vm4, %v946_v26, %v675_v12 }
 0x14b   : > { %v981_v35 = vsel %vm953_vm4, %v948_v34, %v677_v16 }
 0x14d   : > { %v712_v17 = vpop.permute.xlu0 %711 }
 0x14e   : > { %v714_v18 = vpop.permute.xlu1 %713  ;;  %v1012_v31 = vsel %vm986_vm5, %v979_v3, %v712_v17 }
 0x14f   : > { %v1014_v37 = vsel %vm986_vm5, %v981_v35, %v714_v18 }
 0x151   : > { %v759_v19 = vpop.permute.xlu0 %758 }
 0x152   : > { %v761_v20 = vpop.permute.xlu1 %760  ;;  %v1045_v1 = vsel %vm1019_vm6, %v1012_v31, %v759_v19 }
 0x153   : > { %v1047_v38 = vsel %vm1019_vm6, %v1014_v37, %v761_v20 }
 0x155   : > { %v794_v21 = vpop.permute.xlu0 %793 }
 0x156   : > { %v796_v22 = vpop.permute.xlu1 %795  ;;  %v1078_v39 = vsel %vm1052_vm7, %v1045_v1, %v794_v21  ;;  %v2494_v1 = vld [vmem:[%s2718_s2] ss:$0 sm:$0xff] }
 0x157   : > { %v1080_v40 = vsel %vm1052_vm7, %v1047_v38, %v796_v22 }
 0x159   : > { %v831_v24 = vpop.permute.xlu0 %830 }
 0x15a   : > { %v833_v25 = vpop.permute.xlu1 %832  ;;  %v1111_v36 = vsel %vm1085_vm8, %v1078_v39, %v831_v24 }
 0x15b   : > { %v1113_v27 = vsel %vm1085_vm8, %v1080_v40, %v833_v25 }
 0x15d   : > { %v878_v32 = vpop.permute.xlu0 %877 }
 0x15e   : > { %v880_v33 = vpop.permute.xlu1 %879  ;;  %v1144_v10 = vsel %vm1118_vm9, %v1111_v36, %v878_v32 }
 0x15f   : > { %v1146_v14 = vsel %vm1118_vm9, %v1113_v27, %v880_v33 }
 0x161   : > { %v913_v0 = vpop.permute.xlu0 %912 }
 0x162   : > { %v598_v48 = vpop.permute.xlu1 %597  ;;  %v1177_v49 = vsel %vm1151_vm10, %v1144_v10, %v913_v0 }
 0x163   : > { %1834 = vmatprep.mubr.msk.bf16.mxu1 %vm1211_vm11, %v1177_v49  ;;  %v950_v54 = vsel %vm920_vm3, %v2293_v11, %v598_v48 }
 0x165   : > { %v915_v41 = vpop.permute.xlu0 %914 }
 0x166   : > { %v600_v42 = vpop.permute.xlu1 %599  ;;  %v1179_v43 = vsel %vm1151_vm10, %v1146_v14, %v915_v41 }
 0x167   : > { %1835 = vmatmul.mubr.msk.bf16.gmra.mrb[8].mxu1 %vm1211_vm11, %v1179_v43  ;;  %v952_v56 = vsel %vm920_vm3, %v2306_v29, %v600_v42 }
 0x169   : > { %v679_v44 = vpop.permute.xlu0 %678 }
 0x16a   : > { %v681_v45 = vpop.permute.xlu1 %680  ;;  %v983_v57 = vsel %vm953_vm4, %v950_v54, %v679_v44 }
 0x16b   : > { %v985_v59 = vsel %vm953_vm4, %v952_v56, %v681_v45 }
 0x16d   : > { %v716_v46 = vpop.permute.xlu0 %715 }
 0x16e   : > { %v718_v47 = vpop.permute.xlu1 %717  ;;  %v1016_v61 = vsel %vm986_vm5, %v983_v57, %v716_v46 }
 0x16f   : > { %v1018_v63 = vsel %vm986_vm5, %v985_v59, %v718_v47 }
 0x171   : > { %v763_v50 = vpop.permute.xlu0 %762 }
 0x172   : > { %v765_v30 = vpop.permute.xlu1 %764  ;;  %v1049_v2 = vsel %vm1019_vm6, %v1016_v61, %v763_v50 }
 0x173   : > { %v1051_v11 = vsel %vm1019_vm6, %v1018_v63, %v765_v30 }
 0x175   : > { %v798_v60 = vpop.permute.xlu0 %797 }
 0x176   : > { %v800_v51 = vpop.permute.xlu1 %799  ;;  %v1082_v5 = vsel %vm1052_vm7, %v1049_v2, %v798_v60 }
 0x177   : > { %v1084_v29 = vsel %vm1052_vm7, %v1051_v11, %v800_v51 }
 0x179   : > { %v835_v23 = vpop.permute.xlu0 %834 }
 0x17a   : > { %v837_v52 = vpop.permute.xlu1 %836  ;;  %v1812_v53 = vpop.f32.mrb[0].mxu0  ;;  %v1115_v6 = vsel %vm1085_vm8, %v1082_v5, %v835_v23 }
 0x17b   : > { %v1282_v55 = vpop.f32.mrb[1].mxu0  ;;  %v1117_v28 = vsel %vm1085_vm8, %v1084_v29, %v837_v52  ;;  %v1291_v35 = vadd.f32 %v1812_v53, %v2494_v1 }
 0x17c   : > { %v1813_v58 = vpop.f32.mrb[2].mxu0  ;;  %v1283_v34 = vadd.f32 %v2494_v1, %v1282_v55 }
 0x17d   : > { %v1285_v62 = vpop.f32.mrb[3].mxu0  ;;  %v882_v9 = vpop.permute.xlu0 %881  ;;  %v1443_v10 = vmul.f32 0.01, %v1291_v35  ;;  %v1294_v38 = vadd.f32 %v1813_v58, %v2494_v1  ;;  %vm1411_vm14 = vcmp.ge.f32.partialorder %v1291_v35, 0.0 }
 0x17e   : > { %v884_v4 = vpop.permute.xlu1 %883  ;;  %v1148_v7 = vsel %vm1118_vm9, %v1115_v6, %v882_v9  ;;  %v1286_v33 = vadd.f32 %v2494_v1, %v1285_v62  ;;  %v1441_v36 = vmul.f32 0.01, %v1283_v34  ;;  %vm1409_vm13 = vcmp.ge.f32.partialorder %v1283_v34, 0.0 }
 0x17f   : > { %v1150_v13 = vsel %vm1118_vm9, %v1117_v28, %v884_v4  ;;  %v2507_v40 = vsel %vm1411_vm14, %v1291_v35, %v1443_v10  ;;  %v1444_v27 = vmul.f32 0.01, %v1294_v38  ;;  %vm1412_vm15 = vcmp.ge.f32.partialorder %v1294_v38, 0.0 }
 0x180   : > { %v1442_v39 = vmul.f32 0.01, %v1286_v33  ;;  %vm1410_vm12 = vcmp.ge.f32.partialorder %v1286_v33, 0.0  ;;  %v2501_v0 = vsel %vm1409_vm13, %v1283_v34, %v1441_v36 }
 0x181   : > { %v917_v8 = vpop.permute.xlu0 %916  ;;  %v2511_v43 = vsel %vm1412_vm15, %v1294_v38, %v1444_v27 }
 0x182   : > { %v919_v15 = vpop.permute.xlu1 %918  ;;  %v1181_v12 = vsel %vm1151_vm10, %v1148_v7, %v917_v8  ;;  %v2499_v37 = vsel %vm1410_vm12, %v1286_v33, %v1442_v39 }
 0x183   : > { %v1183_v16 = vsel %vm1151_vm10, %v1150_v13, %v919_v15  ;;  %1838 = vmatprep.mubr.msk.bf16.mxu1 %vm1211_vm11, %v1181_v12  ;;  %v1505_v49 = vadd.f32 %v2499_v37, %v2501_v0 }
 0x184   : > { %1839 = vmatmul.mubr.msk.bf16.gmra.mrb[12].mxu1 %vm1211_vm11, %v1183_v16 }
 0x185   : > { %v1506_v42 = vadd.f32 %v1505_v49, %v2507_v40 }
 0x187   : > { %v1507_v46 = vadd.f32 %v1506_v42, %v2511_v43 }
 0x19a   : > { %v1816_v17 = vpop.f32.mrb[4].mxu0 }
 0x19b   : > { %v1298_v18 = vpop.f32.mrb[5].mxu0  ;;  %v1307_v47 = vadd.f32 %v1816_v17, %v2494_v1 }
 0x19c   : > { %v1817_v19 = vpop.f32.mrb[6].mxu0  ;;  %v1299_v48 = vadd.f32 %v2494_v1, %v1298_v18 }
 0x19d   : > { %v1301_v20 = vpop.f32.mrb[7].mxu0  ;;  %v1447_v53 = vmul.f32 0.01, %v1307_v47  ;;  %v1310_v54 = vadd.f32 %v1817_v19, %v2494_v1  ;;  %vm1415_vm2 = vcmp.ge.f32.partialorder %v1307_v47, 0.0 }
 0x19e   : > { %v1445_v14 = vmul.f32 0.01, %v1299_v48  ;;  %v1302_v41 = vadd.f32 %v2494_v1, %v1301_v20  ;;  %vm1413_vm0 = vcmp.ge.f32.partialorder %v1299_v48, 0.0 }
 0x19f   : > { %v2527_v57 = vsel %vm1415_vm2, %v1307_v47, %v1447_v53  ;;  %v1448_v58 = vmul.f32 0.01, %v1310_v54  ;;  %vm1416_vm3 = vcmp.ge.f32.partialorder %v1310_v54, 0.0 }
 0x1a0   : > { %v2513_v44 = vsel %vm1413_vm0, %v1299_v48, %v1445_v14  ;;  %v1446_v45 = vmul.f32 0.01, %v1302_v41  ;;  %vm1414_vm1 = vcmp.ge.f32.partialorder %v1302_v41, 0.0 }
 0x1a1   : > { %v1508_v30 = vadd.f32 %v1507_v46, %v2513_v44  ;;  %v2531_v9 = vsel %vm1416_vm3, %v1310_v54, %v1448_v58 }
 0x1a2   : > { %v2520_v51 = vsel %vm1414_vm1, %v1302_v41, %v1446_v45 }
 0x1a3   : > { %v1509_v56 = vadd.f32 %v1508_v30, %v2520_v51 }
 0x1a5   : > { %v1510_v62 = vadd.f32 %v1509_v56, %v2527_v57 }
 0x1a7   : > { %v1511_v4 = vadd.f32 %v1510_v62, %v2531_v9 }
 0x1ba   : > { %v1820_v21 = vpop.f32.mrb[8].mxu0 }
 0x1bb   : > { %v1314_v22 = vpop.f32.mrb[9].mxu0  ;;  %v1323_v11 = vadd.f32 %v1820_v21, %v2494_v1 }
 0x1bc   : > { %v1821_v24 = vpop.f32.mrb[10].mxu0  ;;  %v1315_v55 = vadd.f32 %v2494_v1, %v1314_v22 }
 0x1bd   : > { %v1317_v25 = vpop.f32.mrb[11].mxu0  ;;  %v1451_v6 = vmul.f32 0.01, %v1323_v11  ;;  %v1326_v28 = vadd.f32 %v1821_v24, %v2494_v1  ;;  %vm1419_vm6 = vcmp.ge.f32.partialorder %v1323_v11, 0.0 }
 0x1be   : > { %v1449_v59 = vmul.f32 0.01, %v1315_v55  ;;  %v1318_v61 = vadd.f32 %v2494_v1, %v1317_v25  ;;  %vm1417_vm4 = vcmp.ge.f32.partialorder %v1315_v55, 0.0 }
 0x1bf   : > { %v2543_v13 = vsel %vm1419_vm6, %v1323_v11, %v1451_v6  ;;  %v1452_v15 = vmul.f32 0.01, %v1326_v28  ;;  %vm1420_vm7 = vcmp.ge.f32.partialorder %v1326_v28, 0.0 }
 0x1c0   : > { %v2533_v63 = vsel %vm1417_vm4, %v1315_v55, %v1449_v59  ;;  %v1450_v2 = vmul.f32 0.01, %v1318_v61  ;;  %vm1418_vm5 = vcmp.ge.f32.partialorder %v1318_v61, 0.0 }
 0x1c1   : > { %v1512_v5 = vadd.f32 %v1511_v4, %v2533_v63  ;;  %v2548_v18 = vsel %vm1420_vm7, %v1326_v28, %v1452_v15 }
 0x1c2   : > { %v2538_v29 = vsel %vm1418_vm5, %v1318_v61, %v1450_v2 }
 0x1c3   : > { %v1513_v8 = vadd.f32 %v1512_v5, %v2538_v29 }
 0x1c5   : > { %v1514_v17 = vadd.f32 %v1513_v8, %v2543_v13 }
 0x1c7   : > { %v1515_v21 = vadd.f32 %v1514_v17, %v2548_v18 }
 0x1da   : > { %v2485_v26 = vpop.f32.mrb[12].mxu0 }
 0x1db   : > { %v1330_v3 = vpop.f32.mrb[13].mxu0  ;;  %v1339_v22 = vadd.f32 %v2485_v26, %v2494_v1 }
 0x1dc   : > { %v2487_v31 = vpop.f32.mrb[14].mxu0  ;;  %v1331_v7 = vadd.f32 %v2494_v1, %v1330_v3 }
 0x1dd   : > { %v2489_v32 = vpop.f32.mrb[15].mxu0  ;;  %v1455_v3 = vmul.f32 0.01, %v1339_v22  ;;  %vm1423_vm10 = vcmp.ge.f32.partialorder %v1339_v22, 0.0 }
 0x1de   : > { %v1453_v12 = vmul.f32 0.01, %v1331_v7  ;;  %v1334_v16 = vadd.f32 %v2494_v1, %v2489_v32  ;;  %vm1421_vm8 = vcmp.ge.f32.partialorder %v1331_v7, 0.0  ;;  %v1342_v32 = vadd.f32 %v2487_v31, %v2494_v1 }
 0x1df   : > { %v2562_v38 = vsel %vm1423_vm10, %v1339_v22, %v1455_v3 }
 0x1e0   : > { %v2550_v19 = vsel %vm1421_vm8, %v1331_v7, %v1453_v12  ;;  %v1454_v20 = vmul.f32 0.01, %v1334_v16  ;;  %vm1422_vm9 = vcmp.ge.f32.partialorder %v1334_v16, 0.0  ;;  %v1456_v26 = vmul.f32 0.01, %v1342_v32 }
 0x1e1   : > { %v1516_v24 = vadd.f32 %v1515_v21, %v2550_v19  ;;  %vm1424_vm11 = vcmp.ge.f32.partialorder %v1342_v32, 0.0 }
 0x1e2   : > { %v2556_v25 = vsel %vm1422_vm9, %v1334_v16, %v1454_v20  ;;  %v2566_v31 = vsel %vm1424_vm11, %v1342_v32, %v1456_v26 }
 0x1e3   : > { %v1517_v39 = vadd.f32 %v1516_v24, %v2556_v25 }
 0x1e5   : > { %v1518_v27 = vadd.f32 %v1517_v39, %v2562_v38 }
 0x1e7   : > { %v1519_v42 = vadd.f32 %v1518_v27, %v2566_v31 }
 0x1fa   : > { %v2517_v50 = vpop.f32.mrb[0].mxu1 }
 0x1fb   : > { %v1346_v60 = vpop.f32.mrb[1].mxu1  ;;  %v1355_v45 = vadd.f32 %v2517_v50, %v2494_v1 }
 0x1fc   : > { %v2522_v23 = vpop.f32.mrb[2].mxu1  ;;  %v1347_v33 = vadd.f32 %v2494_v1, %v1346_v60 }
 0x1fd   : > { %v1349_v52 = vpop.f32.mrb[3].mxu1  ;;  %v1459_v30 = vmul.f32 0.01, %v1355_v45  ;;  %v1358_v60 = vadd.f32 %v2522_v23, %v2494_v1  ;;  %vm1427_vm14 = vcmp.ge.f32.partialorder %v1355_v45, 0.0 }
 0x1fe   : > { %v1457_v48 = vmul.f32 0.01, %v1347_v33  ;;  %v1350_v49 = vadd.f32 %v2494_v1, %v1349_v52  ;;  %vm1425_vm12 = vcmp.ge.f32.partialorder %v1347_v33, 0.0 }
 0x1ff   : > { %v2580_v54 = vsel %vm1427_vm14, %v1355_v45, %v1459_v30  ;;  %v1460_v55 = vmul.f32 0.01, %v1358_v60  ;;  %vm1428_vm15 = vcmp.ge.f32.partialorder %v1358_v60, 0.0 }
 0x200   : > { %v2568_v14 = vsel %vm1425_vm12, %v1347_v33, %v1457_v48  ;;  %v1458_v41 = vmul.f32 0.01, %v1350_v49  ;;  %vm1426_vm13 = vcmp.ge.f32.partialorder %v1350_v49, 0.0  ;;  %vm1644_vm12 = vcmask 1040384  }
 0x201   : > { %v1520_v46 = vadd.f32 %v1519_v42, %v2568_v14  ;;  %v2584_v59 = vsel %vm1428_vm15, %v1358_v60, %v1460_v55 }
 0x202   : > { %v2574_v47 = vsel %vm1426_vm13, %v1350_v49, %v1458_v41 }
 0x203   : > { %v1521_v53 = vadd.f32 %v1520_v46, %v2574_v47 }
 0x205   : > { %v1522_v50 = vadd.f32 %v1521_v53, %v2580_v54 }
 0x207   : > { %v1523_v62 = vadd.f32 %v1522_v50, %v2584_v59 }
 0x21a   : > { %v1832_v34 = vpop.f32.mrb[4].mxu1 }
 0x21b   : > { %v1362_v35 = vpop.f32.mrb[5].mxu1  ;;  %v1371_v2 = vadd.f32 %v1832_v34, %v2494_v1 }
 0x21c   : > { %v1833_v36 = vpop.f32.mrb[6].mxu1  ;;  %v1363_v52 = vadd.f32 %v2494_v1, %v1362_v35 }
 0x21d   : > { %v1365_v10 = vpop.f32.mrb[7].mxu1  ;;  %v1374_v5 = vadd.f32 %v1833_v36, %v2494_v1  ;;  %v1463_v6 = vmul.f32 0.01, %v1371_v2  ;;  %vm1431_vm2 = vcmp.ge.f32.partialorder %v1371_v2, 0.0 }
 0x21e   : > { %v1461_v56 = vmul.f32 0.01, %v1363_v52  ;;  %v1366_v58 = vadd.f32 %v2494_v1, %v1365_v10  ;;  %vm1429_vm0 = vcmp.ge.f32.partialorder %v1363_v52, 0.0 }
 0x21f   : > { %v1464_v7 = vmul.f32 0.01, %v1374_v5  ;;  %v2595_v8 = vsel %vm1431_vm2, %v1371_v2, %v1463_v6  ;;  %vm1432_vm3 = vcmp.ge.f32.partialorder %v1374_v5, 0.0 }
 0x220   : > { %v2586_v61 = vsel %vm1429_vm0, %v1363_v52, %v1461_v56  ;;  %v1462_v23 = vmul.f32 0.01, %v1366_v58  ;;  %vm1430_vm1 = vcmp.ge.f32.partialorder %v1366_v58, 0.0 }
 0x221   : > { %v1524_v4 = vadd.f32 %v1523_v62, %v2586_v61  ;;  %v2600_v22 = vsel %vm1432_vm3, %v1374_v5, %v1464_v7 }
 0x222   : > { %v2591_v11 = vsel %vm1430_vm1, %v1366_v58, %v1462_v23 }
 0x223   : > { %v1525_v28 = vadd.f32 %v1524_v4, %v2591_v11 }
 0x225   : > { %v1526_v12 = vadd.f32 %v1525_v28, %v2595_v8 }
 0x227   : > { %v1527_v34 = vadd.f32 %v1526_v12, %v2600_v22 }
 0x23a   : > { %v1836_v15 = vpop.f32.mrb[8].mxu1 }
 0x23b   : > { %v1378_v16 = vpop.f32.mrb[9].mxu1  ;;  %v1387_v17 = vadd.f32 %v1836_v15, %v2494_v1 }
 0x23c   : > { %v1379_v20 = vadd.f32 %v2494_v1, %v1378_v16  ;;  %v1837_v21 = vpop.f32.mrb[10].mxu1 }
 0x23d   : > { %v1381_v24 = vpop.f32.mrb[11].mxu1  ;;  %v1390_v32 = vadd.f32 %v1837_v21, %v2494_v1  ;;  %v1467_v39 = vmul.f32 0.01, %v1387_v17  ;;  %vm1435_vm6 = vcmp.ge.f32.partialorder %v1387_v17, 0.0 }
 0x23e   : > { %vm1433_vm4 = vcmp.ge.f32.partialorder %v1379_v20, 0.0  ;;  %v1465_v3 = vmul.f32 0.01, %v1379_v20  ;;  %v1382_v33 = vadd.f32 %v2494_v1, %v1381_v24 }
 0x23f   : > { %v1468_v26 = vmul.f32 0.01, %v1390_v32  ;;  %vm1436_vm7 = vcmp.ge.f32.partialorder %v1390_v32, 0.0  ;;  %v2611_v27 = vsel %vm1435_vm6, %v1387_v17, %v1467_v39 }
 0x240   : > { %v2605_v35 = vsel %vm1433_vm4, %v1379_v20, %v1465_v3  ;;  %vm1434_vm5 = vcmp.ge.f32.partialorder %v1382_v33, 0.0  ;;  %v1466_v36 = vmul.f32 0.01, %v1382_v33 }
 0x241   : > { %v1528_v10 = vadd.f32 %v1527_v34, %v2605_v35  ;;  %v2614_v42 = vsel %vm1436_vm7, %v1390_v32, %v1468_v26 }
 0x242   : > { %v2608_v48 = vsel %vm1434_vm5, %v1382_v33, %v1466_v36 }
 0x243   : > { %v1529_v49 = vadd.f32 %v1528_v10, %v2608_v48 }
 0x245   : > { %v1530_v41 = vadd.f32 %v1529_v49, %v2611_v27 }
 0x247   : > { %v1531_v45 = vadd.f32 %v1530_v41, %v2614_v42 }
 0x257   : > { %v1840_v46 = vpop.f32.mrb[12].mxu1 }
 0x258   : > { %v1394_v30 = vpop.f32.mrb[13].mxu1  ;;  %v1403_v60 = vadd.f32 %v1840_v46, %v2494_v1 }
 0x259   : > { %v1395_v52 = vadd.f32 %v2494_v1, %v1394_v30  ;;  %v1841_v53 = vpop.f32.mrb[14].mxu1 }
 0x25a   : > { %v1397_v55 = vpop.f32.mrb[15].mxu1  ;;  %v1406_v58 = vadd.f32 %v1841_v53, %v2494_v1  ;;  %v1471_v23 = vmul.f32 0.01, %v1403_v60  ;;  %vm1439_vm10 = vcmp.ge.f32.partialorder %v1403_v60, 0.0 }
 0x25b   : > { %vm1437_vm8 = vcmp.ge.f32.partialorder %v1395_v52, 0.0  ;;  %v1469_v56 = vmul.f32 0.01, %v1395_v52  ;;  %v1398_v50 = vadd.f32 %v2494_v1, %v1397_v55 }
 0x25c   : > { %v1472_v5 = vmul.f32 0.01, %v1406_v58  ;;  %vm1440_vm11 = vcmp.ge.f32.partialorder %v1406_v58, 0.0  ;;  %v2627_v7 = vsel %vm1439_vm10, %v1403_v60, %v1471_v23 }
 0x25d   : > { %v2621_v62 = vsel %vm1437_vm8, %v1395_v52, %v1469_v56  ;;  %vm1438_vm9 = vcmp.ge.f32.partialorder %v1398_v50, 0.0  ;;  %v1470_v2 = vmul.f32 0.01, %v1398_v50 }
 0x25e   : > { %v1532_v4 = vadd.f32 %v1531_v45, %v2621_v62  ;;  %v2630_v12 = vsel %vm1440_vm11, %v1406_v58, %v1472_v5 }
 0x25f   : > { %v2624_v6 = vsel %vm1438_vm9, %v1398_v50, %v1470_v2 }
 0x260   : > { %v1533_v28 = vadd.f32 %v1532_v4, %v2624_v6 }
 0x262   : > { %v1534_v15 = vadd.f32 %v1533_v28, %v2627_v7 }
 0x264   : > { %v1535_v1 = vadd.f32 %v1534_v15, %v2630_v12 }
 0x266   : > { %v1536_v16 = vrot.slane %v1535_v1, 4 }
 0x268   : > { %v1537_v17 = vadd.f32 %v1536_v16, %v1535_v1 }
 0x26a   : > { %v1538_v20 = vrot.slane %v1537_v17, 2 }
 0x26c   : > { %v1539_v21 = vadd.f32 %v1538_v20, %v1537_v17 }
 0x26e   : > { %v1540_v24 = vrot.slane %v1539_v21, 1 }
 0x270   : > { %v2633_v3 = vadd.f32 %v1540_v24, %v1539_v21 }
 0x272   : > { %v2636_v32 = vmul.f32 0.00390625, %v2633_v3 }
 0x274   : > { %v1543_v33 = vsub.f32 %v2501_v0, %v2636_v32  ;;  %v1544_v34 = vsub.f32 %v2499_v37, %v2636_v32  ;;  %v1545_v39 = vsub.f32 %v2507_v40, %v2636_v32  ;;  %v1546_v26 = vsub.f32 %v2511_v43, %v2636_v32 }
 0x275   : > { %v1547_v49 = vsub.f32 %v2513_v44, %v2636_v32  ;;  %v1548_v46 = vsub.f32 %v2520_v51, %v2636_v32  ;;  %v1549_v37 = vsub.f32 %v2527_v57, %v2636_v32  ;;  %v1550_v52 = vsub.f32 %v2531_v9, %v2636_v32 }
 0x276   : > { %v1575_v36 = vmul.f32 %v1543_v33, %v1543_v33  ;;  %v1576_v10 = vmul.f32 %v1544_v34, %v1544_v34  ;;  %v1577_v41 = vmul.f32 %v1545_v39, %v1545_v39  ;;  %v1578_v0 = vmul.f32 %v1546_v26, %v1546_v26 }
 0x277   : > { %v1579_v60 = vmul.f32 %v1547_v49, %v1547_v49  ;;  %v1580_v53 = vmul.f32 %v1548_v46, %v1548_v46  ;;  %v1551_v44 = vsub.f32 %v2533_v63, %v2636_v32  ;;  %v1581_v55 = vmul.f32 %v1549_v37, %v1549_v37 }
 0x278   : > { %v1607_v45 = vadd.f32 %v1576_v10, %v1575_v36  ;;  %v1552_v51 = vsub.f32 %v2538_v29, %v2636_v32  ;;  %v1582_v58 = vmul.f32 %v1550_v52, %v1550_v52  ;;  %v1553_v57 = vsub.f32 %v2543_v13, %v2636_v32 }
 0x279   : > { %v1583_v23 = vmul.f32 %v1551_v44, %v1551_v44  ;;  %v1554_v9 = vsub.f32 %v2548_v18, %v2636_v32  ;;  %v1555_v63 = vsub.f32 %v2550_v19, %v2636_v32  ;;  %v1556_v29 = vsub.f32 %v2556_v25, %v2636_v32 }
 0x27a   : > { %v1608_v30 = vadd.f32 %v1607_v45, %v1577_v41  ;;  %v1584_v4 = vmul.f32 %v1552_v51, %v1552_v51  ;;  %v1585_v28 = vmul.f32 %v1553_v57, %v1553_v57  ;;  %v1557_v13 = vsub.f32 %v2562_v38, %v2636_v32 }
 0x27b   : > { %v1586_v1 = vmul.f32 %v1554_v9, %v1554_v9  ;;  %v1587_v17 = vmul.f32 %v1555_v63, %v1555_v63  ;;  %v1558_v18 = vsub.f32 %v2566_v31, %v2636_v32  ;;  %v1588_v21 = vmul.f32 %v1556_v29, %v1556_v29 }
 0x27c   : > { %v1609_v40 = vadd.f32 %v1608_v30, %v1578_v0  ;;  %v1559_v19 = vsub.f32 %v2568_v14, %v2636_v32  ;;  %v1589_v33 = vmul.f32 %v1557_v13, %v1557_v13  ;;  %v1560_v25 = vsub.f32 %v2574_v47, %v2636_v32 }
 0x27d   : > { %v1590_v39 = vmul.f32 %v1558_v18, %v1558_v18  ;;  %v1561_v38 = vsub.f32 %v2580_v54, %v2636_v32  ;;  %v1562_v31 = vsub.f32 %v2584_v59, %v2636_v32  ;;  %v1563_v14 = vsub.f32 %v2586_v61, %v2636_v32 }
 0x27e   : > { %v1610_v43 = vadd.f32 %v1609_v40, %v1579_v60  ;;  %v1591_v10 = vmul.f32 %v1559_v19, %v1559_v19  ;;  %v1592_v49 = vmul.f32 %v1560_v25, %v1560_v25  ;;  %v1564_v47 = vsub.f32 %v2591_v11, %v2636_v32 }
 0x27f   : > { %v1593_v45 = vmul.f32 %v1561_v38, %v1561_v38  ;;  %v1594_v0 = vmul.f32 %v1562_v31, %v1562_v31  ;;  %v1565_v54 = vsub.f32 %v2595_v8, %v2636_v32  ;;  %v1595_v37 = vmul.f32 %v1563_v14, %v1563_v14 }
 0x280   : > { %v1611_v56 = vadd.f32 %v1610_v43, %v1580_v53  ;;  %v1566_v59 = vsub.f32 %v2600_v22, %v2636_v32  ;;  %v1596_v40 = vmul.f32 %v1564_v47, %v1564_v47  ;;  %v1567_v61 = vsub.f32 %v2605_v35, %v2636_v32 }
 0x281   : > { %v1597_v53 = vmul.f32 %v1565_v54, %v1565_v54  ;;  %v1568_v11 = vsub.f32 %v2608_v48, %v2636_v32  ;;  %v1569_v8 = vsub.f32 %v2611_v27, %v2636_v32  ;;  %v1570_v22 = vsub.f32 %v2614_v42, %v2636_v32 }
 0x282   : > { %v1612_v50 = vadd.f32 %v1611_v56, %v1581_v55  ;;  %v1598_v44 = vmul.f32 %v1566_v59, %v1566_v59  ;;  %v1599_v56 = vmul.f32 %v1567_v61, %v1567_v61  ;;  %v1571_v35 = vsub.f32 %v2621_v62, %v2636_v32 }
 0x283   : > { %v1601_v57 = vmul.f32 %v1569_v8, %v1569_v8  ;;  %v1572_v48 = vsub.f32 %v2624_v6, %v2636_v32  ;;  %v1573_v27 = vsub.f32 %v2627_v7, %v2636_v32  ;;  %v1574_v42 = vsub.f32 %v2630_v12, %v2636_v32 }
 0x284   : > { %v1613_v2 = vadd.f32 %v1612_v50, %v1582_v58  ;;  %v1600_v58 = vmul.f32 %v1568_v11, %v1568_v11 }
 0x285   : > { %v1604_v63 = vmul.f32 %v1572_v48, %v1572_v48  ;;  %v1606_v29 = vmul.f32 %v1574_v42, %v1574_v42 }
 0x286   : > { %v1614_v5 = vadd.f32 %v1613_v2, %v1583_v23  ;;  %v1602_v2 = vmul.f32 %v1570_v22, %v1570_v22 }
 0x288   : > { %v1615_v15 = vadd.f32 %v1614_v5, %v1584_v4  ;;  %v1603_v4 = vmul.f32 %v1571_v35, %v1571_v35 }
 0x28a   : > { %v1616_v16 = vadd.f32 %v1615_v15, %v1585_v28  ;;  %v1605_v15 = vmul.f32 %v1573_v27, %v1573_v27 }
 0x28c   : > { %v1617_v20 = vadd.f32 %v1616_v16, %v1586_v1 }
 0x28e   : > { %v1618_v24 = vadd.f32 %v1617_v20, %v1587_v17 }
 0x290   : > { %v1619_v34 = vadd.f32 %v1618_v24, %v1588_v21 }
 0x292   : > { %v1620_v36 = vadd.f32 %v1619_v34, %v1589_v33 }
 0x294   : > { %v1621_v26 = vadd.f32 %v1620_v36, %v1590_v39 }
 0x296   : > { %v1622_v41 = vadd.f32 %v1621_v26, %v1591_v10 }
 0x298   : > { %v1623_v46 = vadd.f32 %v1622_v41, %v1592_v49 }
 0x29a   : > { %v1624_v30 = vadd.f32 %v1623_v46, %v1593_v45 }
 0x29c   : > { %v1625_v60 = vadd.f32 %v1624_v30, %v1594_v0 }
 0x29e   : > { %v1626_v52 = vadd.f32 %v1625_v60, %v1595_v37 }
 0x2a0   : > { %v1627_v43 = vadd.f32 %v1626_v52, %v1596_v40 }
 0x2a2   : > { %v1628_v55 = vadd.f32 %v1627_v43, %v1597_v53 }
 0x2a4   : > { %v1629_v51 = vadd.f32 %v1628_v55, %v1598_v44 }
 0x2a6   : > { %v1630_v50 = vadd.f32 %v1629_v51, %v1599_v56 }
 0x2a8   : > { %v1631_v23 = vadd.f32 %v1630_v50, %v1600_v58 }
 0x2aa   : > { %v1632_v9 = vadd.f32 %v1631_v23, %v1601_v57 }
 0x2ac   : > { %v1633_v5 = vadd.f32 %v1632_v9, %v1602_v2 }
 0x2ae   : > { %v1634_v28 = vadd.f32 %v1633_v5, %v1603_v4 }
 0x2b0   : > { %v1635_v62 = vadd.f32 %v1634_v28, %v1604_v63 }
 0x2b2   : > { %v1636_v1 = vadd.f32 %v1635_v62, %v1605_v15 }
 0x2b4   : > { %v1637_v16 = vadd.f32 %v1636_v1, %v1606_v29 }
 0x2b6   : > { %v1638_v13 = vrot.slane %v1637_v16, 4 }
 0x2b8   : > { %v1639_v6 = vadd.f32 %v1638_v13, %v1637_v16 }
 0x2ba   : > { %v1640_v17 = vrot.slane %v1639_v6, 2 }
 0x2bc   : > { %v1641_v20 = vadd.f32 %v1640_v17, %v1639_v6 }
 0x2be   : > { %v1642_v18 = vrot.slane %v1641_v20, 1 }
 0x2c0   : > { %v1643_v7 = vadd.f32 %v1642_v18, %v1641_v20 }
 0x2c2   : > { %v1645_v12 = vsel %vm1644_vm12, %v2633_v3, %v1643_v7 }
 0x2c3   : > { %1646 = vst [vmem:[%s188_s16] sm:$0x3] %v1645_v12 }
 0x2c4 PF: > { %s13_s14 = sadd.s32 1, %s1944_s14   ;;  %s2720_s12 = smov %s1940_s13 }
 0x2c5   : > { %p10_p5 = scmp.ge.s32.totalorder %s13_s14, 4   ;;  %s2721_s13 = smov %s2723_s15 }
 0x2c7   :  { %12 = sbr.rel (!%p10_p5) target bundleno = 2 (0x2), region = 63 }

</bundles_post_ra>
